<compile_context>
chip_gen: v5e
topology: v5e:2x2
jax: 0.10.0
libtpu: 0.0.40
codegen_flags: <defaults>
</compile_context>

<pallas_src>
import jax
import jax.numpy as jnp
from jax.experimental import pallas as pl
from jax.experimental.pallas import tpu as pltpu

H1_PAD = 512    # 400 padded up to a multiple of 128
H2_PAD = 384    # 300 padded up to a multiple of 128
OUT_ROWS = 8    # layer-3 output dim (1) padded to one sublane group; row 0 is q


def _round_up(x, m):
    return (x + m - 1) // m * m


def _pick_tile(batch, tile_b):
    """Batch tile: multiple of 8; >=2 grid steps for big single-tile batches."""
    b8 = max(8, _round_up(batch, 8))
    if b8 > tile_b:
        return tile_b
    if b8 >= 512:
        # Whole batch fits one tile but is large: split into two grid steps so
        # both v7x TensorCores get work (harmless on single-TC v5e/v6e).
        return _round_up((b8 + 1) // 2, 8)
    return b8


def critic_kernel(xu_ref, w1_ref, b1_ref, w2_ref, b2_ref, w3t_ref, b3_ref,
                  out_ref):
    prec = jax.lax.Precision.HIGHEST  # true-f32 MXU passes (explicit, not default)

    # Layer 1: (tile, S+A) @ (S+A, 512) + b1, ReLU. Single merged matmul.
    h1 = jnp.maximum(
        jnp.dot(xu_ref[...], w1_ref[...],
                preferred_element_type=jnp.float32, precision=prec)
        + b1_ref[...], 0.0)

    # Layer 2: (tile, 512) @ (512, 384) + b2, ReLU. Padded rows/cols are zero.
    h2 = jnp.maximum(
        jnp.dot(h1, w2_ref[...],
                preferred_element_type=jnp.float32, precision=prec)
        + b2_ref[...], 0.0)

    # Layer 3, transposed: W3^T (8, 384) contracted against h2 (tile, 384) on
    # the 384 axis -> (8, tile). Row 0 is the real Q (rows 1..7 are zero
    # padding). Stored lane-dense as a (1, tile) row: unmasked vst, ~128x less
    # output HBM writeback than a (tile, 128) f32 slab.
    q_t = jax.lax.dot_general(
        w3t_ref[...], h2,
        dimension_numbers=(((1,), (1,)), ((), ())),
        preferred_element_type=jnp.float32, precision=prec)
    out_ref[...] = q_t[0:1, :] + b3_ref[...]


def critic_forward(x, u, kernel_params, *, tile_b=512):
    """x: [B, state_dim], u: [B, action_dim] -> q: [B, 1]."""
    w1, b1, w2, b2, w3t, b3 = kernel_params
    B = x.shape[0]

    # Merge layer-1 operands once in the wrapper (negligible HBM traffic):
    # cat([x, u]) @ W1 is a single K=(S+A) matmul in the kernel.
    xu = jnp.concatenate([x, u], axis=1)
    k1 = xu.shape[1]

    tile = _pick_tile(B, tile_b)
    b_pad = _round_up(B, tile)
    if b_pad != B:
        # NOTE: padded (zero) batch rows still produce nonzero q (biases
        # propagate through the ReLUs). They are sliced off below — never
        # reduce over the padded output before slicing.
        xu = jnp.pad(xu, ((0, b_pad - B), (0, 0)))

    grid = (b_pad // tile,)

    def resident(shape):
        # Constant block index -> stays resident in VMEM across grid steps.
        # (pipeline_mode=pl.Buffered(1) would trim the dead second buffer;
        #  skipped — VMEM headroom is ample at tile<=1024.)
        return pl.BlockSpec(shape, lambda i: (0, 0))

    out = pl.pallas_call(
        critic_kernel,
        out_shape=jax.ShapeDtypeStruct((1, b_pad), jnp.float32),
        grid=grid,
        in_specs=[
            pl.BlockSpec((tile, k1), lambda i: (i, 0)),
            resident(w1.shape), resident(b1.shape),
            resident(w2.shape), resident(b2.shape),
            resident(w3t.shape), resident(b3.shape),
        ],
        out_specs=pl.BlockSpec((1, tile), lambda i: (0, i)),
        compiler_params=pltpu.CompilerParams(
            dimension_semantics=("parallel",)),
    )(xu, w1, b1, w2, b2, w3t, b3)

    # Row 0 of the (1, b_pad) slab holds q for every (unpadded) batch row.
    return out[0, :B].reshape(B, 1)


def init_critic_params(key, state_dim, action_dim):
    """True (unpadded) params, PyTorch-default-style U(-1/sqrt(fan_in), ...)."""
    def linear(k, fan_in, fan_out):
        kw, kb = jax.random.split(k)
        bound = 1.0 / jnp.sqrt(float(fan_in))
        # stored as [in, out] (already transposed vs. torch's [out, in])
        w = jax.random.uniform(kw, (fan_in, fan_out), jnp.float32, -bound, bound)
        b = jax.random.uniform(kb, (1, fan_out), jnp.float32, -bound, bound)
        return w, b

    k1, k2, k3 = jax.random.split(key, 3)
    w1, b1 = linear(k1, state_dim + action_dim, 400)
    w2, b2 = linear(k2, 400, 300)
    w3, b3 = linear(k3, 300, 1)
    return (w1, b1, w2, b2, w3, b3)


def pad_critic_params(params, state_dim, action_dim):
    """Zero-pad hidden dims to lane multiples; store W3 transposed.

    Zero padding is numerically exact: padded bias entries are 0, so padded
    hidden lanes are ReLU(0)=0 and contribute nothing downstream.
    """
    w1, b1, w2, b2, w3, b3 = params
    in_dim = state_dim + action_dim

    def pad2(a, rows, cols):
        return jnp.pad(a, ((0, rows - a.shape[0]), (0, cols - a.shape[1])))

    w1p = pad2(w1, in_dim, H1_PAD)
    b1p = pad2(b1, 1, H1_PAD)
    w2p = pad2(w2, H1_PAD, H2_PAD)
    b2p = pad2(b2, 1, H2_PAD)
    # Layer-3 weight stored transposed as (OUT_ROWS, H2_PAD); only row 0 real.
    w3t = pad2(w3.T, OUT_ROWS, H2_PAD)
    return (w1p, b1p, w2p, b2p, w3t, b3)   # b3 stays (1, 1)


def critic_reference(x, u, params):
    w1, b1, w2, b2, w3, b3 = params
    h = jnp.concatenate([x, u], axis=1)
    h = jnp.maximum(jnp.dot(h, w1, precision='highest') + b1, 0.0)
    h = jnp.maximum(jnp.dot(h, w2, precision='highest') + b2, 0.0)
    return jnp.dot(h, w3, precision='highest') + b3


if __name__ == "__main__":
    state_dim, action_dim = 8, 4
    key = jax.random.PRNGKey(0)
    kx, ku, kp = jax.random.split(key, 3)
    params = init_critic_params(kp, state_dim, action_dim)
    kernel_params = pad_critic_params(params, state_dim, action_dim)

    fwd = jax.jit(critic_forward)

    # Small primary example (batch=2) — single grid step, padded to 8 rows.
    x = jax.random.normal(kx, (2, state_dim), jnp.float32)
    u = jax.random.normal(ku, (2, action_dim), jnp.float32)
    q = fwd(x, u, kernel_params)
    jax.block_until_ready(q)
    q_ref = critic_reference(x, u, params)
    assert q.shape == (2, 1), q.shape
    assert jnp.allclose(q, q_ref, atol=1e-4, rtol=1e-4), (q, q_ref)

    # Larger batch — exercises batch padding and a multi-step "parallel" grid.
    xb = jax.random.normal(kx, (600, state_dim), jnp.float32)
    ub = jax.random.normal(ku, (600, action_dim), jnp.float32)
    qb = fwd(xb, ub, kernel_params)
    jax.block_until_ready(qb)
    qb_ref = critic_reference(xb, ub, params)
    assert qb.shape == (600, 1), qb.shape
    assert jnp.allclose(qb, qb_ref, atol=1e-4, rtol=1e-4)

    print("KERNEL_OK")
</pallas_src>

<mosaic_0001>
module attributes {stable_mosaic.version = 11 : i64} {
  func.func @critic_kernel(%arg0: i32, %arg1: memref<8x12xf32, #tpu.memory_space<vmem>>, %arg2: memref<12x512xf32, #tpu.memory_space<vmem>>, %arg3: memref<1x512xf32, #tpu.memory_space<vmem>>, %arg4: memref<512x384xf32, #tpu.memory_space<vmem>>, %arg5: memref<1x384xf32, #tpu.memory_space<vmem>>, %arg6: memref<8x384xf32, #tpu.memory_space<vmem>>, %arg7: memref<1x1xf32, #tpu.memory_space<vmem>>, %arg8: memref<1x8xf32, #tpu.memory_space<vmem>>) attributes {dimension_semantics = [#tpu.dimension_semantics<parallel>], iteration_bounds = array<i64: 1>, scalar_prefetch = 0 : i64, scratch_operands = 0 : i64, tpu.core_type = #tpu.core_type<tc>, window_params = [{transform_indices = @transform_0, window_bounds = array<i64: 8, 12>}, {pipeline_mode = #tpu.pipeline_mode<synchronous>, transform_indices = @transform_1, window_bounds = array<i64: 12, 512>}, {pipeline_mode = #tpu.pipeline_mode<synchronous>, transform_indices = @transform_2, window_bounds = array<i64: 1, 512>}, {pipeline_mode = #tpu.pipeline_mode<synchronous>, transform_indices = @transform_3, window_bounds = array<i64: 512, 384>}, {pipeline_mode = #tpu.pipeline_mode<synchronous>, transform_indices = @transform_4, window_bounds = array<i64: 1, 384>}, {pipeline_mode = #tpu.pipeline_mode<synchronous>, transform_indices = @transform_5, window_bounds = array<i64: 8, 384>}, {pipeline_mode = #tpu.pipeline_mode<synchronous>, transform_indices = @transform_6, window_bounds = array<i64: 1, 1>}, {transform_indices = @transform_7, window_bounds = array<i64: 1, 8>}]} {
    %c0 = arith.constant 0 : index
    %c0_0 = arith.constant 0 : index
    %0 = vector.load %arg1[%c0, %c0_0] : memref<8x12xf32, #tpu.memory_space<vmem>>, vector<8x12xf32>
    %c0_1 = arith.constant 0 : index
    %c0_2 = arith.constant 0 : index
    %1 = vector.load %arg2[%c0_1, %c0_2] : memref<12x512xf32, #tpu.memory_space<vmem>>, vector<12x512xf32>
    %cst = arith.constant dense<0.000000e+00> : vector<8x512xf32>
    %2 = tpu.matmul %0, %1, %cst {dimension_numbers = #tpu.dot_dimension_numbers<[1], [0], [0], [1], [0, 0, 1, 1], [], []>, precision = #tpu.contract_precision<fp32>} : vector<8x12xf32>, vector<12x512xf32>, vector<8x512xf32> -> vector<8x512xf32>
    %c0_3 = arith.constant 0 : index
    %c0_4 = arith.constant 0 : index
    %3 = vector.load %arg3[%c0_3, %c0_4] : memref<1x512xf32, #tpu.memory_space<vmem>>, vector<1x512xf32>
    %4 = vector.broadcast %3 : vector<1x512xf32> to vector<8x512xf32>
    %5 = arith.addf %2, %4 : vector<8x512xf32>
    %cst_5 = arith.constant 0.000000e+00 : f32
    %6 = vector.broadcast %cst_5 : f32 to vector<8x512xf32>
    %7 = arith.maximumf %5, %6 : vector<8x512xf32>
    %c0_6 = arith.constant 0 : index
    %c0_7 = arith.constant 0 : index
    %8 = vector.load %arg4[%c0_6, %c0_7] : memref<512x384xf32, #tpu.memory_space<vmem>>, vector<512x384xf32>
    %cst_8 = arith.constant dense<0.000000e+00> : vector<8x384xf32>
    %9 = tpu.matmul %7, %8, %cst_8 {dimension_numbers = #tpu.dot_dimension_numbers<[1], [0], [0], [1], [0, 0, 1, 1], [], []>, precision = #tpu.contract_precision<fp32>} : vector<8x512xf32>, vector<512x384xf32>, vector<8x384xf32> -> vector<8x384xf32>
    %c0_9 = arith.constant 0 : index
    %c0_10 = arith.constant 0 : index
    %10 = vector.load %arg5[%c0_9, %c0_10] : memref<1x384xf32, #tpu.memory_space<vmem>>, vector<1x384xf32>
    %11 = vector.broadcast %10 : vector<1x384xf32> to vector<8x384xf32>
    %12 = arith.addf %9, %11 : vector<8x384xf32>
    %cst_11 = arith.constant 0.000000e+00 : f32
    %13 = vector.broadcast %cst_11 : f32 to vector<8x384xf32>
    %14 = arith.maximumf %12, %13 : vector<8x384xf32>
    %c0_12 = arith.constant 0 : index
    %c0_13 = arith.constant 0 : index
    %15 = vector.load %arg6[%c0_12, %c0_13] : memref<8x384xf32, #tpu.memory_space<vmem>>, vector<8x384xf32>
    %cst_14 = arith.constant dense<0.000000e+00> : vector<8x8xf32>
    %16 = tpu.matmul %15, %14, %cst_14 {dimension_numbers = #tpu.dot_dimension_numbers<[1], [1], [0], [0], [0, 0, 1, 0], [], []>, precision = #tpu.contract_precision<fp32>} : vector<8x384xf32>, vector<8x384xf32>, vector<8x8xf32> -> vector<8x8xf32>
    %17 = vector.extract_strided_slice %16 {offsets = [0, 0], sizes = [1, 8], strides = [1, 1]} : vector<8x8xf32> to vector<1x8xf32>
    %c0_15 = arith.constant 0 : index
    %c0_16 = arith.constant 0 : index
    %18 = vector.load %arg7[%c0_15, %c0_16] : memref<1x1xf32, #tpu.memory_space<vmem>>, vector<1x1xf32>
    %19 = vector.broadcast %18 : vector<1x1xf32> to vector<1x8xf32>
    %20 = arith.addf %17, %19 : vector<1x8xf32>
    %c0_17 = arith.constant 0 : index
    %c0_18 = arith.constant 0 : index
    %21 = vector.load %arg8[%c0_17, %c0_18] : memref<1x8xf32, #tpu.memory_space<vmem>>, vector<1x8xf32>
    tpu.vector_store %arg8[%c0_17, %c0_18], %20 {strides = array<i32>} : memref<1x8xf32, #tpu.memory_space<vmem>>, vector<1x8xf32>,
    return
  }
  func.func @transform_0(%arg0: i32) -> (i32, i32) {
    %c0_i32 = arith.constant 0 : i32
    %c0_i32_0 = arith.constant 0 : i32
    return %arg0, %c0_i32 : i32, i32
  }
  func.func @transform_1(%arg0: i32) -> (i32, i32) {
    %c0_i32 = arith.constant 0 : i32
    %c0_i32_0 = arith.constant 0 : i32
    %c0_i32_1 = arith.constant 0 : i32
    return %c0_i32, %c0_i32_0 : i32, i32
  }
  func.func @transform_2(%arg0: i32) -> (i32, i32) {
    %c0_i32 = arith.constant 0 : i32
    %c0_i32_0 = arith.constant 0 : i32
    %c0_i32_1 = arith.constant 0 : i32
    return %c0_i32, %c0_i32_0 : i32, i32
  }
  func.func @transform_3(%arg0: i32) -> (i32, i32) {
    %c0_i32 = arith.constant 0 : i32
    %c0_i32_0 = arith.constant 0 : i32
    %c0_i32_1 = arith.constant 0 : i32
    return %c0_i32, %c0_i32_0 : i32, i32
  }
  func.func @transform_4(%arg0: i32) -> (i32, i32) {
    %c0_i32 = arith.constant 0 : i32
    %c0_i32_0 = arith.constant 0 : i32
    %c0_i32_1 = arith.constant 0 : i32
    return %c0_i32, %c0_i32_0 : i32, i32
  }
  func.func @transform_5(%arg0: i32) -> (i32, i32) {
    %c0_i32 = arith.constant 0 : i32
    %c0_i32_0 = arith.constant 0 : i32
    %c0_i32_1 = arith.constant 0 : i32
    return %c0_i32, %c0_i32_0 : i32, i32
  }
  func.func @transform_6(%arg0: i32) -> (i32, i32) {
    %c0_i32 = arith.constant 0 : i32
    %c0_i32_0 = arith.constant 0 : i32
    %c0_i32_1 = arith.constant 0 : i32
    return %c0_i32, %c0_i32_0 : i32, i32
  }
  func.func @transform_7(%arg0: i32) -> (i32, i32) {
    %c0_i32 = arith.constant 0 : i32
    %c0_i32_0 = arith.constant 0 : i32
    return %c0_i32, %arg0 : i32, i32
  }
}

</mosaic_0001>

<bundles_post_ra>
// kernel: critic_forward.1
= control target key start
LH: loop header
LB: loop body
LE: loop exit
PB: predicated region body
PF: predicated region fallthrough
CT: control target
= control target key end

     0   :  { %s8837_s0 = inlined_call_operand.vmem [shape: f32[8,12], index: 0, kind: input, shape index: {}]   ;;  %s8838_s1 = inlined_call_operand.hbm [shape: f32[12,512], index: 1, kind: input, shape index: {}]   ;;  %s8839_s2 = inlined_call_operand.vmem [shape: f32[1,512], index: 2, kind: input, shape index: {}]   ;;  %s8840_s3 = inlined_call_operand.hbm [shape: f32[512,384], index: 3, kind: input, shape index: {}]   ;;  %s8841_s4 = inlined_call_operand.vmem [shape: f32[1,384], index: 4, kind: input, shape index: {}]   ;;  %s8842_s5 = inlined_call_operand.hbm [shape: f32[8,384], index: 5, kind: input, shape index: {}]   ;;  %s8843_s6 = inlined_call_operand.<no memory space> [shape: f32[1,1], index: 6, kind: input, shape index: {}]   ;;  %s8844_s7 = inlined_call_operand.vmem [shape: f32[1,8], index: 7, kind: output, shape index: {}]  }
   0x1   :  { %v12_v0 = vstv %s8843_s6 }
   0x2   :  { %13 = vst [vmem:[#allocation2] sm:$0x1] %v12_v0 }
   0x3   :  { %14 = vsyncpa [#allocation4], 0 }
   0x4   :  { %15 = vsyncpa [#allocation6], 0  ;;  %s37_s28 = sshll.u32 %s8840_s3, 4  ;;  %s5587_s29 = smov [#allocation5]   ;;  %s38_s28 = int_to_ptr.hbm [resolvable:$true] %s37_s28 }
   0x5   :  { %s39_s30 = sshll.u32 %s5587_s29, 4  ;;  %s22_s10 = sshll.u32 %s8838_s1, 4  ;;  %s40_s30 = int_to_ptr.vmem [resolvable:$true] %s39_s30  ;;  %s23_s10 = int_to_ptr.hbm [resolvable:$true] %s22_s10 }
   0x6   :  { %s5588_s11 = smov 384   ;;  %s5589_s12 = smov 24  }
   0x7   :  { %45 = dma.hbm_to_vmem [thread:$0]  %s38_s28, 24576, %s40_s30, [#allocation6], %s5588_s11, %s5588_s11, %s5589_s12  }
   0x8   :  { %s5590_s6 = smov [#allocation3]   ;;  %s5591_s14 = smov 512  }
   0x9   :  { %s24_s13 = sshll.u32 %s5590_s6, 4  ;;  %s5592_s15 = smov 32   ;;  %s25_s13 = int_to_ptr.vmem [resolvable:$true] %s24_s13 }
   0xa   :  { %30 = dma.hbm_to_vmem [thread:$0]  %s23_s10, 1024, %s25_s13, [#allocation4], %s5591_s14, %s5591_s14, %s5592_s15  }
   0xb   :  { %s53_s17 = sshll.u32 %s8842_s5, 4  ;;  %s5593_s18 = smov [#allocation7]   ;;  %s54_s17 = int_to_ptr.hbm [resolvable:$true] %s53_s17 }
   0xc   :  { %s55_s19 = sshll.u32 %s5593_s18, 4  ;;  %s56_s19 = int_to_ptr.vmem [resolvable:$true] %s55_s19 }
   0xd   :  { %58 = dma.hbm_to_vmem [thread:$0]  %s54_s17, 384, %s56_s19, [#allocation6]  }
   0xe   :  { %5583 = dma.done.wait [#allocation4], 1024  }
   0xf   :  { %5584 = vsyncadd [#allocation4], 4294966272 }
  0x10   :  { %5585 = dma.done.wait [#allocation6], 24960  }
  0x11   :  { %5586 = vsyncadd [#allocation6], 4294942336  ;;  %vm96_vm0 = vcmask 1043456   ;;  %vm92_vm1 = vcmask 97280   ;;  %v78_v1 = vld [vmem:[#allocation3 + $0x20] sm:$0xf] }
  0x12   :  { %v74_v2 = vld [vmem:[#allocation3] sm:$0xff]  ;;  %v98_v4 = vsel %vm96_vm0, %v78_v1, 0  ;;  %v79_v7 = vld [vmem:[#allocation3 + $0x28] sm:$0xf]  ;;  %v80_v13 = vld [vmem:[#allocation3 + $0x30] sm:$0xf] }
  0x13   :  { %v73_v3 = vld [vmem:[%s8837_s0] sm:$0xff]  ;;  %v5651_v5 = vand.u32 4294901760, %v74_v2  ;;  %v75_v8 = vld [vmem:[#allocation3 + $0x8] sm:$0xff]  ;;  %v123_v9 = vand.u32 4294901760, %v98_v4  ;;  %v101_v11 = vsel %vm96_vm0, %v79_v7, 0  ;;  %v104_v16 = vsel %vm96_vm0, %v80_v13, 0 }
  0x14   :  { %v94_v6 = vsel %vm92_vm1, %v73_v3, 0  ;;  %v5656_v12 = vand.u32 4294901760, %v75_v8  ;;  %v5659_v15 = vand.u32 4294901760, %v101_v11  ;;  %v76_v22 = vld [vmem:[#allocation3 + $0x10] sm:$0xff]  ;;  %v5671_v26 = vand.u32 4294901760, %v104_v16  ;;  %v77_v43 = vld [vmem:[#allocation3 + $0x18] sm:$0xff] }
  0x15   :  { %v5653_v10 = vand.u32 4294901760, %v94_v6  ;;  %v157_v14 = vsub.f32 %v74_v2, %v5651_v5  ;;  %v151_v17 = vsub.f32 %v98_v4, %v123_v9  ;;  %124 = vmatpush.msra.mxu0 %v123_v9  ;;  %208 = vmatpush.msra.mxu3 %v123_v9  ;;  %v5677_v32 = vand.u32 4294901760, %v76_v22  ;;  %v81_v42 = vld [vmem:[#allocation3 + $0x38] sm:$0xf]  ;;  %v794_v57 = vld [vmem:[#allocation5 + $0x168] sm:$0xff]  ;;  %v791_v60 = vld [vmem:[#allocation5 + $0x150] sm:$0xff] }
  0x16   :  { %v316_v19 = vsub.f32 %v75_v8, %v5656_v12  ;;  %v310_v21 = vsub.f32 %v101_v11, %v5659_v15  ;;  %v469_v37 = vsub.f32 %v104_v16, %v5671_v26  ;;  %v107_v45 = vsel %vm96_vm0, %v81_v42, 0  ;;  %v788_v0 = vld [vmem:[#allocation5 + $0x138] sm:$0xff]  ;;  %v785_v2 = vld [vmem:[#allocation5 + $0x120] sm:$0xff]  ;;  %v779_v8 = vld [vmem:[#allocation5 + $0xf0] sm:$0xff] }
  0x17   :  { %v5663_v18 = vsub.f32 %v94_v6, %v5653_v10  ;;  %v158_v20 = vand.u32 4294901760, %v157_v14  ;;  %183 = vmatpush.msra.mxu2 %v151_v17  ;;  %126 = vmatpush.msra.mxu0 %v5651_v5  ;;  %v152_v23 = vand.u32 4294901760, %v151_v17  ;;  %v475_v40 = vsub.f32 %v76_v22, %v5677_v32  ;;  %v776_v13 = vld [vmem:[#allocation5 + $0xd8] sm:$0xff] }
  0x18   :  { %v317_v25 = vand.u32 4294901760, %v316_v19  ;;  %210 = vmatpush.msra.mxu3 %v5651_v5  ;;  %v311_v28 = vand.u32 4294901760, %v310_v21  ;;  %v470_v41 = vand.u32 4294901760, %v469_v37  ;;  %v5690_v46 = vand.u32 4294901760, %v77_v43 }
  0x19   :  { %v5669_v24 = vand.u32 4294901760, %v5663_v18  ;;  %v159_v27 = vsub.f32 %v157_v14, %v158_v20  ;;  %186 = vmatpush.msra.mxu2 %v157_v14  ;;  %v153_v29 = vsub.f32 %v151_v17, %v152_v23  ;;  %235 = vmatpush.msrb.mxu0 %v152_v23  ;;  %v476_v44 = vand.u32 4294901760, %v475_v40  ;;  %v773_v17 = vld [vmem:[#allocation5 + $0xc0] sm:$0xff]  ;;  %v770_v23 = vld [vmem:[#allocation5 + $0xa8] sm:$0xff] }
  0x1a   :  { %v318_v31 = vsub.f32 %v316_v19, %v317_v25  ;;  %189 = vmatmul.f32.vlgmr.msra.gmra.mxu2 %v5663_v18  ;;  %v312_v33 = vsub.f32 %v310_v21, %v311_v28  ;;  %v5693_v47 = vand.u32 4294901760, %v107_v45  ;;  %v471_v48 = vsub.f32 %v469_v37, %v470_v41 }
  0x1b   :  { %v130_v30 = vsub.f32 %v5663_v18, %v5669_v24  ;;  %214 = vmatmul.f32.vlgmr.msra.gmra.mxu3 %v5669_v24  ;;  %v154_v34 = vand.u32 4294901760, %v153_v29  ;;  %v160_v36 = vand.u32 4294901760, %v159_v27  ;;  %283 = vmatpush.msrb.mxu2 %v5659_v15  ;;  %v5697_v49 = vsub.f32 %v77_v43, %v5690_v46  ;;  %v767_v29 = vld [vmem:[#allocation5 + $0x90] sm:$0xff] }
  0x1c   :  { %v313_v38 = vand.u32 4294901760, %v312_v33  ;;  %239 = vmatpush.msrb.mxu0 %v158_v20  ;;  %v319_v39 = vand.u32 4294901760, %v318_v31  ;;  %v628_v50 = vsub.f32 %v107_v45, %v5693_v47  ;;  %v477_v51 = vsub.f32 %v475_v40, %v476_v44 }
  0x1d   :  { %v5680_v35 = vand.u32 4294901760, %v130_v30  ;;  %155 = vmatpush.msra.mxu1 %v154_v34  ;;  %285 = vmatpush.msrb.mxu2 %v5656_v12  ;;  %v635_v53 = vand.u32 4294901760, %v5697_v49  ;;  %v472_v54 = vand.u32 4294901760, %v471_v48  ;;  %v5715_v61 = vand.u32 4294901760, %v794_v57  ;;  %v764_v34 = vld [vmem:[#allocation5 + $0x78] sm:$0xff] }
  0x1e   :  { %314 = vmatpush.msrb.mxu3 %v313_v38  ;;  %v629_v52 = vand.u32 4294901760, %v628_v50  ;;  %v478_v56 = vand.u32 4294901760, %v477_v51  ;;  %v5719_v63 = vand.u32 4294901760, %v791_v60  ;;  %v5727_v3 = vand.u32 4294901760, %v788_v0 }
  0x1f   :  { %132 = vmatmul.f32.vlgmr.msra.gmra.mxu0 %v5680_v35  ;;  %161 = vmatpush.msra.mxu1 %v160_v36  ;;  %v636_v58 = vsub.f32 %v5697_v49, %v635_v53  ;;  %v5723_v1 = vsub.f32 %v794_v57, %v5715_v61  ;;  %v5734_v6 = vand.u32 4294901760, %v785_v2  ;;  %v5775_v27 = vand.u32 4294901760, %v773_v17 }
  0x20   :  { %394 = vmatpush.msra.mxu2 %v311_v28  ;;  %163 = vmatmul.f32.vlgmr.msra.gmra.mxu1 %v5653_v10  ;;  %v630_v55 = vsub.f32 %v628_v50, %v629_v52  ;;  %v5731_v4 = vsub.f32 %v791_v60, %v5719_v63  ;;  %v5787_v33 = vand.u32 4294901760, %v770_v23  ;;  %vm5493_vm2 = vcmask 57344  }
  0x21   :  { %320 = vmatpush.msrb.mxu3 %v319_v39  ;;  %260 = vmatpush.msrb.mxu1 %v123_v9  ;;  %v637_v62 = vand.u32 4294901760, %v636_v58  ;;  %v992_v7 = vand.u32 4294901760, %v5723_v1  ;;  %v5740_v9 = vsub.f32 %v788_v0, %v5727_v3  ;;  %v5747_v14 = vsub.f32 %v785_v2, %v5734_v6  ;;  %v752_v58 = vld [vmem:[#allocation5 + $0x18] sm:$0xff]  ;;  %v842_v0 = vld [vmem:[#allocation5 + $0x2e8] sm:$0xff] }
  0x22   :  { %291 = vmatmul.f32.vlgmr.msrb.gmra.mxu2 %v5680_v35  ;;  %342 = vmatpush.msra.mxu0 %v310_v21  ;;  %v631_v59 = vand.u32 4294901760, %v630_v55  ;;  %v5762_v21 = vand.u32 4294901760, %v776_v13  ;;  %v5797_v38 = vsub.f32 %v773_v17, %v5775_v27  ;;  %v5799_v39 = vand.u32 4294901760, %v767_v29 }
  0x23   :  { %322 = vmatmul.f32.vlgmr.msrb.gmra.mxu3 %v5653_v10  ;;  %262 = vmatpush.msrb.mxu1 %v5651_v5  ;;  %v782_v5 = vld [vmem:[#allocation5 + $0x108] sm:$0xff]  ;;  %v993_v16 = vsub.f32 %v5723_v1, %v992_v7  ;;  %v5811_v45 = vsub.f32 %v770_v23, %v5787_v33  ;;  %v5859_v17 = vand.u32 4294901760, %v752_v58  ;;  %v839_v23 = vld [vmem:[#allocation5 + $0x2d0] sm:$0xff] }
  0x24   :  { %398 = vmatpush.msra.mxu2 %v317_v25  ;;  %419 = vmatpush.msra.mxu3 %v5659_v15  ;;  %v5742_v11 = vand.u32 4294901760, %v782_v5  ;;  %v1010_v25 = vand.u32 4294901760, %v5747_v14  ;;  %v5823_v51 = vsub.f32 %v767_v29, %v5799_v39 }
  0x25   :  { %345 = vmatpush.msra.mxu0 %v316_v19  ;;  %367 = vmatpush.msra.mxu1 %v5659_v15  ;;  %v5749_v15 = vand.u32 4294901760, %v779_v8  ;;  %v1004_v19 = vand.u32 4294901760, %v5740_v9  ;;  %v994_v28 = vand.u32 4294901760, %v993_v16 }
  0x26   :  { %421 = vmatpush.msra.mxu3 %v5656_v12  ;;  %501 = vmatpush.msrb.mxu2 %v469_v37  ;;  %v5760_v20 = vsub.f32 %v782_v5, %v5742_v11  ;;  %v1011_v36 = vsub.f32 %v5747_v14, %v1010_v25  ;;  %v8850_v60 = vand.u32 4294901760, %v5823_v51  ;;  %v749_v5 = vld [vmem:[#allocation5] sm:$0xff] }
  0x27   :  { %241 = vmatmul.f32.vlgmr.msrb.gmra.mxu0 %v5653_v10  ;;  %369 = vmatpush.msra.mxu1 %v5656_v12  ;;  %v998_v12 = vand.u32 4294901760, %v5731_v4  ;;  %v1005_v30 = vsub.f32 %v5740_v9, %v1004_v19 }
  0x28   :  { %442 = vmatpush.msrb.mxu0 %v5671_v26  ;;  %264 = vmatmul.f32.vlgmr.msrb.gmra.mxu1 %v5653_v10  ;;  %v1016_v31 = vand.u32 4294901760, %v5760_v20  ;;  %v1012_v48 = vand.u32 4294901760, %v1011_v36  ;;  %v1047_v29 = vsub.f32 %v5823_v51, %v8850_v60  ;;  %v836_v36 = vld [vmem:[#allocation5 + $0x2b8] sm:$0xff] }
  0x29   :  { %504 = vmatpush.msrb.mxu2 %v475_v40  ;;  %526 = vmatpush.msrb.mxu3 %v5671_v26  ;;  %v999_v22 = vsub.f32 %v5731_v4, %v998_v12  ;;  %v761_v40 = vld [vmem:[#allocation5 + $0x60] sm:$0xff]  ;;  %v1006_v42 = vand.u32 4294901760, %v1005_v30 }
  0x2a   :  { %444 = vmatpush.msrb.mxu0 %v5677_v32  ;;  %400 = vmatmul.f32.vlgmr.msra.gmra.mxu2 %v5653_v10  ;;  %v1017_v43 = vsub.f32 %v5760_v20, %v1016_v31 }
  0x2b   :  { %423 = vmatmul.f32.vlgmr.msra.gmra.mxu3 %v5653_v10  ;;  %473 = vmatpush.msrb.mxu1 %v472_v54 }
  0x2c   :  { %601 = vmatpush.msra.mxu2 %v5693_v47  ;;  %528 = vmatpush.msrb.mxu3 %v5677_v32  ;;  %v1018_v54 = vand.u32 4294901760, %v1017_v43  ;;  %v5883_v43 = vsub.f32 %v752_v58, %v5859_v17 }
  0x2d   :  { %479 = vmatpush.msrb.mxu1 %v478_v56  ;;  %v1040_v56 = vand.u32 4294901760, %v5811_v45 }
  0x2e   :  { %603 = vmatpush.msra.mxu2 %v5690_v46  ;;  %632 = vmatpush.msra.mxu3 %v631_v59 }
  0x2f   :  { %348 = vmatmul.f32.vlgmr.msra.gmra.mxu0 %v5663_v18 }
  0x30   :  { %553 = vmatpush.msra.mxu0 %v470_v41  ;;  %373 = vmatmul.f32.vlgmr.msra.gmra.mxu1 %v5669_v24  ;;  %v5803_v41 = vand.u32 4294901760, %v764_v34 }
  0x31   :  { %578 = vmatpush.msra.mxu1 %v5671_v26  ;;  %638 = vmatpush.msra.mxu3 %v637_v62  ;;  %v5773_v26 = vsub.f32 %v779_v8, %v5749_v15 }
  0x32   :  { %557 = vmatpush.msra.mxu0 %v476_v44  ;;  %507 = vmatmul.f32.vlgmr.msrb.gmra.mxu2 %v5663_v18 }
  0x33   :  { %532 = vmatmul.f32.vlgmr.msrb.gmra.mxu3 %v5669_v24  ;;  %580 = vmatpush.msra.mxu1 %v5677_v32  ;;  %v5785_v32 = vsub.f32 %v776_v13, %v5762_v21  ;;  %v1022_v37 = vand.u32 4294901760, %v5773_v26  ;;  %v1041_v13 = vsub.f32 %v5811_v45, %v1040_v56 }
  0x34   :  { %712 = vmatpush.msrb.mxu2 %v629_v52  ;;  %737 = vmatpush.msrb.mxu3 %v5693_v47  ;;  %v5828_v52 = vsub.f32 %v764_v34, %v5803_v41  ;;  %v5873_v34 = vand.u32 4294901760, %v749_v5 }
  0x35   :  { %v1028_v44 = vand.u32 4294901760, %v5785_v32 }
  0x36   :  { %716 = vmatpush.msrb.mxu2 %v635_v53  ;;  %739 = vmatpush.msrb.mxu3 %v5690_v46  ;;  %v755_v53 = vld [vmem:[#allocation5 + $0x30] sm:$0xff]  ;;  %v8848_v2 = vand.u32 4294901760, %v5828_v52  ;;  %v5898_v58 = vsub.f32 %v749_v5, %v5873_v34 }
  0x37   :  { %450 = vmatmul.f32.vlgmr.msrb.gmra.mxu0 %v5680_v35  ;;  %v1029_v55 = vsub.f32 %v5785_v32, %v1028_v44  ;;  %v5847_v62 = vand.u32 4294901760, %v755_v53 }
  0x38   :  { %660 = vmatpush.msrb.mxu0 %v628_v50  ;;  %481 = vmatmul.f32.vlgmr.msrb.gmra.mxu1 %v5653_v10  ;;  %v1034_v50 = vand.u32 4294901760, %v5797_v38 }
  0x39   :  { %685 = vmatpush.msrb.mxu1 %v5693_v47  ;;  %v758_v47 = vld [vmem:[#allocation5 + $0x48] sm:$0xff]  ;;  %v1030_v8 = vand.u32 4294901760, %v1029_v55  ;;  %v5871_v30 = vsub.f32 %v755_v53, %v5847_v62  ;;  %v833_v53 = vld [vmem:[#allocation5 + $0x2a0] sm:$0xff] }
  0x3a   :  { %663 = vmatpush.msrb.mxu0 %v5697_v49  ;;  %609 = vmatmul.f32.vlgmr.msra.gmra.mxu2 %v5680_v35  ;;  %v1000_v35 = vand.u32 4294901760, %v999_v22  ;;  %v1023_v49 = vsub.f32 %v5773_v26, %v1022_v37  ;;  %v5835_v57 = vand.u32 4294901760, %v758_v47  ;;  %v5864_v22 = vand.u32 4294901760, %v842_v0 }
  0x3b   :  { %640 = vmatmul.f32.vlgmr.msra.gmra.mxu3 %v5653_v10  ;;  %687 = vmatpush.msrb.mxu1 %v5690_v46  ;;  %v5815_v46 = vand.u32 4294901760, %v761_v40  ;;  %v8847_v55 = vand.u32 4294901760, %v5871_v30 }
  0x3c   :  { %1146 = vmatpush.msra.mxu3 %v5715_v61  ;;  %1093 = vmatpush.msra.mxu2 %v5723_v1  ;;  %v1024_v59 = vand.u32 4294901760, %v1023_v49  ;;  %v5857_v16 = vsub.f32 %v758_v47, %v5835_v57  ;;  %v5885_v47 = vand.u32 4294901760, %v839_v23  ;;  %v5893_v49 = vsub.f32 %v842_v0, %v5864_v22 }
  0x3e   :  { %1148 = vmatpush.msra.mxu3 %v5719_v63  ;;  %1096 = vmatpush.msra.mxu2 %v5731_v4  ;;  %v5910_v5 = vsub.f32 %v839_v23, %v5885_v47  ;;  %v821_v4 = vld [vmem:[#allocation5 + $0x240] sm:$0xff] }
  0x3f   :  { %559 = vmatmul.f32.vlgmr.msra.gmra.mxu0 %v5653_v10 }
  0x40   :  { %950 = vmatpush.msra.mxu0 %v5715_v61  ;;  %1150 = vmatpush.msra.mxu3 %v5727_v3 }
  0x41   :  { %1099 = vmatpush.msra.mxu2 %v5740_v9  ;;  %582 = vmatmul.f32.vlgmr.msra.gmra.mxu1 %v5653_v10  ;;  %v6020_v9 = vand.u32 4294901760, %v821_v4 }
  0x42   :  { %952 = vmatpush.msra.mxu0 %v5719_v63  ;;  %995 = vmatpush.msra.mxu1 %v994_v28 }
  0x43   :  { %1102 = vmatpush.msra.mxu2 %v5747_v14  ;;  %1152 = vmatpush.msra.mxu3 %v5734_v6  ;;  %v9017_v14 = vand.u32 4294901760, %v5828_v52 }
  0x44   :  { %718 = vmatmul.f32.vlgmr.msrb.gmra.mxu2 %v5653_v10  ;;  %1001 = vmatpush.msra.mxu1 %v1000_v35  ;;  %v1053_v35 = vsub.f32 %v5828_v52, %v8848_v2 }
  0x45   :  { %1105 = vmatpush.msra.mxu2 %v5760_v20  ;;  %741 = vmatmul.f32.vlgmr.msrb.gmra.mxu3 %v5653_v10  ;;  %v5840_v10 = vsub.f32 %v761_v40, %v5815_v46  ;;  %v1042_v40 = vand.u32 4294901760, %v1041_v13  ;;  %v8849_v13 = vand.u32 4294901760, %v5883_v43 }
  0x46   :  { %954 = vmatpush.msra.mxu0 %v5727_v3  ;;  %1007 = vmatpush.msra.mxu1 %v1006_v42  ;;  %v8845_v42 = vand.u32 4294901760, %v5857_v16 }
  0x47   :  { %666 = vmatmul.f32.vlgmr.msrb.gmra.mxu0 %v5663_v18  ;;  %1108 = vmatpush.msra.mxu2 %v5773_v26  ;;  %v1035_v18 = vsub.f32 %v5797_v38, %v1034_v50  ;;  %v9018_v26 = vand.u32 4294901760, %v5840_v10 }
  0x48   :  { %1154 = vmatpush.msra.mxu3 %v5742_v11  ;;  %1013 = vmatpush.msra.mxu1 %v1012_v48  ;;  %v1065_v0 = vsub.f32 %v5857_v16, %v8845_v42  ;;  %v1082_v42 = vand.u32 4294901760, %v5898_v58 }
  0x49   :  { %956 = vmatpush.msra.mxu0 %v5734_v6  ;;  %691 = vmatmul.f32.vlgmr.msrb.gmra.mxu1 %v5669_v24  ;;  %v8846_v24 = vand.u32 4294901760, %v5840_v10  ;;  %v1036_v28 = vand.u32 4294901760, %v1035_v18  ;;  %v1054_v18 = vand.u32 4294901760, %v1053_v35  ;;  %v8851_v35 = vand.u32 4294901760, %v5893_v49 }
  0x4a   :  { %1111 = vmatpush.msra.mxu2 %v5785_v32  ;;  %1019 = vmatpush.msra.mxu1 %v1018_v54  ;;  %v1048_v54 = vand.u32 4294901760, %v1047_v29 }
  0x4b   :  { %1156 = vmatpush.msra.mxu3 %v5749_v15  ;;  %958 = vmatpush.msra.mxu0 %v5742_v11  ;;  %v1059_v48 = vsub.f32 %v5840_v10, %v8846_v24 }
  0x4c   :  { %1114 = vmatpush.msra.mxu2 %v5797_v38  ;;  %1025 = vmatpush.msra.mxu1 %v1024_v59  ;;  %v5900_v59 = vand.u32 4294901760, %v836_v36  ;;  %v812_v38 = vld [vmem:[#allocation5 + $0x1f8] sm:$0xff] }
  0x4d   :  { %1158 = vmatpush.msra.mxu3 %v5762_v21  ;;  %960 = vmatpush.msra.mxu0 %v5749_v15  ;;  %v1060_v29 = vand.u32 4294901760, %v1059_v48  ;;  %v1066_v48 = vand.u32 4294901760, %v1065_v0  ;;  %v1083_v0 = vsub.f32 %v5898_v58, %v1082_v42 }
  0x4e   :  { %1117 = vmatpush.msra.mxu2 %v5811_v45  ;;  %1031 = vmatpush.msra.mxu1 %v1030_v8  ;;  %v830_v8 = vld [vmem:[#allocation5 + $0x288] sm:$0xff]  ;;  %v5923_v23 = vsub.f32 %v836_v36, %v5900_v59  ;;  %v1334_v36 = vsub.f32 %v5893_v49, %v8851_v35  ;;  %v6058_v45 = vand.u32 4294901760, %v812_v38 }
  0x4f   :  { %1160 = vmatpush.msra.mxu3 %v5775_v27  ;;  %962 = vmatpush.msra.mxu0 %v5762_v21  ;;  %v5925_v24 = vand.u32 4294901760, %v830_v8  ;;  %v1084_v35 = vand.u32 4294901760, %v1083_v0 }
  0x50   :  { %1120 = vmatpush.msra.mxu2 %v5823_v51  ;;  %1037 = vmatpush.msra.mxu1 %v1036_v28  ;;  %v5912_v28 = vand.u32 4294901760, %v833_v53 }
  0x51   :  { %1162 = vmatpush.msra.mxu3 %v5787_v33  ;;  %964 = vmatpush.msra.mxu0 %v5775_v27 }
  0x52   :  { %1123 = vmatpush.msra.mxu2 %v5828_v52  ;;  %1043 = vmatpush.msra.mxu1 %v1042_v40  ;;  %v1071_v40 = vsub.f32 %v5871_v30, %v8847_v55  ;;  %v8852_v55 = vand.u32 4294901760, %v5910_v5  ;;  %v5935_v2 = vsub.f32 %v833_v53, %v5912_v28  ;;  %v5948_v53 = vsub.f32 %v830_v8, %v5925_v24 }
  0x53   :  { %1164 = vmatpush.msra.mxu3 %v5799_v39  ;;  %966 = vmatpush.msra.mxu0 %v5787_v33  ;;  %v1335_v8 = vand.u32 4294901760, %v1334_v36  ;;  %v9020_v52 = vand.u32 4294901760, %v5871_v30 }
  0x54   :  { %1126 = vmatpush.msra.mxu2 %v5840_v10  ;;  %1049 = vmatpush.msra.mxu1 %v1048_v54  ;;  %v1077_v54 = vsub.f32 %v5883_v43, %v8849_v13  ;;  %v1345_v13 = vand.u32 4294901760, %v5923_v23 }
  0x55   :  { %1166 = vmatpush.msra.mxu3 %v5803_v41  ;;  %968 = vmatpush.msra.mxu0 %v5799_v39 }
  0x56   :  { %1129 = vmatpush.msra.mxu2 %v5857_v16  ;;  %1055 = vmatpush.msra.mxu1 %v1054_v18  ;;  %v1072_v18 = vand.u32 4294901760, %v1071_v40  ;;  %v1078_v60 = vand.u32 4294901760, %v1077_v54  ;;  %v1351_v40 = vand.u32 4294901760, %v5935_v2  ;;  %v1357_v54 = vand.u32 4294901760, %v5948_v53 }
  0x57   :  { %1168 = vmatpush.msra.mxu3 %v5815_v46  ;;  %970 = vmatpush.msra.mxu0 %v5803_v41 }
  0x58   :  { %1132 = vmatpush.msra.mxu2 %v5871_v30  ;;  %1061 = vmatpush.msra.mxu1 %v1060_v29  ;;  %v1340_v29 = vsub.f32 %v5910_v5, %v8852_v55  ;;  %v1352_v36 = vsub.f32 %v5935_v2, %v1351_v40  ;;  %v1358_v0 = vsub.f32 %v5948_v53, %v1357_v54 }
  0x59   :  { %1170 = vmatpush.msra.mxu3 %v5835_v57  ;;  %972 = vmatpush.msra.mxu0 %v5815_v46 }
  0x5a   :  { %1135 = vmatpush.msra.mxu2 %v5883_v43  ;;  %1067 = vmatpush.msra.mxu1 %v1066_v48  ;;  %v1346_v48 = vsub.f32 %v5923_v23, %v1345_v13  ;;  %v1341_v55 = vand.u32 4294901760, %v1340_v29  ;;  %v1359_v29 = vand.u32 4294901760, %v1358_v0  ;;  %v803_v0 = vld [vmem:[#allocation5 + $0x1b0] sm:$0xff] }
  0x5b   :  { %1172 = vmatpush.msra.mxu3 %v5847_v62  ;;  %974 = vmatpush.msra.mxu0 %v5835_v57 }
  0x5c   :  { %1138 = vmatpush.msra.mxu2 %v5898_v58  ;;  %1073 = vmatpush.msra.mxu1 %v1072_v18  ;;  %v1347_v18 = vand.u32 4294901760, %v1346_v48 }
  0x5d   :  { %1174 = vmatpush.msra.mxu3 %v5859_v17  ;;  %976 = vmatpush.msra.mxu0 %v5847_v62 }
  0x5e   :  { %1291 = vmatpush.msrb.mxu2 %v5864_v22  ;;  %1079 = vmatpush.msra.mxu1 %v1078_v60  ;;  %v1353_v60 = vand.u32 4294901760, %v1352_v36 }
  0x5f   :  { %1176 = vmatpush.msra.mxu3 %v5873_v34  ;;  %978 = vmatpush.msra.mxu0 %v5859_v17 }
  0x60   :  { %1293 = vmatpush.msrb.mxu2 %v5885_v47  ;;  %1085 = vmatpush.msra.mxu1 %v1084_v35  ;;  %v827_v35 = vld [vmem:[#allocation5 + $0x270] sm:$0xff] }
  0x61   :  { %1336 = vmatpush.msrb.mxu3 %v1335_v8  ;;  %980 = vmatpush.msra.mxu0 %v5873_v34 }
  0x62   :  { %1254 = vmatpush.msrb.mxu1 %v5715_v61  ;;  %1295 = vmatpush.msrb.mxu2 %v5900_v59  ;;  %v5986_v61 = vand.u32 4294901760, %v827_v35 }
  0x63   :  { %1342 = vmatpush.msrb.mxu3 %v1341_v55  ;;  %1187 = vmatpush.msrb.mxu0 %v992_v7  ;;  %v806_v55 = vld [vmem:[#allocation5 + $0x1c8] sm:$0xff] }
  0x64   :  { %1256 = vmatpush.msrb.mxu1 %v5719_v63  ;;  %1297 = vmatpush.msrb.mxu2 %v5912_v28  ;;  %v824_v63 = vld [vmem:[#allocation5 + $0x258] sm:$0xff]  ;;  %v6085_v48 = vand.u32 4294901760, %v806_v55 }
  0x65   :  { %1348 = vmatpush.msrb.mxu3 %v1347_v18  ;;  %1191 = vmatpush.msrb.mxu0 %v998_v12  ;;  %v6010_v1 = vand.u32 4294901760, %v824_v63  ;;  %v818_v12 = vld [vmem:[#allocation5 + $0x228] sm:$0xff] }
  0x66   :  { %1258 = vmatpush.msrb.mxu1 %v5727_v3  ;;  %1299 = vmatpush.msrb.mxu2 %v5925_v24  ;;  %v6013_v3 = vsub.f32 %v827_v35, %v5986_v61  ;;  %v6033_v20 = vand.u32 4294901760, %v818_v12  ;;  %v6097_v35 = vand.u32 4294901760, %v803_v0 }
  0x67   :  { %1354 = vmatpush.msrb.mxu3 %v1353_v60  ;;  %1195 = vmatpush.msrb.mxu0 %v1004_v19 }
  0x68   :  { %1260 = vmatpush.msrb.mxu1 %v5734_v6  ;;  %1301 = vmatpush.msrb.mxu2 %v5986_v61  ;;  %v9016_v6 = vand.u32 4294901760, %v5823_v51  ;;  %v1363_v7 = vand.u32 4294901760, %v6013_v3  ;;  %v809_v51 = vld [vmem:[#allocation5 + $0x1e0] sm:$0xff] }
  0x69   :  { %1360 = vmatpush.msrb.mxu3 %v1359_v29  ;;  %1199 = vmatpush.msrb.mxu0 %v1010_v25  ;;  %v815_v25 = vld [vmem:[#allocation5 + $0x210] sm:$0xff]  ;;  %v6069_v10 = vand.u32 4294901760, %v809_v51  ;;  %v6100_v29 = vsub.f32 %v806_v55, %v6085_v48 }
  0x6a   :  { %1262 = vmatpush.msrb.mxu1 %v5742_v11  ;;  %1303 = vmatpush.msrb.mxu2 %v6010_v1  ;;  %v6023_v11 = vsub.f32 %v824_v63, %v6010_v1  ;;  %v800_v63 = vld [vmem:[#allocation5 + $0x198] sm:$0xff] }
  0x6b   :  { %1203 = vmatpush.msrb.mxu0 %v1016_v31  ;;  %v6088_v36 = vsub.f32 %v809_v51, %v6069_v10  ;;  %v6106_v58 = vand.u32 4294901760, %v800_v63 }
  0x6c   :  { %1264 = vmatpush.msrb.mxu1 %v5749_v15  ;;  %v1364_v15 = vsub.f32 %v6013_v3, %v1363_v7  ;;  %1305 = vmatpush.msrb.mxu2 %v6020_v9  ;;  %v1369_v19 = vand.u32 4294901760, %v6023_v11 }
  0x6d   :  { %1207 = vmatpush.msrb.mxu0 %v1022_v37  ;;  %v6049_v37 = vsub.f32 %v818_v12, %v6033_v20  ;;  %v1399_v60 = vand.u32 4294901760, %v6088_v36  ;;  %v8856_v12 = vand.u32 4294901760, %v6100_v29 }
  0x6e   :  { %1266 = vmatpush.msrb.mxu1 %v5762_v21  ;;  %v6036_v21 = vsub.f32 %v821_v4, %v6020_v9  ;;  %v1370_v31 = vsub.f32 %v6023_v11, %v1369_v19  ;;  %1307 = vmatpush.msrb.mxu2 %v6033_v20 }
  0x6f   :  { %1211 = vmatpush.msrb.mxu0 %v1028_v44 }
  0x70   :  { %1268 = vmatpush.msrb.mxu1 %v5775_v27  ;;  %v1365_v27 = vand.u32 4294901760, %v1364_v15  ;;  %v1375_v32 = vand.u32 4294901760, %v6036_v21 }
  0x71   :  { %1215 = vmatpush.msrb.mxu0 %v1034_v50  ;;  %v1381_v50 = vand.u32 4294901760, %v6049_v37 }
  0x72   :  { %1270 = vmatpush.msrb.mxu1 %v5787_v33  ;;  %v6046_v33 = vand.u32 4294901760, %v815_v25  ;;  %1366 = vmatpush.msrb.mxu3 %v1365_v27  ;;  %v1376_v44 = vsub.f32 %v6036_v21, %v1375_v32 }
  0x73   :  { %1219 = vmatpush.msrb.mxu0 %v1040_v56 }
  0x74   :  { %1272 = vmatpush.msrb.mxu1 %v5799_v39  ;;  %v9019_v39 = vand.u32 4294901760, %v5857_v16  ;;  %1309 = vmatpush.msrb.mxu2 %v6046_v33  ;;  %v1377_v56 = vand.u32 4294901760, %v1376_v44  ;;  %v1382_v16 = vsub.f32 %v6049_v37, %v1381_v50 }
  0x75   :  { %1223 = vmatpush.msrb.mxu0 %v9016_v6  ;;  %v6109_v6 = vsub.f32 %v803_v0, %v6097_v35 }
  0x76   :  { %1274 = vmatpush.msrb.mxu1 %v5803_v41  ;;  %v1371_v41 = vand.u32 4294901760, %v1370_v31  ;;  %1311 = vmatpush.msrb.mxu2 %v6058_v45  ;;  %v1383_v18 = vand.u32 4294901760, %v1382_v16  ;;  %v6120_v31 = vsub.f32 %v800_v63, %v6106_v58 }
  0x77   :  { %1227 = vmatpush.msrb.mxu0 %v9017_v14  ;;  %v8855_v15 = vand.u32 4294901760, %v6109_v6 }
  0x78   :  { %1276 = vmatpush.msrb.mxu1 %v5815_v46  ;;  %v6061_v46 = vsub.f32 %v815_v25, %v6046_v33  ;;  %1372 = vmatpush.msrb.mxu3 %v1371_v41  ;;  %v797_v25 = vld [vmem:[#allocation5 + $0x180] sm:$0xff]  ;;  %v8854_v41 = vand.u32 4294901760, %v6120_v31 }
  0x79   :  { %1231 = vmatpush.msrb.mxu0 %v9018_v26  ;;  %1313 = vmatpush.msrb.mxu2 %v6069_v10  ;;  %v1406_v26 = vsub.f32 %v6100_v29, %v8856_v12  ;;  %v6117_v27 = vand.u32 4294901760, %v797_v25 }
  0x7a   :  { %1278 = vmatpush.msrb.mxu1 %v5835_v57  ;;  %v1387_v57 = vand.u32 4294901760, %v6061_v46  ;;  %1378 = vmatpush.msrb.mxu3 %v1377_v56 }
  0x7b   :  { %1235 = vmatpush.msrb.mxu0 %v9019_v39  ;;  %1315 = vmatpush.msrb.mxu2 %v6085_v48  ;;  %v1407_v39 = vand.u32 4294901760, %v1406_v26  ;;  %v6128_v44 = vsub.f32 %v797_v25, %v6117_v27 }
  0x7c   :  { %1280 = vmatpush.msrb.mxu1 %v5847_v62  ;;  %v6072_v62 = vsub.f32 %v812_v38, %v6058_v45  ;;  %v1388_v30 = vsub.f32 %v6061_v46, %v1387_v57  ;;  %1384 = vmatpush.msrb.mxu3 %v1383_v18  ;;  %v1412_v38 = vsub.f32 %v6109_v6, %v8855_v15 }
  0x7d   :  { %1239 = vmatpush.msrb.mxu0 %v9020_v52  ;;  %1317 = vmatpush.msrb.mxu2 %v6097_v35  ;;  %v1418_v52 = vsub.f32 %v6120_v31, %v8854_v41  ;;  %v8853_v56 = vand.u32 4294901760, %v6128_v44 }
  0x7e   :  { %1282 = vmatpush.msrb.mxu1 %v5859_v17  ;;  %v9021_v17 = vand.u32 4294901760, %v5883_v43  ;;  %v1393_v8 = vand.u32 4294901760, %v6072_v62  ;;  %v1413_v51 = vand.u32 4294901760, %v1412_v38 }
  0x7f   :  { %1319 = vmatpush.msrb.mxu2 %v6106_v58  ;;  %v1419_v16 = vand.u32 4294901760, %v1418_v52  ;;  %v1424_v55 = vsub.f32 %v6128_v44, %v8853_v56 }
  0x80   :  { %1284 = vmatpush.msrb.mxu1 %v5873_v34  ;;  %1243 = vmatpush.msrb.mxu0 %v9021_v17  ;;  %v1389_v34 = vand.u32 4294901760, %v1388_v30  ;;  %v1394_v43 = vsub.f32 %v6072_v62, %v1393_v8  ;;  %v6140_v30 = vld [vmem:[%s8839_s2] sm:$0xf] }
  0x81   :  { %1321 = vmatpush.msrb.mxu2 %v6117_v27  ;;  %v1425_v17 = vand.u32 4294901760, %v1424_v55  ;;  %v84_v18 = vperm.slane %v6140_v30, 0  ;;  %v85_v38 = vperm.slane %v6140_v30, 1 }
  0x82   :  { %1247 = vmatpush.msrb.mxu0 %v1082_v42  ;;  %v1395_v4 = vand.u32 4294901760, %v1394_v43  ;;  %v1400_v42 = vsub.f32 %v6088_v36, %v1399_v60  ;;  %1390 = vmatpush.msrb.mxu3 %v1389_v34 }
  0x84   :  { %v1401_v14 = vand.u32 4294901760, %v1400_v42  ;;  %1396 = vmatpush.msrb.mxu3 %v1395_v4 }
  0x86   :  { %1402 = vmatpush.msrb.mxu3 %v1401_v14 }
  0x88   :  { %1408 = vmatpush.msrb.mxu3 %v1407_v39 }
  0x8a   :  { %1414 = vmatpush.msrb.mxu3 %v1413_v51 }
  0x8c   :  { %1420 = vmatpush.msrb.mxu3 %v1419_v16 }
  0x8e   :  { %1426 = vmatpush.msrb.mxu3 %v1425_v17 }
  0x9c   :  { %v133_v0 = vpop.f32.mrf.mxu0 }
  0x9d   :  { %v134_v34 = vadd.f32 %v133_v0, %v84_v18  ;;  %v164_v63 = vpop.f32.mrf.mxu1  ;;  %v190_v4 = vpop.f32.mrf.mxu2 }
  0x9e   :  { %v215_v43 = vpop.f32.mrf.mxu3 }
  0x9f   :  { %v165_v42 = vadd.f32 %v164_v63, %v134_v34 }
  0xa1   :  { %v191_v14 = vadd.f32 %v190_v4, %v165_v42  ;;  %v9025_v42 = vand.u32 4294901760, %v5893_v49 }
  0xa3   :  { %v216_v25 = vadd.f32 %v215_v43, %v191_v14 }
  0xa4   :  { %v242_v26 = vpop.f32.mrf.mxu0 }
  0xa5   :  { %v243_v39 = vadd.f32 %v242_v26, %v216_v25  ;;  %v265_v52 = vpop.f32.mrf.mxu1  ;;  %v292_v16 = vpop.f32.mrf.mxu2  ;;  %v9026_v25 = vand.u32 4294901760, %v5910_v5 }
  0xa6   :  { %v323_v51 = vpop.f32.mrf.mxu3  ;;  %v293_v17 = vadd.f32 %v292_v16, %v85_v38 }
  0xa7   :  { %v266_v55 = vadd.f32 %v265_v52, %v243_v39  ;;  %v869_v52 = vld [vmem:[#allocation5 + $0x3c0] sm:$0xff] }
  0xa8   :  { %v324_v41 = vadd.f32 %v323_v51, %v293_v17 }
  0xa9   :  { %v745_v56 = vmax.f32 %v266_v55, 0.0  ;;  %v9032_v55 = vand.u32 4294901760, %v6100_v29 }
  0xab   :  { %v6144_v15 = vand.u32 4294901760, %v745_v56 }
  0xac   :  { %v349_v18 = vpop.f32.mrf.mxu0 }
  0xad   :  { %9022 = vst [vmem:[#allocation10_spill] sm:$0xff] %v6144_v15  ;;  %v350_v0 = vadd.f32 %v349_v18, %v324_v41  ;;  %v6147_v12 = vsub.f32 %v745_v56, %v6144_v15  ;;  %1087 = vmatmul.f32.vlgmr.msra.gmra.mxu1 %v6144_v15  ;;  %v374_v34 = vpop.f32.mrf.mxu1  ;;  %v401_v43 = vpop.f32.mrf.mxu2  ;;  %v6278_v18 = vand.u32 4294901760, %v869_v52 }
  0xae   :  { %1487 = vmatpush.msra.mxu1 %v5864_v22  ;;  %v424_v41 = vpop.f32.mrf.mxu3 }
  0xaf   :  { %9023 = vst [vmem:[#allocation11_spill] sm:$0xff] %v6147_v12  ;;  %v375_v63 = vadd.f32 %v374_v34, %v350_v0  ;;  %1141 = vmatmul.f32.vlgmr.msra.gmra.mxu2 %v6147_v12  ;;  %v6153_v4 = vand.u32 4294901760, %v6147_v12  ;;  %v866_v0 = vld [vmem:[#allocation5 + $0x3a8] sm:$0xff] }
  0xb0   :  { %1489 = vmatpush.msra.mxu1 %v5885_v47  ;;  %1528 = vmatpush.msra.mxu2 %v9025_v42 }
  0xb1   :  { %9024 = vst [vmem:[#allocation12_spill] sm:$0xff] %v6153_v4  ;;  %v402_v56 = vadd.f32 %v401_v43, %v375_v63  ;;  %1180 = vmatmul.f32.vlgmr.msra.gmra.mxu3 %v6153_v4  ;;  %v984_v14 = vsub.f32 %v6147_v12, %v6153_v4 }
  0xb2   :  { %1491 = vmatpush.msra.mxu1 %v5900_v59  ;;  %1532 = vmatpush.msra.mxu2 %v9026_v25 }
  0xb3   :  { %1595 = vmatpush.msra.mxu3 %v5864_v22  ;;  %v425_v26 = vadd.f32 %v424_v41, %v402_v56  ;;  %v6165_v38 = vand.u32 4294901760, %v984_v14  ;;  %v863_v41 = vld [vmem:[#allocation5 + $0x390] sm:$0xff]  ;;  %v6297_v56 = vand.u32 4294901760, %v866_v0  ;;  %v9034_v14 = vand.u32 4294901760, %v6120_v31 }
  0xb4   :  { %1493 = vmatpush.msra.mxu1 %v5912_v28  ;;  %1536 = vmatpush.msra.mxu2 %v1345_v13 }
  0xb5   :  { %9027 = vst [vmem:[#allocation13_spill] sm:$0xff] %v6165_v38  ;;  %v746_v39 = vmax.f32 %v425_v26, 0.0  ;;  %1597 = vmatpush.msra.mxu3 %v5885_v47  ;;  %986 = vmatmul.f32.vlgmr.msra.gmra.mxu0 %v6165_v38  ;;  %v890_v47 = vld [vmem:[#allocation5 + $0x468] sm:$0xff]  ;;  %v482_v34 = vpop.f32.mrf.mxu1  ;;  %v6306_v26 = vsub.f32 %v869_v52, %v6278_v18  ;;  %v911_v38 = vld [vmem:[#allocation5 + $0x510] sm:$0xff] }
  0xb6   :  { %1286 = vmatmul.f32.vlgmr.msrb.gmra.mxu1 %v6144_v15  ;;  %1434 = vmatpush.msra.mxu0 %v5893_v49 }
  0xb7   :  { %v6174_v51 = vand.u32 4294901760, %v746_v39  ;;  %1495 = vmatpush.msra.mxu1 %v5925_v24  ;;  %1540 = vmatpush.msra.mxu2 %v1351_v40 }
  0xb8   :  { %1599 = vmatpush.msra.mxu3 %v5900_v59  ;;  %1437 = vmatpush.msra.mxu0 %v5910_v5  ;;  %v887_v59 = vld [vmem:[#allocation5 + $0x450] sm:$0xff]  ;;  %v6202_v5 = vand.u32 4294901760, %v890_v47 }
  0xb9   :  { %9028 = vst [vmem:[#allocation14_spill] sm:$0xff] %v6174_v51  ;;  %v6182_v22 = vsub.f32 %v746_v39, %v6174_v51  ;;  %1497 = vmatpush.msra.mxu1 %v5986_v61  ;;  %1544 = vmatpush.msra.mxu2 %v1357_v54  ;;  %v878_v54 = vld [vmem:[#allocation5 + $0x408] sm:$0xff] }
  0xba   :  { %1601 = vmatpush.msra.mxu3 %v5912_v28  ;;  %1440 = vmatpush.msra.mxu0 %v5923_v23  ;;  %v884_v28 = vld [vmem:[#allocation5 + $0x438] sm:$0xff]  ;;  %v881_v23 = vld [vmem:[#allocation5 + $0x420] sm:$0xff]  ;;  %v6218_v40 = vsub.f32 %v890_v47, %v6202_v5 }
  0xbb   :  { %9029 = vst [vmem:[#allocation15_spill] sm:$0xff] %v6182_v22  ;;  %1499 = vmatpush.msra.mxu1 %v6010_v1  ;;  %1548 = vmatpush.msra.mxu2 %v1363_v7  ;;  %v6193_v49 = vand.u32 4294901760, %v6182_v22  ;;  %v860_v47 = vld [vmem:[#allocation5 + $0x378] sm:$0xff] }
  0xbc   :  { %1603 = vmatpush.msra.mxu3 %v5925_v24  ;;  %1443 = vmatpush.msra.mxu0 %v5935_v2  ;;  %v6210_v24 = vand.u32 4294901760, %v887_v59 }
  0xbd   :  { %9030 = vst [vmem:[#allocation16_spill] sm:$0xff] %v6193_v49  ;;  %1501 = vmatpush.msra.mxu1 %v6020_v9  ;;  %1552 = vmatpush.msra.mxu2 %v1369_v19  ;;  %v1325_v13 = vsub.f32 %v6182_v22, %v6193_v49  ;;  %v872_v19 = vld [vmem:[#allocation5 + $0x3d8] sm:$0xff] }
  0xbe   :  { %1605 = vmatpush.msra.mxu3 %v5986_v61  ;;  %1249 = vmatmul.f32.vlgmr.msrb.gmra.mxu0 %v6144_v15  ;;  %v6228_v61 = vsub.f32 %v887_v59, %v6210_v24  ;;  %v508_v59 = vpop.f32.mrf.mxu2 }
  0xbf   :  { %1446 = vmatpush.msra.mxu0 %v5948_v53  ;;  %1503 = vmatpush.msra.mxu1 %v6033_v20  ;;  %v6208_v2 = vand.u32 4294901760, %v1325_v13  ;;  %v6220_v53 = vand.u32 4294901760, %v884_v28  ;;  %v6311_v13 = vand.u32 4294901760, %v863_v41 }
  0xc0   :  { %1556 = vmatpush.msra.mxu2 %v1375_v32  ;;  %1607 = vmatpush.msra.mxu3 %v6010_v1  ;;  %v6230_v1 = vand.u32 4294901760, %v881_v23  ;;  %v86_v32 = vperm.slane %v6140_v30, 2 }
  0xc1   :  { %9031 = vst [vmem:[#allocation17_spill] sm:$0xff] %v6208_v2  ;;  %1449 = vmatpush.msra.mxu0 %v6013_v3  ;;  %1505 = vmatpush.msra.mxu1 %v6046_v33  ;;  %v8872_v3 = vand.u32 4294901760, %v6218_v40  ;;  %v6239_v7 = vsub.f32 %v884_v28, %v6220_v53 }
  0xc2   :  { %1560 = vmatpush.msra.mxu2 %v1381_v50  ;;  %1609 = vmatpush.msra.mxu3 %v6020_v9  ;;  %v6241_v9 = vand.u32 4294901760, %v878_v54 }
  0xc3   :  { %1327 = vmatmul.f32.vlgmr.msrb.gmra.mxu2 %v6208_v2  ;;  %1452 = vmatpush.msra.mxu0 %v6023_v11  ;;  %v875_v11 = vld [vmem:[#allocation5 + $0x3f0] sm:$0xff] }
  0xc4   :  { %1507 = vmatpush.msra.mxu1 %v6058_v45  ;;  %1564 = vmatpush.msra.mxu2 %v1387_v57  ;;  %v6255_v50 = vand.u32 4294901760, %v875_v11  ;;  %v451_v57 = vpop.f32.mrf.mxu0  ;;  %v6265_v16 = vsub.f32 %v878_v54, %v6241_v9 }
  0xc5   :  { %1611 = vmatpush.msra.mxu3 %v6033_v20  ;;  %1455 = vmatpush.msra.mxu0 %v6036_v21  ;;  %v8871_v20 = vand.u32 4294901760, %v6228_v61  ;;  %v6250_v21 = vsub.f32 %v881_v23, %v6230_v1  ;;  %v452_v17 = vadd.f32 %v451_v57, %v86_v32  ;;  %v8862_v57 = vand.u32 4294901760, %v6306_v26 }
  0xc6   :  { %1428 = vmatmul.f32.vlgmr.msrb.gmra.mxu3 %v6174_v51  ;;  %1509 = vmatpush.msra.mxu1 %v6069_v10  ;;  %v8867_v42 = vand.u32 4294901760, %v6265_v16 }
  0xc7   :  { %1568 = vmatpush.msra.mxu2 %v1393_v8  ;;  %1613 = vmatpush.msra.mxu3 %v6046_v33  ;;  %v1675_v33 = vsub.f32 %v6218_v40, %v8872_v3  ;;  %v8869_v8 = vand.u32 4294901760, %v6239_v7  ;;  %v483_v39 = vadd.f32 %v482_v34, %v452_v17  ;;  %v851_v34 = vld [vmem:[#allocation5 + $0x330] sm:$0xff] }
  0xc8   :  { %1458 = vmatpush.msra.mxu0 %v6049_v37  ;;  %1511 = vmatpush.msra.mxu1 %v6085_v48  ;;  %v6267_v37 = vand.u32 4294901760, %v872_v19  ;;  %v1699_v23 = vsub.f32 %v6265_v16, %v8867_v42 }
  0xc9   :  { %1572 = vmatpush.msra.mxu2 %v1399_v60  ;;  %1615 = vmatpush.msra.mxu3 %v6058_v45  ;;  %v1681_v45 = vsub.f32 %v6228_v61, %v8871_v20  ;;  %v8868_v60 = vand.u32 4294901760, %v6250_v21  ;;  %v1676_v43 = vand.u32 4294901760, %v1675_v33  ;;  %v1687_v63 = vsub.f32 %v6239_v7, %v8869_v8  ;;  %v854_v33 = vld [vmem:[#allocation5 + $0x348] sm:$0xff] }
  0xca   :  { %1461 = vmatpush.msra.mxu0 %v6061_v46  ;;  %1513 = vmatpush.msra.mxu1 %v6097_v35  ;;  %v6283_v46 = vsub.f32 %v875_v11, %v6255_v50  ;;  %v857_v11 = vld [vmem:[#allocation5 + $0x360] sm:$0xff]  ;;  %v509_v52 = vadd.f32 %v508_v59, %v483_v39  ;;  %v6360_v59 = vand.u32 4294901760, %v851_v34 }
  0xcb   :  { %1576 = vmatpush.msra.mxu2 %v9032_v55  ;;  %1617 = vmatpush.msra.mxu3 %v6069_v10  ;;  %v9033_v10 = vand.u32 4294901760, %v6109_v6  ;;  %v1693_v25 = vsub.f32 %v6250_v21, %v8868_v60  ;;  %v1688_v28 = vand.u32 4294901760, %v1687_v63  ;;  %v6334_v55 = vsub.f32 %v863_v41, %v6311_v13 }
  0xcc   :  { %1464 = vmatpush.msra.mxu0 %v6072_v62  ;;  %1515 = vmatpush.msra.mxu1 %v6106_v58  ;;  %v6293_v62 = vsub.f32 %v872_v19, %v6267_v37  ;;  %v6324_v19 = vand.u32 4294901760, %v860_v47  ;;  %v6336_v17 = vand.u32 4294901760, %v857_v11  ;;  %v1717_v63 = vsub.f32 %v6306_v26, %v8862_v57  ;;  %v560_v39 = vpop.f32.mrf.mxu0 }
  0xcd   :  { %1580 = vmatpush.msra.mxu2 %v9033_v10  ;;  %1619 = vmatpush.msra.mxu3 %v6085_v48  ;;  %v1682_v48 = vand.u32 4294901760, %v1681_v45  ;;  %v1694_v32 = vand.u32 4294901760, %v1693_v25  ;;  %v533_v45 = vpop.f32.mrf.mxu3  ;;  %v8858_v25 = vand.u32 4294901760, %v6334_v55 }
  0xce   :  { %1467 = vmatpush.msra.mxu0 %v6088_v36  ;;  %1517 = vmatpush.msra.mxu1 %v6117_v27  ;;  %v8865_v36 = vand.u32 4294901760, %v6283_v46  ;;  %v8864_v54 = vand.u32 4294901760, %v6293_v62  ;;  %v6346_v10 = vsub.f32 %v860_v47, %v6324_v19  ;;  %v534_v41 = vadd.f32 %v533_v45, %v509_v52 }
  0xcf   :  { %1584 = vmatpush.msra.mxu2 %v9034_v14  ;;  %1621 = vmatpush.msra.mxu3 %v6097_v35  ;;  %v9035_v35 = vand.u32 4294901760, %v6128_v44  ;;  %v848_v14 = vld [vmem:[#allocation5 + $0x318] sm:$0xff]  ;;  %v6358_v47 = vsub.f32 %v857_v11, %v6336_v17 }
  0xd0   :  { %1521 = vmatmul.f32.vlgmr.msra.gmra.mxu1 %v6193_v49  ;;  %1470 = vmatpush.msra.mxu0 %v6100_v29  ;;  %v6322_v29 = vsub.f32 %v866_v0, %v6297_v56  ;;  %v1700_v0 = vand.u32 4294901760, %v1699_v23  ;;  %v8857_v23 = vand.u32 4294901760, %v6346_v10  ;;  %v561_v52 = vadd.f32 %v560_v39, %v534_v41 }
  0xd1   :  { %1677 = vmatpush.msrb.mxu1 %v1676_v43  ;;  %1588 = vmatpush.msra.mxu2 %v9035_v35  ;;  %v6348_v43 = vand.u32 4294901760, %v854_v33  ;;  %v845_v35 = vld [vmem:[#allocation5 + $0x300] sm:$0xff]  ;;  %v8859_v45 = vand.u32 4294901760, %v6358_v47 }
  0xd2   :  { %1623 = vmatpush.msra.mxu3 %v6106_v58  ;;  %1590 = vmatmul.f32.vlgmr.msra.gmra.mxu2 %v6174_v51  ;;  %v1705_v58 = vsub.f32 %v6283_v46, %v8865_v36  ;;  %v1735_v41 = vsub.f32 %v6346_v10, %v8857_v23  ;;  %v929_v36 = vld [vmem:[#allocation5 + $0x5a0] sm:$0xff] }
  0xd3   :  { %1683 = vmatpush.msrb.mxu1 %v1682_v48  ;;  %1775 = vmatpush.msrb.mxu2 %v6218_v40  ;;  %v6370_v11 = vsub.f32 %v854_v33, %v6348_v43  ;;  %v6382_v33 = vsub.f32 %v851_v34, %v6360_v59 }
  0xd4   :  { %1473 = vmatpush.msra.mxu0 %v6109_v6  ;;  %1625 = vmatpush.msra.mxu3 %v6117_v27  ;;  %v1711_v6 = vsub.f32 %v6293_v62, %v8864_v54  ;;  %v8861_v27 = vand.u32 4294901760, %v6322_v29  ;;  %v1706_v48 = vand.u32 4294901760, %v1705_v58  ;;  %v1729_v58 = vsub.f32 %v6334_v55, %v8858_v25  ;;  %v667_v3 = vpop.f32.mrf.mxu0 }
  0xd5   :  { %1627 = vmatmul.f32.vlgmr.msra.gmra.mxu3 %v6174_v51  ;;  %1689 = vmatpush.msrb.mxu1 %v1688_v28  ;;  %v8863_v23 = vand.u32 4294901760, %v6382_v33 }
  0xd6   :  { %1778 = vmatpush.msrb.mxu2 %v6228_v61  ;;  %1828 = vmatpush.msrb.mxu3 %v6202_v5  ;;  %v1723_v28 = vsub.f32 %v6322_v29, %v8861_v27  ;;  %v87_v27 = vperm.slane %v6140_v30, 3 }
  0xd7   :  { %1476 = vmatpush.msra.mxu0 %v6120_v31  ;;  %1695 = vmatpush.msrb.mxu1 %v1694_v32  ;;  %v1712_v31 = vand.u32 4294901760, %v1711_v6  ;;  %v6372_v32 = vand.u32 4294901760, %v848_v14  ;;  %v6384_v6 = vand.u32 4294901760, %v845_v35 }
  0xd8   :  { %1781 = vmatpush.msrb.mxu2 %v6239_v7  ;;  %1830 = vmatpush.msrb.mxu3 %v6210_v24 }
  0xd9   :  { %1479 = vmatpush.msra.mxu0 %v6128_v44  ;;  %1701 = vmatpush.msrb.mxu1 %v1700_v0  ;;  %v1718_v44 = vand.u32 4294901760, %v1717_v63  ;;  %v583_v0 = vpop.f32.mrf.mxu1  ;;  %v1724_v63 = vand.u32 4294901760, %v1723_v28  ;;  %v6394_v39 = vsub.f32 %v848_v14, %v6372_v32  ;;  %v1741_v28 = vsub.f32 %v6358_v47, %v8859_v45  ;;  %v938_v14 = vld [vmem:[#allocation5 + $0x5e8] sm:$0xff] }
  0xda   :  { %1482 = vmatmul.f32.vlgmr.msra.gmra.mxu0 %v6182_v22  ;;  %1784 = vmatpush.msrb.mxu2 %v6250_v21  ;;  %v584_v34 = vadd.f32 %v583_v0, %v561_v52  ;;  %v6404_v25 = vsub.f32 %v845_v35, %v6384_v6  ;;  %v935_v0 = vld [vmem:[#allocation5 + $0x5d0] sm:$0xff]  ;;  %v6415_v45 = vand.u32 4294901760, %v938_v14  ;;  %v917_v22 = vld [vmem:[#allocation5 + $0x540] sm:$0xff] }
  0xdb   :  { %1632 = vmatpush.msrb.mxu0 %v6202_v5  ;;  %1832 = vmatpush.msrb.mxu3 %v6220_v53  ;;  %9036 = vst [vmem:[#allocation18_spill] sm:$0xff] %v6394_v39  ;;  %v6425_v57 = vand.u32 4294901760, %v935_v0  ;;  %v6503_v2 = vand.u32 4294901760, %v917_v22 }
  0xdc   :  { %1707 = vmatpush.msrb.mxu1 %v1706_v48  ;;  %1787 = vmatpush.msrb.mxu2 %v6265_v16  ;;  %v8860_v48 = vand.u32 4294901760, %v6370_v11  ;;  %9037 = vst [vmem:[#allocation19_spill] sm:$0xff] %v6404_v25  ;;  %v747_v35 = vmax.f32 %v584_v34, 0.0  ;;  %v610_v34 = vpop.f32.mrf.mxu2  ;;  %v6436_v54 = vsub.f32 %v938_v14, %v6415_v45  ;;  %v926_v14 = vld [vmem:[#allocation5 + $0x588] sm:$0xff] }
  0xdd   :  { %1634 = vmatpush.msrb.mxu0 %v6210_v24  ;;  %1834 = vmatpush.msrb.mxu3 %v6230_v1  ;;  %v6447_v60 = vsub.f32 %v935_v0, %v6425_v57 }
  0xde   :  { %1713 = vmatpush.msrb.mxu1 %v1712_v31  ;;  %1790 = vmatpush.msrb.mxu2 %v6283_v46  ;;  %v1730_v31 = vand.u32 4294901760, %v1729_v58  ;;  %v1747_v52 = vsub.f32 %v6370_v11, %v8860_v48  ;;  %v8866_v58 = vand.u32 4294901760, %v6394_v39  ;;  %v8870_v48 = vand.u32 4294901760, %v6404_v25 }
  0xdf   :  { %1636 = vmatpush.msrb.mxu0 %v6220_v53  ;;  %1836 = vmatpush.msrb.mxu3 %v6241_v9  ;;  %v6433_v30 = vand.u32 4294901760, %v747_v35 }
  0xe0   :  { %1719 = vmatpush.msrb.mxu1 %v1718_v44  ;;  %1793 = vmatpush.msrb.mxu2 %v6293_v62  ;;  %v1736_v44 = vand.u32 4294901760, %v1735_v41  ;;  %v1753_v41 = vsub.f32 %v6382_v33, %v8863_v23  ;;  %v932_v23 = vld [vmem:[#allocation5 + $0x5b8] sm:$0xff] }
  0xe1   :  { %1638 = vmatpush.msrb.mxu0 %v6230_v1  ;;  %1838 = vmatpush.msrb.mxu3 %v6255_v50  ;;  %9038 = vst [vmem:[#allocation20_spill] sm:$0xff] %v6433_v30  ;;  %v6444_v42 = vand.u32 4294901760, %v932_v23  ;;  %v6451_v8 = vsub.f32 %v747_v35, %v6433_v30 }
  0xe2   :  { %1725 = vmatpush.msrb.mxu1 %v1724_v63  ;;  %1796 = vmatpush.msrb.mxu2 %v6306_v26  ;;  %v1742_v63 = vand.u32 4294901760, %v1741_v28  ;;  %v1759_v28 = vsub.f32 %v6394_v39, %v8866_v58  ;;  %v611_v58 = vadd.f32 %v610_v34, %v87_v27  ;;  %v6456_v34 = vand.u32 4294901760, %v929_v36  ;;  %v920_v27 = vld [vmem:[#allocation5 + $0x558] sm:$0xff] }
  0xe3   :  { %1640 = vmatpush.msrb.mxu0 %v6241_v9  ;;  %1840 = vmatpush.msrb.mxu3 %v6267_v37  ;;  %9039 = vst [vmem:[#allocation21_spill] sm:$0xff] %v6451_v8 }
  0xe4   :  { %1731 = vmatpush.msrb.mxu1 %v1730_v31  ;;  %1799 = vmatpush.msrb.mxu2 %v6322_v29  ;;  %v1748_v31 = vand.u32 4294901760, %v1747_v52  ;;  %v1765_v52 = vsub.f32 %v6404_v25, %v8870_v48  ;;  %v923_v48 = vld [vmem:[#allocation5 + $0x570] sm:$0xff]  ;;  %v719_v15 = vpop.f32.mrf.mxu2 }
  0xe5   :  { %1642 = vmatpush.msrb.mxu0 %v6255_v50  ;;  %1842 = vmatpush.msrb.mxu3 %v6278_v18 }
  0xe6   :  { %1737 = vmatpush.msrb.mxu1 %v1736_v44  ;;  %1802 = vmatpush.msrb.mxu2 %v6334_v55  ;;  %v1754_v44 = vand.u32 4294901760, %v1753_v41  ;;  %v1760_v41 = vand.u32 4294901760, %v1759_v28  ;;  %v1766_v0 = vand.u32 4294901760, %v1765_v52  ;;  %v6465_v28 = vsub.f32 %v932_v23, %v6444_v42 }
  0xe7   :  { %1644 = vmatpush.msrb.mxu0 %v6267_v37  ;;  %1844 = vmatpush.msrb.mxu3 %v6297_v56  ;;  %v6479_v23 = vsub.f32 %v929_v36, %v6456_v34  ;;  %v6491_v36 = vand.u32 4294901760, %v920_v27 }
  0xe8   :  { %1743 = vmatpush.msrb.mxu1 %v1742_v63  ;;  %1805 = vmatpush.msrb.mxu2 %v6346_v10  ;;  %v641_v63 = vpop.f32.mrf.mxu3  ;;  %9040 = vst [vmem:[#allocation22_spill] sm:$0xff] %v6465_v28  ;;  %v9045_v4 = vand.u32 4294901760, %v6465_v28 }
  0xe9   :  { %1646 = vmatpush.msrb.mxu0 %v6278_v18  ;;  %1846 = vmatpush.msrb.mxu3 %v6311_v13  ;;  %v642_v20 = vadd.f32 %v641_v63, %v611_v58  ;;  %v9041_v58 = vand.u32 4294901760, %v6436_v54  ;;  %v6476_v63 = vand.u32 4294901760, %v6451_v8  ;;  %9043 = vst [vmem:[#allocation24_spill] sm:$0xff] %v6479_v23  ;;  %v6514_v51 = vsub.f32 %v920_v27, %v6491_v36 }
  0xea   :  { %1749 = vmatpush.msrb.mxu1 %v1748_v31  ;;  %1808 = vmatpush.msrb.mxu2 %v6358_v47  ;;  %v6459_v31 = vand.u32 4294901760, %v926_v14  ;;  %v2028_v12 = vsub.f32 %v6465_v28, %v9045_v4  ;;  %v9047_v4 = vand.u32 4294901760, %v6479_v23 }
  0xeb   :  { %1648 = vmatpush.msrb.mxu0 %v6297_v56  ;;  %1848 = vmatpush.msrb.mxu3 %v6324_v19  ;;  %v2016_v52 = vsub.f32 %v6436_v54, %v9041_v58  ;;  %9042 = vst [vmem:[#allocation23_spill] sm:$0xff] %v6476_v63  ;;  %v668_v35 = vadd.f32 %v667_v3, %v642_v20  ;;  %v9044_v58 = vand.u32 4294901760, %v6447_v60  ;;  %v914_v20 = vld [vmem:[#allocation5 + $0x528] sm:$0xff] }
  0xec   :  { %1755 = vmatpush.msrb.mxu1 %v1754_v44  ;;  %1811 = vmatpush.msrb.mxu2 %v6370_v11  ;;  %v6468_v44 = vand.u32 4294901760, %v923_v48  ;;  %v2034_v27 = vsub.f32 %v6479_v23, %v9047_v4  ;;  %v2029_v28 = vand.u32 4294901760, %v2028_v12  ;;  %v9050_v4 = vand.u32 4294901760, %v6218_v40 }
  0xed   :  { %1650 = vmatpush.msrb.mxu0 %v6311_v13  ;;  %1850 = vmatpush.msrb.mxu3 %v6336_v17  ;;  %v2022_v49 = vsub.f32 %v6447_v60, %v9044_v58  ;;  %v1666_v58 = vsub.f32 %v6451_v8, %v6476_v63  ;;  %v9052_v40 = vand.u32 4294901760, %v6228_v61  ;;  %v9054_v61 = vand.u32 4294901760, %v6239_v7 }
  0xee   :  { %1761 = vmatpush.msrb.mxu1 %v1760_v41  ;;  %1814 = vmatpush.msrb.mxu2 %v6382_v33  ;;  %v6483_v41 = vsub.f32 %v926_v14, %v6459_v31  ;;  %v6496_v3 = vsub.f32 %v923_v48, %v6468_v44  ;;  %v2017_v14 = vand.u32 4294901760, %v2016_v52  ;;  %v2035_v12 = vand.u32 4294901760, %v2034_v27 }
  0xef   :  { %1652 = vmatpush.msrb.mxu0 %v6324_v19  ;;  %1852 = vmatpush.msrb.mxu3 %v6348_v43  ;;  %v2023_v52 = vand.u32 4294901760, %v2022_v49  ;;  %v6522_v49 = vand.u32 4294901760, %v1666_v58  ;;  %v905_v58 = vld [vmem:[#allocation5 + $0x4e0] sm:$0xff]  ;;  %v9055_v7 = vand.u32 4294901760, %v6250_v21  ;;  %v9056_v21 = vand.u32 4294901760, %v6265_v16 }
  0xf0   :  { %1767 = vmatpush.msrb.mxu1 %v1766_v0  ;;  %1817 = vmatpush.msrb.mxu2 %v6394_v39  ;;  %v692_v0 = vpop.f32.mrf.mxu1 }
  0xf1   :  { %1654 = vmatpush.msrb.mxu0 %v6336_v17  ;;  %1854 = vmatpush.msrb.mxu3 %v6360_v59  ;;  %v693_v48 = vadd.f32 %v692_v0, %v668_v35  ;;  %v908_v0 = vld [vmem:[#allocation5 + $0x4f8] sm:$0xff]  ;;  %9046 = vst [vmem:[#allocation25_spill] sm:$0xff] %v6522_v49 }
  0xf2   :  { %1936 = vmatpush.msra.mxu1 %v6202_v5  ;;  %1820 = vmatpush.msrb.mxu2 %v6404_v25  ;;  %v6528_v5 = vsub.f32 %v917_v22, %v6503_v2  ;;  %v6530_v25 = vand.u32 4294901760, %v911_v38  ;;  %v742_v22 = vpop.f32.mrf.mxu3  ;;  %v6542_v39 = vand.u32 4294901760, %v908_v0 }
  0xf3   :  { %1656 = vmatpush.msrb.mxu0 %v6348_v43  ;;  %1856 = vmatpush.msrb.mxu3 %v6372_v32  ;;  %v720_v35 = vadd.f32 %v719_v15, %v693_v48  ;;  %v902_v48 = vld [vmem:[#allocation5 + $0x4c8] sm:$0xff] }
  0xf4   :  { %1938 = vmatpush.msra.mxu1 %v6210_v24  ;;  %1973 = vmatpush.msra.mxu2 %v6415_v45  ;;  %v6516_v24 = vand.u32 4294901760, %v914_v20 }
  0xf5   :  { %1658 = vmatpush.msrb.mxu0 %v6360_v59  ;;  %1858 = vmatpush.msrb.mxu3 %v6384_v6 }
  0xf6   :  { %1940 = vmatpush.msra.mxu1 %v6220_v53  ;;  %1975 = vmatpush.msra.mxu2 %v6425_v57  ;;  %v9048_v53 = vand.u32 4294901760, %v6483_v41  ;;  %v6540_v23 = vsub.f32 %v914_v20, %v6516_v24  ;;  %v6553_v20 = vsub.f32 %v911_v38, %v6530_v25 }
  0xf7   :  { %2018 = vmatpush.msra.mxu3 %v2017_v14  ;;  %1660 = vmatpush.msrb.mxu0 %v6372_v32 }
  0xf8   :  { %1823 = vmatmul.f32.vlgmr.msrb.gmra.mxu2 %v6451_v8  ;;  %1942 = vmatpush.msra.mxu1 %v6230_v1  ;;  %v2040_v14 = vsub.f32 %v6483_v41, %v9048_v53  ;;  %v9049_v1 = vand.u32 4294901760, %v6496_v3  ;;  %v6555_v53 = vand.u32 4294901760, %v905_v58  ;;  %v899_v8 = vld [vmem:[#allocation5 + $0x4b0] sm:$0xff]  ;;  %v2063_v38 = vand.u32 4294901760, %v6540_v23 }
  0xf9   :  { %1977 = vmatpush.msra.mxu2 %v6444_v42  ;;  %2024 = vmatpush.msra.mxu3 %v2023_v52  ;;  %v6566_v52 = vsub.f32 %v908_v0, %v6542_v39 }
  0xfa   :  { %1662 = vmatpush.msrb.mxu0 %v6384_v6  ;;  %1862 = vmatmul.f32.vlgmr.msrb.gmra.mxu3 %v6476_v63  ;;  %v2046_v15 = vsub.f32 %v6496_v3, %v9049_v1  ;;  %v2041_v63 = vand.u32 4294901760, %v2040_v14  ;;  %v743_v1 = vadd.f32 %v742_v22, %v720_v35  ;;  %v6579_v0 = vsub.f32 %v905_v58, %v6555_v53 }
  0xfb   :  { %1668 = vmatmul.f32.vlgmr.msrb.gmra.mxu0 %v6522_v49  ;;  %1944 = vmatpush.msra.mxu1 %v6241_v9  ;;  %v9051_v9 = vand.u32 4294901760, %v6514_v51  ;;  %v6568_v49 = vand.u32 4294901760, %v902_v48  ;;  %v6581_v22 = vand.u32 4294901760, %v899_v8  ;;  %v2075_v58 = vand.u32 4294901760, %v6566_v52 }
  0xfc   :  { %1869 = vmatpush.msra.mxu0 %v9050_v4  ;;  %1979 = vmatpush.msra.mxu2 %v6456_v34  ;;  %v2047_v35 = vand.u32 4294901760, %v2046_v15  ;;  %v2069_v4 = vand.u32 4294901760, %v6553_v20 }
  0xfd   :  { %2030 = vmatpush.msra.mxu3 %v2029_v28  ;;  %1769 = vmatmul.f32.vlgmr.msrb.gmra.mxu1 %v6433_v30  ;;  %v2052_v27 = vsub.f32 %v6514_v51, %v9051_v9  ;;  %v9053_v28 = vand.u32 4294901760, %v6528_v5  ;;  %v896_v9 = vld [vmem:[#allocation5 + $0x498] sm:$0xff] }
  0xfe   :  { %1873 = vmatpush.msra.mxu0 %v9052_v40  ;;  %1946 = vmatpush.msra.mxu1 %v6255_v50  ;;  %v748_v50 = vmax.f32 %v743_v1, 0.0  ;;  %v6592_v40 = vsub.f32 %v902_v48, %v6568_v49  ;;  %v2070_v1 = vsub.f32 %v6553_v20, %v2069_v4  ;;  %v6605_v48 = vsub.f32 %v899_v8, %v6581_v22 }
  0xff   :  { %1981 = vmatpush.msra.mxu2 %v6459_v31  ;;  %2036 = vmatpush.msra.mxu3 %v2035_v12  ;;  %v2058_v14 = vsub.f32 %v6528_v5, %v9053_v28  ;;  %v2053_v15 = vand.u32 4294901760, %v2052_v27  ;;  %v2064_v12 = vsub.f32 %v6540_v23, %v2063_v38  ;;  %v893_v28 = vld [vmem:[#allocation5 + $0x480] sm:$0xff]  ;;  %v2081_v27 = vand.u32 4294901760, %v6579_v0 }
 0x100   :  { %1877 = vmatpush.msra.mxu0 %v9054_v61  ;;  %1948 = vmatpush.msra.mxu1 %v6267_v37  ;;  %v6597_v37 = vand.u32 4294901760, %v896_v9  ;;  %v6612_v61 = vand.u32 4294901760, %v893_v28  ;;  %v2087_v8 = vand.u32 4294901760, %v6592_v40 }
 0x101   :  { %1983 = vmatpush.msra.mxu2 %v6468_v44  ;;  %2042 = vmatpush.msra.mxu3 %v2041_v63  ;;  %v2059_v63 = vand.u32 4294901760, %v2058_v14  ;;  %v2076_v14 = vsub.f32 %v6566_v52, %v2075_v58 }
 0x102   :  { %1881 = vmatpush.msra.mxu0 %v9055_v7  ;;  %1950 = vmatpush.msra.mxu1 %v6278_v18  ;;  %v6610_v18 = vand.u32 4294901760, %v748_v50  ;;  %v9058_v7 = vand.u32 4294901760, %v6283_v46  ;;  %v6623_v16 = vsub.f32 %v896_v9, %v6597_v37  ;;  %v9060_v46 = vand.u32 4294901760, %v6293_v62 }
 0x103   :  { %1985 = vmatpush.msra.mxu2 %v6491_v36  ;;  %2048 = vmatpush.msra.mxu3 %v2047_v35  ;;  %v2065_v35 = vand.u32 4294901760, %v2064_v12  ;;  %v2093_v12 = vand.u32 4294901760, %v6605_v48  ;;  %v2077_v9 = vand.u32 4294901760, %v2076_v14  ;;  %v9064_v14 = vand.u32 4294901760, %v6334_v55 }
 0x104   :  { %1885 = vmatpush.msra.mxu0 %v9056_v21  ;;  %1952 = vmatpush.msra.mxu1 %v6297_v56  ;;  %9057 = vst [vmem:[#allocation26_spill] sm:$0xff] %v6610_v18  ;;  %v2071_v56 = vand.u32 4294901760, %v2070_v1  ;;  %v6631_v21 = vsub.f32 %v748_v50, %v6610_v18  ;;  %v9061_v1 = vand.u32 4294901760, %v6306_v26  ;;  %v2099_v62 = vand.u32 4294901760, %v6623_v16 }
 0x105   :  { %1987 = vmatpush.msra.mxu2 %v6503_v2  ;;  %2054 = vmatpush.msra.mxu3 %v2053_v15  ;;  %v2082_v15 = vsub.f32 %v6579_v0, %v2081_v27  ;;  %v2094_v50 = vsub.f32 %v6605_v48, %v2093_v12 }
 0x106   :  { %1889 = vmatpush.msra.mxu0 %v9058_v7  ;;  %1954 = vmatpush.msra.mxu1 %v6311_v13  ;;  %9059 = vst [vmem:[#allocation27_spill] sm:$0xff] %v6631_v21  ;;  %v6637_v13 = vsub.f32 %v893_v28, %v6612_v61  ;;  %v6652_v28 = vand.u32 4294901760, %v6631_v21  ;;  %v2100_v7 = vsub.f32 %v6623_v16, %v2099_v62 }
 0x107   :  { %1989 = vmatpush.msra.mxu2 %v6516_v24  ;;  %2060 = vmatpush.msra.mxu3 %v2059_v63  ;;  %v2088_v63 = vsub.f32 %v6592_v40, %v2087_v8 }
 0x108   :  { %1893 = vmatpush.msra.mxu0 %v9060_v46  ;;  %1956 = vmatpush.msra.mxu1 %v6324_v19  ;;  %v2083_v19 = vand.u32 4294901760, %v2082_v15  ;;  %9062 = vst [vmem:[#allocation28_spill] sm:$0xff] %v6652_v28  ;;  %v2105_v26 = vand.u32 4294901760, %v6637_v13  ;;  %v2101_v15 = vand.u32 4294901760, %v2100_v7  ;;  %v792_v7 = vld [vmem:[#allocation5 + $0x158] sm:$0xff] }
 0x109   :  { %1991 = vmatpush.msra.mxu2 %v6530_v25  ;;  %2066 = vmatpush.msra.mxu3 %v2065_v35  ;;  %v9063_v35 = vand.u32 4294901760, %v6322_v29  ;;  %v2095_v29 = vand.u32 4294901760, %v2094_v50 }
 0x10a   :  { %1897 = vmatpush.msra.mxu0 %v9061_v1  ;;  %1958 = vmatpush.msra.mxu1 %v6336_v17  ;;  %v2089_v17 = vand.u32 4294901760, %v2088_v63  ;;  %v2106_v55 = vsub.f32 %v6637_v13, %v2105_v26  ;;  %v9074_v1 = vld [vmem:[#allocation22_spill] sm:$0xff] }
 0x10b   :  { %1993 = vmatpush.msra.mxu2 %v6542_v39  ;;  %2072 = vmatpush.msra.mxu3 %v2071_v56  ;;  %v2007_v56 = vsub.f32 %v6631_v21, %v6652_v28 }
 0x10c   :  { %1901 = vmatpush.msra.mxu0 %v9063_v35  ;;  %1960 = vmatpush.msra.mxu1 %v6348_v43  ;;  %v9065_v43 = vand.u32 4294901760, %v6346_v10  ;;  %v9067_v10 = vand.u32 4294901760, %v6370_v11  ;;  %v2107_v46 = vand.u32 4294901760, %v2106_v55  ;;  %v9071_v11 = vand.u32 4294901760, %v6447_v60  ;;  %v9078_v35 = vld [vmem:[#allocation24_spill] sm:$0xff] }
 0x10d   :  { %1995 = vmatpush.msra.mxu2 %v6555_v53  ;;  %2078 = vmatpush.msra.mxu3 %v2077_v9  ;;  %v9072_v9 = vld [vmem:[#allocation18_spill] sm:$0xff] }
 0x10e   :  { %1905 = vmatpush.msra.mxu0 %v9064_v14  ;;  %1962 = vmatpush.msra.mxu1 %v6360_v59  ;;  %v9066_v59 = vand.u32 4294901760, %v6358_v47  ;;  %v9069_v47 = vand.u32 4294901760, %v6436_v54  ;;  %v9073_v63 = vand.u32 4294901760, %v9072_v9  ;;  %v9081_v14 = vand.u32 4294901760, %v6496_v3 }
 0x10f   :  { %1997 = vmatpush.msra.mxu2 %v6568_v49  ;;  %2084 = vmatpush.msra.mxu3 %v2083_v19  ;;  %v9076_v19 = vld [vmem:[#allocation19_spill] sm:$0xff] }
 0x110   :  { %1909 = vmatpush.msra.mxu0 %v9065_v43  ;;  %1964 = vmatpush.msra.mxu1 %v6372_v32  ;;  %v6682_v32 = vand.u32 4294901760, %v2007_v56  ;;  %v9077_v50 = vand.u32 4294901760, %v9076_v19  ;;  %v762_v19 = vld [vmem:[#allocation5 + $0x68] sm:$0xff] }
 0x111   :  { %1999 = vmatpush.msra.mxu2 %v6581_v22  ;;  %2090 = vmatpush.msra.mxu3 %v2089_v17  ;;  %v9079_v17 = vand.u32 4294901760, %v9078_v35 }
 0x112   :  { %1913 = vmatpush.msra.mxu0 %v9066_v59  ;;  %1966 = vmatpush.msra.mxu1 %v6384_v6  ;;  %9068 = vst [vmem:[#allocation29_spill] sm:$0xff] %v6682_v32  ;;  %v9070_v6 = vand.u32 4294901760, %v6382_v33  ;;  %v9075_v33 = vand.u32 4294901760, %v9074_v1  ;;  %v777_v59 = vld [vmem:[#allocation5 + $0xe0] sm:$0xff] }
 0x113   :  { %2001 = vmatpush.msra.mxu2 %v6597_v37  ;;  %2096 = vmatpush.msra.mxu3 %v2095_v29  ;;  %v9083_v29 = vand.u32 4294901760, %v6528_v5 }
 0x114   :  { %1968 = vmatmul.f32.vlgmr.msra.gmra.mxu1 %v6433_v30  ;;  %1917 = vmatpush.msra.mxu0 %v9067_v10  ;;  %v6784_v10 = vand.u32 4294901760, %v777_v59 }
 0x115   :  { %2169 = vmatpush.msrb.mxu1 %v6415_v45  ;;  %2003 = vmatpush.msra.mxu2 %v6612_v61 }
 0x116   :  { %2102 = vmatpush.msra.mxu3 %v2101_v15  ;;  %1921 = vmatpush.msra.mxu0 %v9070_v6  ;;  %v774_v15 = vld [vmem:[#allocation5 + $0xc8] sm:$0xff]  ;;  %v6810_v6 = vsub.f32 %v777_v59, %v6784_v10 }
 0x117   :  { %2210 = vmatpush.msrb.mxu2 %v9069_v47  ;;  %2171 = vmatpush.msrb.mxu1 %v6425_v57 }
 0x118   :  { %2009 = vmatmul.f32.vlgmr.msra.gmra.mxu2 %v6682_v32  ;;  %2108 = vmatpush.msra.mxu3 %v2107_v46  ;;  %v771_v46 = vld [vmem:[#allocation5 + $0xb0] sm:$0xff] }
 0x119   :  { %2110 = vmatmul.f32.vlgmr.msra.gmra.mxu3 %v6610_v18  ;;  %2173 = vmatpush.msrb.mxu1 %v6444_v42  ;;  %v807_v32 = vld [vmem:[#allocation5 + $0x1d0] sm:$0xff] }
 0x11a   :  { %2214 = vmatpush.msrb.mxu2 %v9071_v11  ;;  %2277 = vmatpush.msrb.mxu3 %v6415_v45  ;;  %v9080_v45 = vand.u32 4294901760, %v6483_v41  ;;  %v768_v11 = vld [vmem:[#allocation5 + $0x98] sm:$0xff] }
 0x11b   :  { %1925 = vmatpush.msra.mxu0 %v9073_v63  ;;  %2175 = vmatpush.msrb.mxu1 %v6456_v34  ;;  %v765_v63 = vld [vmem:[#allocation5 + $0x80] sm:$0xff] }
 0x11c   :  { %2218 = vmatpush.msrb.mxu2 %v9075_v33  ;;  %2279 = vmatpush.msrb.mxu3 %v6425_v57  ;;  %v795_v57 = vld [vmem:[#allocation5 + $0x170] sm:$0xff]  ;;  %v8910_v33 = vand.u32 4294901760, %v6810_v6 }
 0x11d   :  { %1929 = vmatpush.msra.mxu0 %v9077_v50  ;;  %2177 = vmatpush.msrb.mxu1 %v6459_v31  ;;  %v6841_v50 = vand.u32 4294901760, %v765_v63 }
 0x11e   :  { %1931 = vmatmul.f32.vlgmr.msra.gmra.mxu0 %v6433_v30  ;;  %2222 = vmatpush.msrb.mxu2 %v9079_v17  ;;  %v759_v17 = vld [vmem:[#allocation5 + $0x50] sm:$0xff] }
 0x11f   :  { %2116 = vmatpush.msrb.mxu0 %v6436_v54  ;;  %2281 = vmatpush.msrb.mxu3 %v6444_v42  ;;  %v6721_v42 = vand.u32 4294901760, %v795_v57  ;;  %v9082_v54 = vand.u32 4294901760, %v6514_v51  ;;  %v9092_v30 = vld [vmem:[#allocation13_spill] sm:$0xff] }
 0x120   :  { %2179 = vmatpush.msrb.mxu1 %v6468_v44  ;;  %2226 = vmatpush.msrb.mxu2 %v9080_v45 }
 0x121   :  { %2119 = vmatpush.msrb.mxu0 %v6447_v60  ;;  %2283 = vmatpush.msrb.mxu3 %v6456_v34  ;;  %v789_v60 = vld [vmem:[#allocation5 + $0x140] sm:$0xff]  ;;  %v6728_v34 = vand.u32 4294901760, %v792_v7  ;;  %v6736_v43 = vsub.f32 %v795_v57, %v6721_v42  ;;  %v6853_v57 = vand.u32 4294901760, %v762_v19 }
 0x122   :  { %2181 = vmatpush.msrb.mxu1 %v6491_v36  ;;  %2230 = vmatpush.msrb.mxu2 %v9081_v14  ;;  %v6738_v56 = vand.u32 4294901760, %v789_v60 }
 0x123   :  { %2122 = vmatpush.msrb.mxu0 %v9074_v1  ;;  %2285 = vmatpush.msrb.mxu3 %v6459_v31  ;;  %v786_v31 = vld [vmem:[#allocation5 + $0x128] sm:$0xff]  ;;  %v6746_v55 = vsub.f32 %v792_v7, %v6728_v34  ;;  %v6829_v1 = vand.u32 4294901760, %v768_v11  ;;  %v2393_v7 = vsub.f32 %v6810_v6, %v8910_v33  ;;  %v6875_v59 = vsub.f32 %v762_v19, %v6853_v57 }
 0x124   :  { %2183 = vmatpush.msrb.mxu1 %v6503_v2  ;;  %2234 = vmatpush.msrb.mxu2 %v9082_v54  ;;  %v6863_v54 = vsub.f32 %v765_v63, %v6841_v50 }
 0x125   :  { %2125 = vmatpush.msrb.mxu0 %v9078_v35  ;;  %2287 = vmatpush.msrb.mxu3 %v6468_v44  ;;  %v783_v44 = vld [vmem:[#allocation5 + $0x110] sm:$0xff]  ;;  %v6851_v45 = vsub.f32 %v768_v11, %v6829_v1 }
 0x126   :  { %2185 = vmatpush.msrb.mxu1 %v6516_v24  ;;  %2238 = vmatpush.msrb.mxu2 %v9083_v29 }
 0x127   :  { %2128 = vmatpush.msrb.mxu0 %v6483_v41  ;;  %2289 = vmatpush.msrb.mxu3 %v6491_v36  ;;  %v6748_v41 = vand.u32 4294901760, %v786_v31  ;;  %v8917_v36 = vand.u32 4294901760, %v6736_v43 }
 0x128   :  { %2187 = vmatpush.msrb.mxu1 %v6530_v25  ;;  %2242 = vmatpush.msrb.mxu2 %v2063_v38  ;;  %v780_v38 = vld [vmem:[#allocation5 + $0xf8] sm:$0xff] }
 0x129   :  { %2131 = vmatpush.msrb.mxu0 %v6496_v3  ;;  %2291 = vmatpush.msrb.mxu3 %v6503_v2  ;;  %v6757_v3 = vsub.f32 %v789_v60, %v6738_v56  ;;  %v6759_v2 = vand.u32 4294901760, %v783_v44  ;;  %v6865_v60 = vand.u32 4294901760, %v759_v17 }
 0x12a   :  { %2189 = vmatpush.msrb.mxu1 %v6542_v39  ;;  %2246 = vmatpush.msrb.mxu2 %v2069_v4  ;;  %v6773_v4 = vand.u32 4294901760, %v780_v38 }
 0x12b   :  { %2134 = vmatpush.msrb.mxu0 %v6514_v51  ;;  %2293 = vmatpush.msrb.mxu3 %v6516_v24  ;;  %v8916_v51 = vand.u32 4294901760, %v6746_v55  ;;  %v6768_v24 = vsub.f32 %v786_v31, %v6748_v41  ;;  %v753_v31 = vld [vmem:[#allocation5 + $0x20] sm:$0xff] }
 0x12c   :  { %2191 = vmatpush.msrb.mxu1 %v6555_v53  ;;  %2250 = vmatpush.msrb.mxu2 %v2075_v58  ;;  %v6782_v58 = vsub.f32 %v783_v44, %v6759_v2 }
 0x12d   :  { %2137 = vmatpush.msrb.mxu0 %v6528_v5  ;;  %2295 = vmatpush.msrb.mxu3 %v6530_v25  ;;  %v2357_v25 = vsub.f32 %v6736_v43, %v8917_v36  ;;  %v8915_v5 = vand.u32 4294901760, %v6757_v3 }
 0x12e   :  { %2193 = vmatpush.msrb.mxu1 %v6568_v49  ;;  %2254 = vmatpush.msrb.mxu2 %v2081_v27  ;;  %v6795_v27 = vand.u32 4294901760, %v774_v15  ;;  %v8913_v47 = vand.u32 4294901760, %v6782_v58 }
 0x12f   :  { %2140 = vmatpush.msrb.mxu0 %v6540_v23  ;;  %2297 = vmatpush.msrb.mxu3 %v6542_v39  ;;  %v2363_v39 = vsub.f32 %v6746_v55, %v8916_v51  ;;  %v8914_v23 = vand.u32 4294901760, %v6768_v24 }
 0x130   :  { %2195 = vmatpush.msrb.mxu1 %v6581_v22  ;;  %2258 = vmatpush.msrb.mxu2 %v2087_v8  ;;  %v6801_v8 = vsub.f32 %v780_v38, %v6773_v4  ;;  %v6823_v9 = vsub.f32 %v774_v15, %v6795_v27  ;;  %v8907_v38 = vand.u32 4294901760, %v6851_v45 }
 0x131   :  { %2143 = vmatpush.msrb.mxu0 %v6553_v20  ;;  %2299 = vmatpush.msrb.mxu3 %v6555_v53  ;;  %v2358_v20 = vand.u32 4294901760, %v2357_v25  ;;  %v2369_v53 = vsub.f32 %v6757_v3, %v8915_v5  ;;  %v750_v25 = vld [vmem:[#allocation5 + $0x8] sm:$0xff]  ;;  %v9087_v5 = vld [vmem:[#allocation11_spill] sm:$0xff] }
 0x132   :  { %2197 = vmatpush.msrb.mxu1 %v6597_v37  ;;  %2262 = vmatpush.msrb.mxu2 %v2093_v12  ;;  %v6815_v12 = vand.u32 4294901760, %v771_v46  ;;  %v8909_v35 = vand.u32 4294901760, %v6823_v9  ;;  %v2411_v11 = vsub.f32 %v6851_v45, %v8907_v38  ;;  %v6901_v63 = vand.u32 4294901760, %v750_v25 }
 0x133   :  { %2146 = vmatpush.msrb.mxu0 %v6566_v52  ;;  %2301 = vmatpush.msrb.mxu3 %v6568_v49  ;;  %v2364_v49 = vand.u32 4294901760, %v2363_v39  ;;  %v2375_v52 = vsub.f32 %v6768_v24, %v8914_v23 }
 0x134   :  { %2199 = vmatpush.msrb.mxu1 %v6612_v61  ;;  %2266 = vmatpush.msrb.mxu2 %v2099_v62  ;;  %v8911_v62 = vand.u32 4294901760, %v6801_v8  ;;  %v2399_v29 = vsub.f32 %v6823_v9, %v8909_v35  ;;  %v822_v35 = vld [vmem:[#allocation5 + $0x248] sm:$0xff] }
 0x135   :  { %2149 = vmatpush.msrb.mxu0 %v6579_v0  ;;  %2303 = vmatpush.msrb.mxu3 %v6581_v22  ;;  %v2370_v0 = vand.u32 4294901760, %v2369_v53  ;;  %v2381_v22 = vsub.f32 %v6782_v58, %v8913_v47  ;;  %v6889_v53 = vand.u32 4294901760, %v753_v31  ;;  %v7009_v23 = vand.u32 4294901760, %v822_v35 }
 0x136   :  { %2203 = vmatmul.f32.vlgmr.msrb.gmra.mxu1 %v6652_v28  ;;  %2270 = vmatpush.msrb.mxu2 %v2105_v26  ;;  %v6839_v26 = vsub.f32 %v771_v46, %v6815_v12  ;;  %v8906_v46 = vand.u32 4294901760, %v6863_v54 }
 0x137   :  { %2359 = vmatpush.msra.mxu1 %v2358_v20  ;;  %2152 = vmatpush.msrb.mxu0 %v6592_v40  ;;  %v2376_v40 = vand.u32 4294901760, %v2375_v52  ;;  %v2382_v14 = vand.u32 4294901760, %v2381_v22  ;;  %v6887_v20 = vsub.f32 %v759_v17, %v6865_v60  ;;  %v2412_v17 = vand.u32 4294901760, %v2411_v11 }
 0x138   :  { %2305 = vmatpush.msrb.mxu3 %v6597_v37  ;;  %2272 = vmatmul.f32.vlgmr.msrb.gmra.mxu2 %v6610_v18  ;;  %v2387_v37 = vsub.f32 %v6801_v8, %v8911_v62  ;;  %v2417_v22 = vsub.f32 %v6863_v54, %v8906_v46 }
 0x139   :  { %2365 = vmatpush.msra.mxu1 %v2364_v49  ;;  %2457 = vmatpush.msra.mxu2 %v6736_v43  ;;  %v8904_v49 = vand.u32 4294901760, %v6875_v59  ;;  %v8902_v19 = vand.u32 4294901760, %v6887_v20 }
 0x13a   :  { %2155 = vmatpush.msrb.mxu0 %v6605_v48  ;;  %2307 = vmatpush.msrb.mxu3 %v6612_v61  ;;  %v756_v48 = vld [vmem:[#allocation5 + $0x38] sm:$0xff]  ;;  %v8908_v61 = vand.u32 4294901760, %v6839_v26  ;;  %v2388_v44 = vand.u32 4294901760, %v2387_v37 }
 0x13b   :  { %2309 = vmatmul.f32.vlgmr.msrb.gmra.mxu3 %v6610_v18  ;;  %2371 = vmatpush.msra.mxu1 %v2370_v0  ;;  %v6877_v15 = vand.u32 4294901760, %v756_v48  ;;  %v2423_v37 = vsub.f32 %v6875_v59, %v8904_v49  ;;  %v831_v49 = vld [vmem:[#allocation5 + $0x290] sm:$0xff]  ;;  %v810_v18 = vld [vmem:[#allocation5 + $0x1e8] sm:$0xff] }
 0x13c   :  { %2460 = vmatpush.msra.mxu2 %v6746_v55  ;;  %2510 = vmatpush.msra.mxu3 %v6721_v42  ;;  %v2405_v39 = vsub.f32 %v6839_v26, %v8908_v61  ;;  %v825_v61 = vld [vmem:[#allocation5 + $0x260] sm:$0xff] }
 0x13d   :  { %2158 = vmatpush.msrb.mxu0 %v6623_v16  ;;  %2377 = vmatpush.msra.mxu1 %v2376_v40  ;;  %v2394_v16 = vand.u32 4294901760, %v2393_v7  ;;  %v6899_v52 = vsub.f32 %v756_v48, %v6877_v15  ;;  %v6911_v40 = vsub.f32 %v753_v31, %v6889_v53  ;;  %v6921_v7 = vsub.f32 %v750_v25, %v6901_v63  ;;  %v843_v48 = vld [vmem:[#allocation5 + $0x2f0] sm:$0xff] }
 0x13e   :  { %2463 = vmatpush.msra.mxu2 %v6757_v3  ;;  %2512 = vmatpush.msra.mxu3 %v6728_v34  ;;  %v2406_v0 = vand.u32 4294901760, %v2405_v39  ;;  %v2429_v31 = vsub.f32 %v6887_v20, %v8902_v19  ;;  %v2424_v25 = vand.u32 4294901760, %v2423_v37  ;;  %v6937_v11 = vand.u32 4294901760, %v843_v48  ;;  %v837_v37 = vld [vmem:[#allocation5 + $0x2c0] sm:$0xff]  ;;  %v834_v19 = vld [vmem:[#allocation5 + $0x2a8] sm:$0xff] }
 0x13f   :  { %2161 = vmatpush.msrb.mxu0 %v6637_v13  ;;  %2383 = vmatpush.msra.mxu1 %v2382_v14  ;;  %v2400_v13 = vand.u32 4294901760, %v2399_v29  ;;  %v8901_v14 = vand.u32 4294901760, %v6899_v52  ;;  %v2418_v29 = vand.u32 4294901760, %v2417_v22  ;;  %v6996_v62 = vand.u32 4294901760, %v825_v61 }
 0x140   :  { %2164 = vmatmul.f32.vlgmr.msrb.gmra.mxu0 %v6631_v21  ;;  %2466 = vmatpush.msra.mxu2 %v6768_v24 }
 0x141   :  { %2314 = vmatpush.msra.mxu0 %v6721_v42  ;;  %2514 = vmatpush.msra.mxu3 %v6738_v56  ;;  %v2435_v39 = vsub.f32 %v6899_v52, %v8901_v14 }
 0x142   :  { %2389 = vmatpush.msra.mxu1 %v2388_v44  ;;  %2469 = vmatpush.msra.mxu2 %v6782_v58  ;;  %v8903_v44 = vand.u32 4294901760, %v6911_v40 }
 0x143   :  { %2316 = vmatpush.msra.mxu0 %v6728_v34  ;;  %2516 = vmatpush.msra.mxu3 %v6748_v41  ;;  %v2436_v14 = vand.u32 4294901760, %v2435_v39 }
 0x144   :  { %2395 = vmatpush.msra.mxu1 %v2394_v16  ;;  %2472 = vmatpush.msra.mxu2 %v6801_v8  ;;  %v840_v16 = vld [vmem:[#allocation5 + $0x2d8] sm:$0xff]  ;;  %v2441_v22 = vsub.f32 %v6911_v40, %v8903_v44  ;;  %v6958_v44 = vand.u32 4294901760, %v837_v37 }
 0x145   :  { %2318 = vmatpush.msra.mxu0 %v6738_v56  ;;  %2518 = vmatpush.msra.mxu3 %v6759_v2 }
 0x146   :  { %2401 = vmatpush.msra.mxu1 %v2400_v13  ;;  %2475 = vmatpush.msra.mxu2 %v6810_v6  ;;  %v8905_v13 = vand.u32 4294901760, %v6921_v7 }
 0x147   :  { %2320 = vmatpush.msra.mxu0 %v6748_v41  ;;  %2520 = vmatpush.msra.mxu3 %v6773_v4 }
 0x148   :  { %2407 = vmatpush.msra.mxu1 %v2406_v0  ;;  %2478 = vmatpush.msra.mxu2 %v6823_v9  ;;  %v2430_v0 = vand.u32 4294901760, %v2429_v31  ;;  %v6954_v31 = vsub.f32 %v843_v48, %v6937_v11  ;;  %v6966_v48 = vand.u32 4294901760, %v834_v19 }
 0x149   :  { %2322 = vmatpush.msra.mxu0 %v6759_v2  ;;  %2522 = vmatpush.msra.mxu3 %v6784_v10 }
 0x14a   :  { %2413 = vmatpush.msra.mxu1 %v2412_v17  ;;  %2481 = vmatpush.msra.mxu2 %v6839_v26  ;;  %v6945_v17 = vand.u32 4294901760, %v840_v16  ;;  %v8912_v38 = vand.u32 4294901760, %v6954_v31 }
 0x14b   :  { %2324 = vmatpush.msra.mxu0 %v6773_v4  ;;  %2524 = vmatpush.msra.mxu3 %v6795_v27 }
 0x14c   :  { %2419 = vmatpush.msra.mxu1 %v2418_v29  ;;  %2484 = vmatpush.msra.mxu2 %v6851_v45  ;;  %v2447_v29 = vsub.f32 %v6921_v7, %v8905_v13  ;;  %v6962_v39 = vsub.f32 %v840_v16, %v6945_v17  ;;  %v828_v13 = vld [vmem:[#allocation5 + $0x278] sm:$0xff]  ;;  %v6975_v16 = vsub.f32 %v837_v37, %v6958_v44 }
 0x14d   :  { %2326 = vmatpush.msra.mxu0 %v6784_v10  ;;  %2526 = vmatpush.msra.mxu3 %v6815_v12  ;;  %v2698_v37 = vsub.f32 %v6954_v31, %v8912_v38  ;;  %v819_v38 = vld [vmem:[#allocation5 + $0x230] sm:$0xff] }
 0x14e   :  { %2425 = vmatpush.msra.mxu1 %v2424_v25  ;;  %2487 = vmatpush.msra.mxu2 %v6863_v54  ;;  %v2442_v25 = vand.u32 4294901760, %v2441_v22  ;;  %v2448_v46 = vand.u32 4294901760, %v2447_v29  ;;  %v8918_v22 = vand.u32 4294901760, %v6962_v39  ;;  %v6984_v29 = vsub.f32 %v834_v19, %v6966_v48  ;;  %v9085_v19 = vld [vmem:[#allocation10_spill] sm:$0xff] }
 0x14f   :  { %2328 = vmatpush.msra.mxu0 %v6795_v27  ;;  %2528 = vmatpush.msra.mxu3 %v6829_v1  ;;  %v8921_v33 = vand.u32 4294901760, %v6975_v16  ;;  %v2699_v51 = vand.u32 4294901760, %v2698_v37  ;;  %v7022_v47 = vand.u32 4294901760, %v819_v38 }
 0x150   :  { %2431 = vmatpush.msra.mxu1 %v2430_v0  ;;  %2490 = vmatpush.msra.mxu2 %v6875_v59  ;;  %v6970_v0 = vand.u32 4294901760, %v831_v49  ;;  %v9089_v21 = vand.u32 4294901760, %v6984_v29 }
 0x151   :  { %2330 = vmatpush.msra.mxu0 %v6815_v12  ;;  %2530 = vmatpush.msra.mxu3 %v6841_v50 }
 0x152   :  { %2437 = vmatpush.msra.mxu1 %v2436_v14  ;;  %2493 = vmatpush.msra.mxu2 %v6887_v20  ;;  %v6979_v14 = vand.u32 4294901760, %v828_v13 }
 0x153   :  { %2332 = vmatpush.msra.mxu0 %v6829_v1  ;;  %2532 = vmatpush.msra.mxu3 %v6853_v57 }
 0x154   :  { %2443 = vmatpush.msra.mxu1 %v2442_v25  ;;  %2496 = vmatpush.msra.mxu2 %v6899_v52  ;;  %v6991_v25 = vsub.f32 %v831_v49, %v6970_v0  ;;  %v7004_v49 = vsub.f32 %v828_v13, %v6979_v14  ;;  %v7020_v13 = vsub.f32 %v825_v61, %v6996_v62 }
 0x155   :  { %2334 = vmatpush.msra.mxu0 %v6841_v50  ;;  %2534 = vmatpush.msra.mxu3 %v6865_v60  ;;  %v7033_v61 = vsub.f32 %v822_v35, %v7009_v23  ;;  %v7045_v35 = vsub.f32 %v819_v38, %v7022_v47 }
 0x156   :  { %2449 = vmatpush.msra.mxu1 %v2448_v46  ;;  %2499 = vmatpush.msra.mxu2 %v6911_v40  ;;  %9084 = vst [vmem:[#allocation18_spill] sm:$0xff] %v6991_v25  ;;  %v2704_v46 = vsub.f32 %v6962_v39, %v8918_v22  ;;  %v816_v22 = vld [vmem:[#allocation5 + $0x218] sm:$0xff] }
 0x157   :  { %2336 = vmatpush.msra.mxu0 %v6853_v57  ;;  %2536 = vmatpush.msra.mxu3 %v6877_v15  ;;  %9086 = vst [vmem:[#allocation22_spill] sm:$0xff] %v7004_v49  ;;  %v7035_v28 = vand.u32 4294901760, %v816_v22 }
 0x158   :  { %2451 = vmatmul.f32.vlgmr.msra.gmra.mxu1 %v9085_v19  ;;  %2502 = vmatpush.msra.mxu2 %v6921_v7  ;;  %v2705_v37 = vand.u32 4294901760, %v2704_v46  ;;  %v9090_v46 = vand.u32 4294901760, %v6991_v25 }
 0x159   :  { %2618 = vmatpush.msrb.mxu1 %v6721_v42  ;;  %2338 = vmatpush.msra.mxu0 %v6865_v60  ;;  %v2710_v42 = vsub.f32 %v6975_v16, %v8921_v33  ;;  %v2716_v33 = vsub.f32 %v6984_v29, %v9089_v21  ;;  %v7057_v38 = vsub.f32 %v816_v22, %v7035_v28  ;;  %v7059_v21 = vand.u32 4294901760, %v810_v18 }
 0x15a   :  { %2538 = vmatpush.msra.mxu3 %v6889_v53  ;;  %2505 = vmatmul.f32.vlgmr.msra.gmra.mxu2 %v9087_v5  ;;  %v813_v5 = vld [vmem:[#allocation5 + $0x200] sm:$0xff]  ;;  %v2722_v36 = vsub.f32 %v6991_v25, %v9090_v46  ;;  %v804_v25 = vld [vmem:[#allocation5 + $0x1b8] sm:$0xff] }
 0x15b   :  { %2620 = vmatpush.msrb.mxu1 %v6728_v34  ;;  %2655 = vmatpush.msrb.mxu2 %v6937_v11  ;;  %v9088_v34 = vld [vmem:[#allocation12_spill] sm:$0xff] }
 0x15c   :  { %2340 = vmatpush.msra.mxu0 %v6877_v15  ;;  %2540 = vmatpush.msra.mxu3 %v6901_v63 }
 0x15d   :  { %2544 = vmatmul.f32.vlgmr.msra.gmra.mxu3 %v9088_v34  ;;  %2622 = vmatpush.msrb.mxu1 %v6738_v56  ;;  %v2711_v56 = vand.u32 4294901760, %v2710_v42  ;;  %v7047_v34 = vand.u32 4294901760, %v813_v5  ;;  %v7085_v42 = vand.u32 4294901760, %v804_v25 }
 0x15e   :  { %2657 = vmatpush.msrb.mxu2 %v6945_v17  ;;  %2700 = vmatpush.msrb.mxu3 %v2699_v51  ;;  %v9091_v51 = vand.u32 4294901760, %v7004_v49 }
 0x15f   :  { %2342 = vmatpush.msra.mxu0 %v6889_v53  ;;  %2624 = vmatpush.msrb.mxu1 %v6748_v41  ;;  %v2717_v41 = vand.u32 4294901760, %v2716_v33  ;;  %v7070_v22 = vsub.f32 %v813_v5, %v7047_v34  ;;  %v7083_v5 = vsub.f32 %v810_v18, %v7059_v21 }
 0x160   :  { %2659 = vmatpush.msrb.mxu2 %v6958_v44  ;;  %2706 = vmatpush.msrb.mxu3 %v2705_v37  ;;  %v2728_v46 = vsub.f32 %v7004_v49, %v9091_v51  ;;  %v2723_v37 = vand.u32 4294901760, %v2722_v36  ;;  %v9093_v51 = vand.u32 4294901760, %v6736_v43  ;;  %v7072_v49 = vand.u32 4294901760, %v807_v32 }
 0x161   :  { %2344 = vmatpush.msra.mxu0 %v6901_v63  ;;  %2626 = vmatpush.msrb.mxu1 %v6759_v2  ;;  %v9094_v2 = vand.u32 4294901760, %v7020_v13  ;;  %v9095_v43 = vand.u32 4294901760, %v6746_v55  ;;  %v9097_v55 = vand.u32 4294901760, %v6757_v3  ;;  %v9099_v3 = vand.u32 4294901760, %v6768_v24 }
 0x162   :  { %2350 = vmatmul.f32.vlgmr.msra.gmra.mxu0 %v9092_v30  ;;  %2661 = vmatpush.msrb.mxu2 %v6966_v48  ;;  %v2729_v36 = vand.u32 4294901760, %v2728_v46  ;;  %v801_v30 = vld [vmem:[#allocation5 + $0x1a0] sm:$0xff]  ;;  %v9098_v46 = vand.u32 4294901760, %v7045_v35  ;;  %v7096_v18 = vsub.f32 %v807_v32, %v7072_v49  ;;  %v7109_v32 = vsub.f32 %v804_v25, %v7085_v42 }
 0x163   :  { %2551 = vmatpush.msrb.mxu0 %v9093_v51  ;;  %2712 = vmatpush.msrb.mxu3 %v2711_v56  ;;  %v2734_v33 = vsub.f32 %v7020_v13, %v9094_v2  ;;  %v9096_v56 = vand.u32 4294901760, %v7033_v61  ;;  %v2751_v2 = vand.u32 4294901760, %v7057_v38  ;;  %v9100_v24 = vand.u32 4294901760, %v6782_v58 }
 0x164   :  { %2628 = vmatpush.msrb.mxu1 %v6773_v4  ;;  %2663 = vmatpush.msrb.mxu2 %v6970_v0  ;;  %v9101_v25 = vand.u32 4294901760, %v6801_v8 }
 0x165   :  { %2555 = vmatpush.msrb.mxu0 %v9095_v43  ;;  %2718 = vmatpush.msrb.mxu3 %v2717_v41  ;;  %v2740_v51 = vsub.f32 %v7033_v61, %v9096_v56  ;;  %v2735_v4 = vand.u32 4294901760, %v2734_v33  ;;  %v2746_v41 = vsub.f32 %v7045_v35, %v9098_v46  ;;  %v2757_v43 = vand.u32 4294901760, %v7070_v22  ;;  %v798_v56 = vld [vmem:[#allocation5 + $0x188] sm:$0xff] }
 0x166   :  { %2630 = vmatpush.msrb.mxu1 %v6784_v10  ;;  %2665 = vmatpush.msrb.mxu2 %v6979_v14  ;;  %v7100_v10 = vand.u32 4294901760, %v801_v30  ;;  %v2752_v33 = vsub.f32 %v7057_v38, %v2751_v2  ;;  %v2769_v46 = vand.u32 4294901760, %v7096_v18 }
 0x167   :  { %2559 = vmatpush.msrb.mxu0 %v9097_v55  ;;  %2724 = vmatpush.msrb.mxu3 %v2723_v37  ;;  %v2741_v37 = vand.u32 4294901760, %v2740_v51  ;;  %v2763_v55 = vand.u32 4294901760, %v7083_v5  ;;  %v2758_v51 = vsub.f32 %v7070_v22, %v2757_v43 }
 0x168   :  { %2632 = vmatpush.msrb.mxu1 %v6795_v27  ;;  %2667 = vmatpush.msrb.mxu2 %v6996_v62  ;;  %v7113_v27 = vand.u32 4294901760, %v798_v56  ;;  %v2753_v58 = vand.u32 4294901760, %v2752_v33 }
 0x169   :  { %2563 = vmatpush.msrb.mxu0 %v9099_v3  ;;  %2730 = vmatpush.msrb.mxu3 %v2729_v36  ;;  %v2747_v36 = vand.u32 4294901760, %v2746_v41  ;;  %v2775_v41 = vand.u32 4294901760, %v7109_v32  ;;  %v2759_v8 = vand.u32 4294901760, %v2758_v51  ;;  %v2770_v3 = vsub.f32 %v7096_v18, %v2769_v46 }
 0x16a   :  { %2634 = vmatpush.msrb.mxu1 %v6815_v12  ;;  %2669 = vmatpush.msrb.mxu2 %v7009_v23  ;;  %v7124_v12 = vsub.f32 %v801_v30, %v7100_v10  ;;  %v9102_v30 = vand.u32 4294901760, %v6810_v6  ;;  %v9107_v51 = vand.u32 4294901760, %v6875_v59  ;;  %v9111_v59 = vand.u32 4294901760, %v6899_v52 }
 0x16b   :  { %2567 = vmatpush.msrb.mxu0 %v9100_v24  ;;  %2736 = vmatpush.msrb.mxu3 %v2735_v4  ;;  %v2764_v4 = vsub.f32 %v7083_v5, %v2763_v55  ;;  %v2776_v6 = vsub.f32 %v7109_v32, %v2775_v41  ;;  %v2771_v24 = vand.u32 4294901760, %v2770_v3  ;;  %v9116_v52 = vand.u32 4294901760, %v6921_v7  ;;  %v9120_v7 = vld [vmem:[#allocation22_spill] sm:$0xff] }
 0x16c   :  { %2636 = vmatpush.msrb.mxu1 %v6829_v1  ;;  %2671 = vmatpush.msrb.mxu2 %v7022_v47  ;;  %v7135_v1 = vsub.f32 %v798_v56, %v7113_v27  ;;  %v9121_v3 = vand.u32 4294901760, %v9120_v7 }
 0x16d   :  { %2571 = vmatpush.msrb.mxu0 %v9101_v25  ;;  %2742 = vmatpush.msrb.mxu3 %v2741_v37  ;;  %v9103_v37 = vand.u32 4294901760, %v6823_v9  ;;  %v2765_v56 = vand.u32 4294901760, %v2764_v4  ;;  %v9109_v25 = vld [vmem:[#allocation17_spill] sm:$0xff]  ;;  %v9113_v4 = vand.u32 4294901760, %v6962_v39 }
 0x16e   :  { %2638 = vmatpush.msrb.mxu1 %v6841_v50  ;;  %2673 = vmatpush.msrb.mxu2 %v7035_v28  ;;  %v2781_v50 = vand.u32 4294901760, %v7124_v12  ;;  %v2787_v33 = vand.u32 4294901760, %v7135_v1 }
 0x16f   :  { %2575 = vmatpush.msrb.mxu0 %v9102_v30  ;;  %2748 = vmatpush.msrb.mxu3 %v2747_v36  ;;  %v9105_v36 = vand.u32 4294901760, %v6851_v45  ;;  %v9115_v30 = vand.u32 4294901760, %v6975_v16 }
 0x170   :  { %2640 = vmatpush.msrb.mxu1 %v6853_v57  ;;  %2675 = vmatpush.msrb.mxu2 %v7047_v34  ;;  %v9104_v57 = vand.u32 4294901760, %v6839_v26  ;;  %v2782_v9 = vsub.f32 %v7124_v12, %v2781_v50  ;;  %v2788_v26 = vsub.f32 %v7135_v1, %v2787_v33 }
 0x171   :  { %2579 = vmatpush.msrb.mxu0 %v9103_v37  ;;  %2754 = vmatpush.msrb.mxu3 %v2753_v58  ;;  %v9112_v58 = vld [vmem:[#allocation14_spill] sm:$0xff] }
 0x172   :  { %2642 = vmatpush.msrb.mxu1 %v6865_v60  ;;  %2677 = vmatpush.msrb.mxu2 %v7059_v21  ;;  %v2777_v60 = vand.u32 4294901760, %v2776_v6  ;;  %v2783_v45 = vand.u32 4294901760, %v2782_v9  ;;  %v888_v37 = vld [vmem:[#allocation5 + $0x458] sm:$0xff] }
 0x173   :  { %2583 = vmatpush.msrb.mxu0 %v9104_v57  ;;  %2760 = vmatpush.msrb.mxu3 %v2759_v8  ;;  %v9117_v8 = vand.u32 4294901760, %v6984_v29 }
 0x174   :  { %2644 = vmatpush.msrb.mxu1 %v6877_v15  ;;  %2679 = vmatpush.msrb.mxu2 %v7072_v49  ;;  %v9106_v15 = vand.u32 4294901760, %v6863_v54  ;;  %v9108_v54 = vand.u32 4294901760, %v6887_v20  ;;  %v9114_v20 = vand.u32 4294901760, %v6911_v40  ;;  %v9118_v40 = vld [vmem:[#allocation18_spill] sm:$0xff] }
 0x175   :  { %2587 = vmatpush.msrb.mxu0 %v9105_v36  ;;  %2766 = vmatpush.msrb.mxu3 %v2765_v56  ;;  %v876_v36 = vld [vmem:[#allocation5 + $0x3f8] sm:$0xff] }
 0x176   :  { %2646 = vmatpush.msrb.mxu1 %v6889_v53  ;;  %2681 = vmatpush.msrb.mxu2 %v7085_v42  ;;  %v2789_v53 = vand.u32 4294901760, %v2788_v26  ;;  %v870_v26 = vld [vmem:[#allocation5 + $0x3c8] sm:$0xff] }
 0x177   :  { %2591 = vmatpush.msrb.mxu0 %v9106_v15  ;;  %2772 = vmatpush.msrb.mxu3 %v2771_v24 }
 0x178   :  { %2648 = vmatpush.msrb.mxu1 %v6901_v63  ;;  %2683 = vmatpush.msrb.mxu2 %v7100_v10  ;;  %v9110_v63 = vand.u32 4294901760, %v6954_v31 }
 0x179   :  { %2595 = vmatpush.msrb.mxu0 %v9107_v51  ;;  %2778 = vmatpush.msrb.mxu3 %v2777_v60  ;;  %v873_v60 = vld [vmem:[#allocation5 + $0x3e0] sm:$0xff] }
 0x17a   :  { %2650 = vmatmul.f32.vlgmr.msrb.gmra.mxu1 %v9085_v19  ;;  %2685 = vmatpush.msrb.mxu2 %v7113_v27  ;;  %v7276_v15 = vand.u32 4294901760, %v873_v60 }
 0x17b   :  { %2851 = vmatpush.msra.mxu1 %v6937_v11  ;;  %2599 = vmatpush.msrb.mxu0 %v9108_v54  ;;  %v864_v54 = vld [vmem:[#allocation5 + $0x398] sm:$0xff] }
 0x17c   :  { %2784 = vmatpush.msrb.mxu3 %v2783_v45  ;;  %2691 = vmatmul.f32.vlgmr.msrb.gmra.mxu2 %v9109_v25  ;;  %v867_v45 = vld [vmem:[#allocation5 + $0x3b0] sm:$0xff] }
 0x17d   :  { %2853 = vmatpush.msra.mxu1 %v6945_v17  ;;  %2892 = vmatpush.msra.mxu2 %v9110_v63  ;;  %v903_v25 = vld [vmem:[#allocation5 + $0x4d0] sm:$0xff] }
 0x17e   :  { %2603 = vmatpush.msrb.mxu0 %v9111_v59  ;;  %2790 = vmatpush.msrb.mxu3 %v2789_v53  ;;  %v7302_v53 = vsub.f32 %v873_v60, %v7276_v15  ;;  %v861_v59 = vld [vmem:[#allocation5 + $0x380] sm:$0xff] }
 0x17f   :  { %2792 = vmatmul.f32.vlgmr.msrb.gmra.mxu3 %v9112_v58  ;;  %2855 = vmatpush.msra.mxu1 %v6958_v44 }
 0x180   :  { %2896 = vmatpush.msra.mxu2 %v9113_v4  ;;  %2959 = vmatpush.msra.mxu3 %v6937_v11  ;;  %v9119_v11 = vand.u32 4294901760, %v9118_v40  ;;  %v9125_v4 = vld [vmem:[#allocation16_spill] sm:$0xff] }
 0x181   :  { %2607 = vmatpush.msrb.mxu0 %v9114_v20  ;;  %2857 = vmatpush.msra.mxu1 %v6966_v48  ;;  %v7321_v20 = vand.u32 4294901760, %v864_v54 }
 0x182   :  { %2900 = vmatpush.msra.mxu2 %v9115_v30  ;;  %2961 = vmatpush.msra.mxu3 %v6945_v17  ;;  %v891_v17 = vld [vmem:[#allocation5 + $0x470] sm:$0xff]  ;;  %v8943_v30 = vand.u32 4294901760, %v7302_v53 }
 0x183   :  { %2611 = vmatpush.msrb.mxu0 %v9116_v52  ;;  %2859 = vmatpush.msra.mxu1 %v6970_v0  ;;  %v858_v52 = vld [vmem:[#allocation5 + $0x368] sm:$0xff] }
 0x184   :  { %2613 = vmatmul.f32.vlgmr.msrb.gmra.mxu0 %v9085_v19  ;;  %2904 = vmatpush.msra.mxu2 %v9117_v8  ;;  %v7333_v8 = vand.u32 4294901760, %v861_v59  ;;  %v9135_v19 = vld [vmem:[#allocation25_spill] sm:$0xff] }
 0x185   :  { %2798 = vmatpush.msra.mxu0 %v6954_v31  ;;  %2963 = vmatpush.msra.mxu3 %v6958_v44  ;;  %v7213_v44 = vand.u32 4294901760, %v891_v17  ;;  %v9122_v31 = vand.u32 4294901760, %v7020_v13 }
 0x186   :  { %2861 = vmatpush.msra.mxu1 %v6979_v14  ;;  %2908 = vmatpush.msra.mxu2 %v9119_v11  ;;  %v855_v11 = vld [vmem:[#allocation5 + $0x350] sm:$0xff] }
 0x187   :  { %2801 = vmatpush.msra.mxu0 %v6962_v39  ;;  %2965 = vmatpush.msra.mxu3 %v6966_v48  ;;  %v885_v39 = vld [vmem:[#allocation5 + $0x440] sm:$0xff]  ;;  %v7220_v48 = vand.u32 4294901760, %v888_v37  ;;  %v7228_v56 = vsub.f32 %v891_v17, %v7213_v44  ;;  %v7343_v17 = vsub.f32 %v864_v54, %v7321_v20 }
 0x188   :  { %2863 = vmatpush.msra.mxu1 %v6996_v62  ;;  %2912 = vmatpush.msra.mxu2 %v9121_v3  ;;  %v7230_v6 = vand.u32 4294901760, %v885_v39 }
 0x189   :  { %2804 = vmatpush.msra.mxu0 %v6975_v16  ;;  %2967 = vmatpush.msra.mxu3 %v6970_v0  ;;  %v9123_v16 = vand.u32 4294901760, %v7033_v61  ;;  %v882_v0 = vld [vmem:[#allocation5 + $0x428] sm:$0xff]  ;;  %v7238_v57 = vsub.f32 %v888_v37, %v7220_v48  ;;  %v3075_v37 = vsub.f32 %v7302_v53, %v8943_v30 }
 0x18a   :  { %2865 = vmatpush.msra.mxu1 %v7009_v23  ;;  %2916 = vmatpush.msra.mxu2 %v9122_v31  ;;  %v7240_v24 = vand.u32 4294901760, %v882_v0  ;;  %v7249_v9 = vsub.f32 %v885_v39, %v7230_v6  ;;  %v7355_v31 = vsub.f32 %v861_v59, %v7333_v8  ;;  %v7357_v39 = vand.u32 4294901760, %v855_v11 }
 0x18b   :  { %2807 = vmatpush.msra.mxu0 %v6984_v29  ;;  %2969 = vmatpush.msra.mxu3 %v6979_v14  ;;  %v9124_v14 = vand.u32 4294901760, %v7045_v35  ;;  %v879_v29 = vld [vmem:[#allocation5 + $0x410] sm:$0xff] }
 0x18c   :  { %2867 = vmatpush.msra.mxu1 %v7022_v47  ;;  %2920 = vmatpush.msra.mxu2 %v9123_v16 }
 0x18d   :  { %2810 = vmatpush.msra.mxu0 %v9118_v40  ;;  %2971 = vmatpush.msra.mxu3 %v6996_v62  ;;  %v8950_v62 = vand.u32 4294901760, %v7228_v56 }
 0x18e   :  { %2869 = vmatpush.msra.mxu1 %v7035_v28  ;;  %2924 = vmatpush.msra.mxu2 %v9124_v14 }
 0x18f   :  { %2813 = vmatpush.msra.mxu0 %v9120_v7  ;;  %2973 = vmatpush.msra.mxu3 %v7009_v23  ;;  %v7251_v23 = vand.u32 4294901760, %v879_v29  ;;  %v7345_v7 = vand.u32 4294901760, %v858_v52 }
 0x190   :  { %2871 = vmatpush.msra.mxu1 %v7047_v34  ;;  %2928 = vmatpush.msra.mxu2 %v2751_v2  ;;  %v7265_v2 = vand.u32 4294901760, %v876_v36 }
 0x191   :  { %2816 = vmatpush.msra.mxu0 %v7020_v13  ;;  %2975 = vmatpush.msra.mxu3 %v7022_v47  ;;  %v8949_v47 = vand.u32 4294901760, %v7238_v57  ;;  %v7260_v13 = vsub.f32 %v882_v0, %v7240_v24  ;;  %v849_v0 = vld [vmem:[#allocation5 + $0x320] sm:$0xff] }
 0x192   :  { %2873 = vmatpush.msra.mxu1 %v7059_v21  ;;  %2932 = vmatpush.msra.mxu2 %v2757_v43  ;;  %v7274_v43 = vsub.f32 %v879_v29, %v7251_v23  ;;  %v8940_v29 = vand.u32 4294901760, %v7343_v17 }
 0x193   :  { %2819 = vmatpush.msra.mxu0 %v7033_v61  ;;  %2977 = vmatpush.msra.mxu3 %v7035_v28  ;;  %v3039_v28 = vsub.f32 %v7228_v56, %v8950_v62  ;;  %v8948_v61 = vand.u32 4294901760, %v7249_v9 }
 0x194   :  { %2875 = vmatpush.msra.mxu1 %v7072_v49  ;;  %2936 = vmatpush.msra.mxu2 %v2763_v55  ;;  %v7287_v55 = vand.u32 4294901760, %v870_v26  ;;  %v8946_v51 = vand.u32 4294901760, %v7274_v43  ;;  %v3093_v54 = vsub.f32 %v7343_v17, %v8940_v29 }
 0x195   :  { %2822 = vmatpush.msra.mxu0 %v7045_v35  ;;  %2979 = vmatpush.msra.mxu3 %v7047_v34  ;;  %v3045_v34 = vsub.f32 %v7238_v57, %v8949_v47  ;;  %v8947_v35 = vand.u32 4294901760, %v7260_v13 }
 0x196   :  { %2877 = vmatpush.msra.mxu1 %v7085_v42  ;;  %2940 = vmatpush.msra.mxu2 %v2769_v46  ;;  %v7293_v46 = vsub.f32 %v876_v36, %v7265_v2  ;;  %v7315_v63 = vsub.f32 %v870_v26, %v7287_v55  ;;  %v7367_v36 = vsub.f32 %v858_v52, %v7345_v7  ;;  %v846_v26 = vld [vmem:[#allocation5 + $0x308] sm:$0xff] }
 0x197   :  { %2825 = vmatpush.msra.mxu0 %v7057_v38  ;;  %2981 = vmatpush.msra.mxu3 %v7059_v21  ;;  %v3040_v21 = vand.u32 4294901760, %v3039_v28  ;;  %v3051_v38 = vsub.f32 %v7249_v9, %v8948_v61  ;;  %v9126_v28 = vld [vmem:[#allocation15_spill] sm:$0xff]  ;;  %v7393_v59 = vand.u32 4294901760, %v846_v26  ;;  %v9130_v61 = vld [vmem:[#allocation21_spill] sm:$0xff] }
 0x198   :  { %2879 = vmatpush.msra.mxu1 %v7100_v10  ;;  %2944 = vmatpush.msra.mxu2 %v2775_v41  ;;  %v7307_v41 = vand.u32 4294901760, %v867_v45  ;;  %v8942_v40 = vand.u32 4294901760, %v7315_v63 }
 0x199   :  { %2828 = vmatpush.msra.mxu0 %v7070_v22  ;;  %2983 = vmatpush.msra.mxu3 %v7072_v49  ;;  %v3046_v49 = vand.u32 4294901760, %v3045_v34  ;;  %v3057_v22 = vsub.f32 %v7260_v13, %v8947_v35 }
 0x19a   :  { %2881 = vmatpush.msra.mxu1 %v7113_v27  ;;  %2948 = vmatpush.msra.mxu2 %v2781_v50  ;;  %v8944_v50 = vand.u32 4294901760, %v7293_v46  ;;  %v3081_v16 = vsub.f32 %v7315_v63, %v8942_v40  ;;  %v918_v40 = vld [vmem:[#allocation5 + $0x548] sm:$0xff] }
 0x19b   :  { %2831 = vmatpush.msra.mxu0 %v7083_v5  ;;  %2985 = vmatpush.msra.mxu3 %v7085_v42  ;;  %v3052_v42 = vand.u32 4294901760, %v3051_v38  ;;  %v3063_v5 = vsub.f32 %v7274_v43, %v8946_v51  ;;  %v7381_v38 = vand.u32 4294901760, %v849_v0  ;;  %v7501_v35 = vand.u32 4294901760, %v918_v40 }
 0x19c   :  { %2885 = vmatmul.f32.vlgmr.msra.gmra.mxu1 %v9125_v4  ;;  %2952 = vmatpush.msra.mxu2 %v2787_v33  ;;  %v7331_v33 = vsub.f32 %v867_v45, %v7307_v41  ;;  %v8939_v45 = vand.u32 4294901760, %v7355_v31 }
 0x19d   :  { %3041 = vmatpush.msrb.mxu1 %v3040_v21  ;;  %2834 = vmatpush.msra.mxu0 %v7096_v18  ;;  %v3058_v18 = vand.u32 4294901760, %v3057_v22  ;;  %v3064_v3 = vand.u32 4294901760, %v3063_v5  ;;  %v7379_v21 = vsub.f32 %v855_v11, %v7357_v39  ;;  %v3094_v11 = vand.u32 4294901760, %v3093_v54 }
 0x19e   :  { %2987 = vmatpush.msra.mxu3 %v7100_v10  ;;  %2954 = vmatmul.f32.vlgmr.msra.gmra.mxu2 %v9112_v58  ;;  %v3069_v10 = vsub.f32 %v7293_v46, %v8944_v50  ;;  %v3099_v5 = vsub.f32 %v7355_v31, %v8939_v45 }
 0x19f   :  { %3047 = vmatpush.msrb.mxu1 %v3046_v49  ;;  %3139 = vmatpush.msrb.mxu2 %v7228_v56  ;;  %v8937_v49 = vand.u32 4294901760, %v7367_v36  ;;  %v8935_v52 = vand.u32 4294901760, %v7379_v21 }
 0x1a0   :  { %2837 = vmatpush.msra.mxu0 %v7109_v32  ;;  %2989 = vmatpush.msra.mxu3 %v7113_v27  ;;  %v852_v32 = vld [vmem:[#allocation5 + $0x338] sm:$0xff]  ;;  %v8941_v27 = vand.u32 4294901760, %v7331_v33  ;;  %v3070_v14 = vand.u32 4294901760, %v3069_v10 }
 0x1a1   :  { %2991 = vmatmul.f32.vlgmr.msra.gmra.mxu3 %v9112_v58  ;;  %3053 = vmatpush.msrb.mxu1 %v3052_v42  ;;  %v7369_v60 = vand.u32 4294901760, %v852_v32  ;;  %v3105_v10 = vsub.f32 %v7367_v36, %v8937_v49  ;;  %v927_v49 = vld [vmem:[#allocation5 + $0x590] sm:$0xff]  ;;  %v906_v58 = vld [vmem:[#allocation5 + $0x4e8] sm:$0xff] }
 0x1a2   :  { %3142 = vmatpush.msrb.mxu2 %v7238_v57  ;;  %3192 = vmatpush.msrb.mxu3 %v7213_v44  ;;  %v3087_v34 = vsub.f32 %v7331_v33, %v8941_v27  ;;  %v921_v27 = vld [vmem:[#allocation5 + $0x560] sm:$0xff] }
 0x1a3   :  { %2840 = vmatpush.msra.mxu0 %v7124_v12  ;;  %3059 = vmatpush.msrb.mxu1 %v3058_v18  ;;  %v3076_v12 = vand.u32 4294901760, %v3075_v37  ;;  %v7391_v22 = vsub.f32 %v852_v32, %v7369_v60  ;;  %v7403_v18 = vsub.f32 %v849_v0, %v7381_v38  ;;  %v7413_v37 = vsub.f32 %v846_v26, %v7393_v59  ;;  %v939_v32 = vld [vmem:[#allocation5 + $0x5f0] sm:$0xff] }
 0x1a4   :  { %3145 = vmatpush.msrb.mxu2 %v7249_v9  ;;  %3194 = vmatpush.msrb.mxu3 %v7220_v48  ;;  %v3088_v42 = vand.u32 4294901760, %v3087_v34  ;;  %v3111_v0 = vsub.f32 %v7379_v21, %v8935_v52  ;;  %v3106_v26 = vand.u32 4294901760, %v3105_v10  ;;  %v7429_v54 = vand.u32 4294901760, %v939_v32  ;;  %v933_v10 = vld [vmem:[#allocation5 + $0x5c0] sm:$0xff]  ;;  %v930_v52 = vld [vmem:[#allocation5 + $0x5a8] sm:$0xff] }
 0x1a5   :  { %2843 = vmatpush.msra.mxu0 %v7135_v1  ;;  %3065 = vmatpush.msrb.mxu1 %v3064_v3  ;;  %v3082_v1 = vand.u32 4294901760, %v3081_v16  ;;  %v8934_v3 = vand.u32 4294901760, %v7391_v22  ;;  %v3100_v16 = vand.u32 4294901760, %v3099_v5  ;;  %v7488_v50 = vand.u32 4294901760, %v921_v27 }
 0x1a6   :  { %2846 = vmatmul.f32.vlgmr.msra.gmra.mxu0 %v9126_v28  ;;  %3148 = vmatpush.msrb.mxu2 %v7260_v13 }
 0x1a7   :  { %2996 = vmatpush.msrb.mxu0 %v7213_v44  ;;  %3196 = vmatpush.msrb.mxu3 %v7230_v6  ;;  %v3117_v34 = vsub.f32 %v7391_v22, %v8934_v3 }
 0x1a8   :  { %3071 = vmatpush.msrb.mxu1 %v3070_v14  ;;  %3151 = vmatpush.msrb.mxu2 %v7274_v43  ;;  %v8936_v14 = vand.u32 4294901760, %v7403_v18 }
 0x1a9   :  { %2998 = vmatpush.msrb.mxu0 %v7220_v48  ;;  %3198 = vmatpush.msrb.mxu3 %v7240_v24  ;;  %v3118_v3 = vand.u32 4294901760, %v3117_v34 }
 0x1aa   :  { %3077 = vmatpush.msrb.mxu1 %v3076_v12  ;;  %3154 = vmatpush.msrb.mxu2 %v7293_v46  ;;  %v936_v12 = vld [vmem:[#allocation5 + $0x5d8] sm:$0xff]  ;;  %v3123_v5 = vsub.f32 %v7403_v18, %v8936_v14  ;;  %v7450_v14 = vand.u32 4294901760, %v933_v10 }
 0x1ab   :  { %3000 = vmatpush.msrb.mxu0 %v7230_v6  ;;  %3200 = vmatpush.msrb.mxu3 %v7251_v23 }
 0x1ac   :  { %3083 = vmatpush.msrb.mxu1 %v3082_v1  ;;  %3157 = vmatpush.msrb.mxu2 %v7302_v53  ;;  %v8938_v1 = vand.u32 4294901760, %v7413_v37 }
 0x1ad   :  { %3002 = vmatpush.msrb.mxu0 %v7240_v24  ;;  %3202 = vmatpush.msrb.mxu3 %v7265_v2 }
 0x1ae   :  { %3089 = vmatpush.msrb.mxu1 %v3088_v42  ;;  %3160 = vmatpush.msrb.mxu2 %v7315_v63  ;;  %v3112_v42 = vand.u32 4294901760, %v3111_v0  ;;  %v7446_v0 = vsub.f32 %v939_v32, %v7429_v54  ;;  %v7458_v32 = vand.u32 4294901760, %v930_v52 }
 0x1af   :  { %3004 = vmatpush.msrb.mxu0 %v7251_v23  ;;  %3204 = vmatpush.msrb.mxu3 %v7276_v15 }
 0x1b0   :  { %3095 = vmatpush.msrb.mxu1 %v3094_v11  ;;  %3163 = vmatpush.msrb.mxu2 %v7331_v33  ;;  %v7437_v11 = vand.u32 4294901760, %v936_v12  ;;  %v8945_v29 = vand.u32 4294901760, %v7446_v0 }
 0x1b1   :  { %3006 = vmatpush.msrb.mxu0 %v7265_v2  ;;  %3206 = vmatpush.msrb.mxu3 %v7287_v55 }
 0x1b2   :  { %3101 = vmatpush.msrb.mxu1 %v3100_v16  ;;  %3166 = vmatpush.msrb.mxu2 %v7343_v17  ;;  %v3129_v16 = vsub.f32 %v7413_v37, %v8938_v1  ;;  %v7454_v34 = vsub.f32 %v936_v12, %v7437_v11  ;;  %v924_v1 = vld [vmem:[#allocation5 + $0x578] sm:$0xff]  ;;  %v7467_v12 = vsub.f32 %v933_v10, %v7450_v14 }
 0x1b3   :  { %3008 = vmatpush.msrb.mxu0 %v7276_v15  ;;  %3208 = vmatpush.msrb.mxu3 %v7307_v41  ;;  %v3380_v10 = vsub.f32 %v7446_v0, %v8945_v29  ;;  %v915_v29 = vld [vmem:[#allocation5 + $0x530] sm:$0xff] }
 0x1b4   :  { %3107 = vmatpush.msrb.mxu1 %v3106_v26  ;;  %3169 = vmatpush.msrb.mxu2 %v7355_v31  ;;  %v3124_v26 = vand.u32 4294901760, %v3123_v5  ;;  %v3130_v45 = vand.u32 4294901760, %v3129_v16  ;;  %v8951_v5 = vand.u32 4294901760, %v7454_v34  ;;  %v7476_v16 = vsub.f32 %v930_v52, %v7458_v32  ;;  %v9128_v52 = vld [vmem:[#allocation20_spill] sm:$0xff] }
 0x1b5   :  { %3010 = vmatpush.msrb.mxu0 %v7287_v55  ;;  %3210 = vmatpush.msrb.mxu3 %v7321_v20  ;;  %v8952_v30 = vand.u32 4294901760, %v7467_v12  ;;  %v3381_v47 = vand.u32 4294901760, %v3380_v10  ;;  %v7514_v51 = vand.u32 4294901760, %v915_v29 }
 0x1b6   :  { %3113 = vmatpush.msrb.mxu1 %v3112_v42  ;;  %3172 = vmatpush.msrb.mxu2 %v7367_v36  ;;  %v7462_v42 = vand.u32 4294901760, %v927_v49  ;;  %v9132_v28 = vand.u32 4294901760, %v7476_v16 }
 0x1b7   :  { %3012 = vmatpush.msrb.mxu0 %v7307_v41  ;;  %3212 = vmatpush.msrb.mxu3 %v7333_v8 }
 0x1b8   :  { %3119 = vmatpush.msrb.mxu1 %v3118_v3  ;;  %3175 = vmatpush.msrb.mxu2 %v7379_v21  ;;  %v7471_v3 = vand.u32 4294901760, %v924_v1 }
 0x1b9   :  { %3014 = vmatpush.msrb.mxu0 %v7321_v20  ;;  %3214 = vmatpush.msrb.mxu3 %v7345_v7 }
 0x1ba   :  { %3125 = vmatpush.msrb.mxu1 %v3124_v26  ;;  %3178 = vmatpush.msrb.mxu2 %v7391_v22  ;;  %v7483_v26 = vsub.f32 %v927_v49, %v7462_v42  ;;  %v7496_v49 = vsub.f32 %v924_v1, %v7471_v3  ;;  %v7512_v1 = vsub.f32 %v921_v27, %v7488_v50 }
 0x1bb   :  { %3016 = vmatpush.msrb.mxu0 %v7333_v8  ;;  %3216 = vmatpush.msrb.mxu3 %v7357_v39  ;;  %v7525_v27 = vsub.f32 %v918_v40, %v7501_v35  ;;  %v7537_v40 = vsub.f32 %v915_v29, %v7514_v51 }
 0x1bc   :  { %3131 = vmatpush.msrb.mxu1 %v3130_v45  ;;  %3181 = vmatpush.msrb.mxu2 %v7403_v18  ;;  %9127 = vst [vmem:[#allocation19_spill] sm:$0xff] %v7483_v26  ;;  %v3386_v45 = vsub.f32 %v7454_v34, %v8951_v5  ;;  %v912_v5 = vld [vmem:[#allocation5 + $0x518] sm:$0xff] }
 0x1bd   :  { %3018 = vmatpush.msrb.mxu0 %v7345_v7  ;;  %3218 = vmatpush.msrb.mxu3 %v7369_v60  ;;  %9129 = vst [vmem:[#allocation24_spill] sm:$0xff] %v7496_v49  ;;  %v7527_v4 = vand.u32 4294901760, %v912_v5 }
 0x1be   :  { %3133 = vmatmul.f32.vlgmr.msrb.gmra.mxu1 %v9128_v52  ;;  %3184 = vmatpush.msrb.mxu2 %v7413_v37  ;;  %v3387_v10 = vand.u32 4294901760, %v3386_v45  ;;  %v9133_v45 = vand.u32 4294901760, %v7483_v26 }
 0x1bf   :  { %3300 = vmatpush.msra.mxu1 %v7213_v44  ;;  %3020 = vmatpush.msrb.mxu0 %v7357_v39  ;;  %v3392_v44 = vsub.f32 %v7467_v12, %v8952_v30  ;;  %v3398_v30 = vsub.f32 %v7476_v16, %v9132_v28  ;;  %v7549_v29 = vsub.f32 %v912_v5, %v7527_v4  ;;  %v7551_v28 = vand.u32 4294901760, %v906_v58 }
 0x1c0   :  { %3220 = vmatpush.msrb.mxu3 %v7381_v38  ;;  %3187 = vmatmul.f32.vlgmr.msrb.gmra.mxu2 %v9130_v61  ;;  %v909_v61 = vld [vmem:[#allocation5 + $0x500] sm:$0xff]  ;;  %v3404_v62 = vsub.f32 %v7483_v26, %v9133_v45  ;;  %v900_v26 = vld [vmem:[#allocation5 + $0x4b8] sm:$0xff] }
 0x1c1   :  { %3302 = vmatpush.msra.mxu1 %v7220_v48  ;;  %3337 = vmatpush.msra.mxu2 %v7429_v54  ;;  %v9131_v48 = vld [vmem:[#allocation23_spill] sm:$0xff] }
 0x1c2   :  { %3022 = vmatpush.msrb.mxu0 %v7369_v60  ;;  %3222 = vmatpush.msrb.mxu3 %v7393_v59 }
 0x1c3   :  { %3226 = vmatmul.f32.vlgmr.msrb.gmra.mxu3 %v9131_v48  ;;  %3304 = vmatpush.msra.mxu1 %v7230_v6  ;;  %v3393_v6 = vand.u32 4294901760, %v3392_v44  ;;  %v7539_v48 = vand.u32 4294901760, %v909_v61  ;;  %v7577_v44 = vand.u32 4294901760, %v900_v26 }
 0x1c4   :  { %3339 = vmatpush.msra.mxu2 %v7437_v11  ;;  %3382 = vmatpush.msra.mxu3 %v3381_v47  ;;  %v9134_v47 = vand.u32 4294901760, %v7496_v49 }
 0x1c5   :  { %3024 = vmatpush.msrb.mxu0 %v7381_v38  ;;  %3306 = vmatpush.msra.mxu1 %v7240_v24  ;;  %v3399_v24 = vand.u32 4294901760, %v3398_v30  ;;  %v7562_v5 = vsub.f32 %v909_v61, %v7539_v48  ;;  %v7575_v61 = vsub.f32 %v906_v58, %v7551_v28 }
 0x1c6   :  { %3341 = vmatpush.msra.mxu2 %v7450_v14  ;;  %3388 = vmatpush.msra.mxu3 %v3387_v10  ;;  %v3410_v45 = vsub.f32 %v7496_v49, %v9134_v47  ;;  %v3405_v10 = vand.u32 4294901760, %v3404_v62  ;;  %v9136_v47 = vand.u32 4294901760, %v7228_v56  ;;  %v7564_v49 = vand.u32 4294901760, %v903_v25 }
 0x1c7   :  { %3026 = vmatpush.msrb.mxu0 %v7393_v59  ;;  %3308 = vmatpush.msra.mxu1 %v7251_v23  ;;  %v9137_v23 = vand.u32 4294901760, %v7512_v1  ;;  %v9138_v56 = vand.u32 4294901760, %v7238_v57  ;;  %v9140_v57 = vand.u32 4294901760, %v7249_v9  ;;  %v9142_v9 = vand.u32 4294901760, %v7260_v13 }
 0x1c8   :  { %3032 = vmatmul.f32.vlgmr.msrb.gmra.mxu0 %v9135_v19  ;;  %3343 = vmatpush.msra.mxu2 %v7458_v32  ;;  %v3411_v62 = vand.u32 4294901760, %v3410_v45  ;;  %v897_v19 = vld [vmem:[#allocation5 + $0x4a0] sm:$0xff]  ;;  %v9141_v45 = vand.u32 4294901760, %v7537_v40  ;;  %v7588_v58 = vsub.f32 %v903_v25, %v7564_v49  ;;  %v7601_v25 = vsub.f32 %v900_v26, %v7577_v44 }
 0x1c9   :  { %3233 = vmatpush.msra.mxu0 %v9136_v47  ;;  %3394 = vmatpush.msra.mxu3 %v3393_v6  ;;  %v3416_v30 = vsub.f32 %v7512_v1, %v9137_v23  ;;  %v9139_v6 = vand.u32 4294901760, %v7525_v27  ;;  %v3433_v23 = vand.u32 4294901760, %v7549_v29  ;;  %v9143_v13 = vand.u32 4294901760, %v7274_v43 }
 0x1ca   :  { %3310 = vmatpush.msra.mxu1 %v7265_v2  ;;  %3345 = vmatpush.msra.mxu2 %v7462_v42  ;;  %v9144_v26 = vand.u32 4294901760, %v7293_v46 }
 0x1cb   :  { %3237 = vmatpush.msra.mxu0 %v9138_v56  ;;  %3400 = vmatpush.msra.mxu3 %v3399_v24  ;;  %v3422_v47 = vsub.f32 %v7525_v27, %v9139_v6  ;;  %v3417_v2 = vand.u32 4294901760, %v3416_v30  ;;  %v3428_v24 = vsub.f32 %v7537_v40, %v9141_v45  ;;  %v3439_v56 = vand.u32 4294901760, %v7562_v5  ;;  %v894_v6 = vld [vmem:[#allocation5 + $0x488] sm:$0xff] }
 0x1cc   :  { %3312 = vmatpush.msra.mxu1 %v7276_v15  ;;  %3347 = vmatpush.msra.mxu2 %v7471_v3  ;;  %v7592_v15 = vand.u32 4294901760, %v897_v19  ;;  %v3434_v30 = vsub.f32 %v7549_v29, %v3433_v23  ;;  %v3451_v45 = vand.u32 4294901760, %v7588_v58 }
 0x1cd   :  { %3241 = vmatpush.msra.mxu0 %v9140_v57  ;;  %3406 = vmatpush.msra.mxu3 %v3405_v10  ;;  %v3423_v10 = vand.u32 4294901760, %v3422_v47  ;;  %v3445_v57 = vand.u32 4294901760, %v7575_v61  ;;  %v3440_v47 = vsub.f32 %v7562_v5, %v3439_v56 }
 0x1ce   :  { %3314 = vmatpush.msra.mxu1 %v7287_v55  ;;  %3349 = vmatpush.msra.mxu2 %v7488_v50  ;;  %v7605_v55 = vand.u32 4294901760, %v894_v6  ;;  %v3435_v43 = vand.u32 4294901760, %v3434_v30 }
 0x1cf   :  { %3245 = vmatpush.msra.mxu0 %v9142_v9  ;;  %3412 = vmatpush.msra.mxu3 %v3411_v62  ;;  %v3429_v62 = vand.u32 4294901760, %v3428_v24  ;;  %v3457_v24 = vand.u32 4294901760, %v7601_v25  ;;  %v3441_v46 = vand.u32 4294901760, %v3440_v47  ;;  %v3452_v9 = vsub.f32 %v7588_v58, %v3451_v45 }
 0x1d0   :  { %3316 = vmatpush.msra.mxu1 %v7307_v41  ;;  %3351 = vmatpush.msra.mxu2 %v7501_v35  ;;  %v7616_v41 = vsub.f32 %v897_v19, %v7592_v15  ;;  %v9145_v19 = vand.u32 4294901760, %v7302_v53  ;;  %v9150_v47 = vand.u32 4294901760, %v7367_v36  ;;  %v9154_v36 = vand.u32 4294901760, %v7391_v22 }
 0x1d1   :  { %3249 = vmatpush.msra.mxu0 %v9143_v13  ;;  %3418 = vmatpush.msra.mxu3 %v3417_v2  ;;  %v3446_v2 = vsub.f32 %v7575_v61, %v3445_v57  ;;  %v3458_v53 = vsub.f32 %v7601_v25, %v3457_v24  ;;  %v3453_v13 = vand.u32 4294901760, %v3452_v9  ;;  %v9159_v22 = vand.u32 4294901760, %v7413_v37  ;;  %v9163_v37 = vld [vmem:[#allocation24_spill] sm:$0xff] }
 0x1d2   :  { %3318 = vmatpush.msra.mxu1 %v7321_v20  ;;  %3353 = vmatpush.msra.mxu2 %v7514_v51  ;;  %v7627_v20 = vsub.f32 %v894_v6, %v7605_v55  ;;  %v9164_v9 = vand.u32 4294901760, %v9163_v37 }
 0x1d3   :  { %3253 = vmatpush.msra.mxu0 %v9144_v26  ;;  %3424 = vmatpush.msra.mxu3 %v3423_v10  ;;  %v9146_v10 = vand.u32 4294901760, %v7315_v63  ;;  %v3447_v6 = vand.u32 4294901760, %v3446_v2  ;;  %v9152_v26 = vld [vmem:[#allocation29_spill] sm:$0xff]  ;;  %v9156_v2 = vand.u32 4294901760, %v7454_v34 }
 0x1d4   :  { %3320 = vmatpush.msra.mxu1 %v7333_v8  ;;  %3355 = vmatpush.msra.mxu2 %v7527_v4  ;;  %v3463_v8 = vand.u32 4294901760, %v7616_v41  ;;  %v3469_v30 = vand.u32 4294901760, %v7627_v20 }
 0x1d5   :  { %3257 = vmatpush.msra.mxu0 %v9145_v19  ;;  %3430 = vmatpush.msra.mxu3 %v3429_v62  ;;  %v9148_v62 = vand.u32 4294901760, %v7343_v17  ;;  %v9158_v19 = vand.u32 4294901760, %v7467_v12 }
 0x1d6   :  { %3322 = vmatpush.msra.mxu1 %v7345_v7  ;;  %3357 = vmatpush.msra.mxu2 %v7539_v48  ;;  %v9147_v7 = vand.u32 4294901760, %v7331_v33  ;;  %v3464_v63 = vsub.f32 %v7616_v41, %v3463_v8  ;;  %v3470_v33 = vsub.f32 %v7627_v20, %v3469_v30 }
 0x1d7   :  { %3261 = vmatpush.msra.mxu0 %v9146_v10  ;;  %3436 = vmatpush.msra.mxu3 %v3435_v43  ;;  %v9155_v43 = vld [vmem:[#allocation26_spill] sm:$0xff]  ;;  %v793_v10 = vld [vmem:[#allocation5 + $0x160] sm:$0xff] }
 0x1d8   :  { %3324 = vmatpush.msra.mxu1 %v7357_v39  ;;  %3359 = vmatpush.msra.mxu2 %v7551_v28  ;;  %v3459_v39 = vand.u32 4294901760, %v3458_v53  ;;  %v3465_v17 = vand.u32 4294901760, %v3464_v63 }
 0x1d9   :  { %3265 = vmatpush.msra.mxu0 %v9147_v7  ;;  %3442 = vmatpush.msra.mxu3 %v3441_v46  ;;  %v9160_v46 = vand.u32 4294901760, %v7476_v16 }
 0x1da   :  { %3326 = vmatpush.msra.mxu1 %v7369_v60  ;;  %3361 = vmatpush.msra.mxu2 %v7564_v49  ;;  %v9149_v60 = vand.u32 4294901760, %v7355_v31  ;;  %v9151_v31 = vand.u32 4294901760, %v7379_v21  ;;  %v9157_v21 = vand.u32 4294901760, %v7403_v18  ;;  %v9161_v18 = vld [vmem:[#allocation19_spill] sm:$0xff] }
 0x1db   :  { %3269 = vmatpush.msra.mxu0 %v9148_v62  ;;  %3448 = vmatpush.msra.mxu3 %v3447_v6  ;;  %v781_v62 = vld [vmem:[#allocation5 + $0x100] sm:$0xff] }
 0x1dc   :  { %3328 = vmatpush.msra.mxu1 %v7381_v38  ;;  %3363 = vmatpush.msra.mxu2 %v7577_v44  ;;  %v3471_v38 = vand.u32 4294901760, %v3470_v33  ;;  %v775_v33 = vld [vmem:[#allocation5 + $0xd0] sm:$0xff] }
 0x1dd   :  { %3273 = vmatpush.msra.mxu0 %v9149_v60  ;;  %3454 = vmatpush.msra.mxu3 %v3453_v13 }
 0x1de   :  { %3330 = vmatpush.msra.mxu1 %v7393_v59  ;;  %3365 = vmatpush.msra.mxu2 %v7592_v15  ;;  %v9153_v59 = vand.u32 4294901760, %v7446_v0 }
 0x1df   :  { %3277 = vmatpush.msra.mxu0 %v9150_v47  ;;  %3460 = vmatpush.msra.mxu3 %v3459_v39  ;;  %v778_v39 = vld [vmem:[#allocation5 + $0xe8] sm:$0xff] }
 0x1e0   :  { %3332 = vmatmul.f32.vlgmr.msra.gmra.mxu1 %v9128_v52  ;;  %3367 = vmatpush.msra.mxu2 %v7605_v55  ;;  %v7768_v60 = vand.u32 4294901760, %v778_v39 }
 0x1e1   :  { %3533 = vmatpush.msrb.mxu1 %v7429_v54  ;;  %3281 = vmatpush.msra.mxu0 %v9151_v31  ;;  %v769_v31 = vld [vmem:[#allocation5 + $0xa0] sm:$0xff] }
 0x1e2   :  { %3466 = vmatpush.msra.mxu3 %v3465_v17  ;;  %3373 = vmatmul.f32.vlgmr.msra.gmra.mxu2 %v9152_v26  ;;  %v772_v17 = vld [vmem:[#allocation5 + $0xb8] sm:$0xff] }
 0x1e3   :  { %3535 = vmatpush.msrb.mxu1 %v7437_v11  ;;  %3574 = vmatpush.msrb.mxu2 %v9153_v59  ;;  %v808_v26 = vld [vmem:[#allocation5 + $0x1d8] sm:$0xff] }
 0x1e4   :  { %3285 = vmatpush.msra.mxu0 %v9154_v36  ;;  %3472 = vmatpush.msra.mxu3 %v3471_v38  ;;  %v7794_v38 = vsub.f32 %v778_v39, %v7768_v60  ;;  %v766_v36 = vld [vmem:[#allocation5 + $0x88] sm:$0xff] }
 0x1e5   :  { %3474 = vmatmul.f32.vlgmr.msra.gmra.mxu3 %v9155_v43  ;;  %3537 = vmatpush.msrb.mxu1 %v7450_v14 }
 0x1e6   :  { %3578 = vmatpush.msrb.mxu2 %v9156_v2  ;;  %3641 = vmatpush.msrb.mxu3 %v7429_v54  ;;  %v9162_v54 = vand.u32 4294901760, %v9161_v18  ;;  %v9168_v2 = vld [vmem:[#allocation28_spill] sm:$0xff] }
 0x1e7   :  { %3289 = vmatpush.msra.mxu0 %v9157_v21  ;;  %3539 = vmatpush.msrb.mxu1 %v7458_v32  ;;  %v7813_v21 = vand.u32 4294901760, %v769_v31 }
 0x1e8   :  { %3582 = vmatpush.msrb.mxu2 %v9158_v19  ;;  %3643 = vmatpush.msrb.mxu3 %v7437_v11  ;;  %v796_v11 = vld [vmem:[#allocation5 + $0x178] sm:$0xff]  ;;  %v8968_v19 = vand.u32 4294901760, %v7794_v38 }
 0x1e9   :  { %3293 = vmatpush.msra.mxu0 %v9159_v22  ;;  %3541 = vmatpush.msrb.mxu1 %v7462_v42  ;;  %v763_v22 = vld [vmem:[#allocation5 + $0x70] sm:$0xff] }
 0x1ea   :  { %3295 = vmatmul.f32.vlgmr.msra.gmra.mxu0 %v9128_v52  ;;  %3586 = vmatpush.msrb.mxu2 %v9160_v46  ;;  %v7825_v46 = vand.u32 4294901760, %v766_v36  ;;  %v9178_v52 = vld [vmem:[#allocation13_spill] sm:$0xff] }
 0x1eb   :  { %3480 = vmatpush.msrb.mxu0 %v7446_v0  ;;  %3645 = vmatpush.msrb.mxu3 %v7450_v14  ;;  %v7705_v14 = vand.u32 4294901760, %v796_v11  ;;  %v9165_v0 = vand.u32 4294901760, %v7512_v1 }
 0x1ec   :  { %3543 = vmatpush.msrb.mxu1 %v7471_v3  ;;  %3590 = vmatpush.msrb.mxu2 %v9162_v54  ;;  %v760_v54 = vld [vmem:[#allocation5 + $0x58] sm:$0xff] }
 0x1ed   :  { %3483 = vmatpush.msrb.mxu0 %v7454_v34  ;;  %3647 = vmatpush.msrb.mxu3 %v7458_v32  ;;  %v790_v34 = vld [vmem:[#allocation5 + $0x148] sm:$0xff]  ;;  %v7712_v32 = vand.u32 4294901760, %v793_v10  ;;  %v7720_v6 = vsub.f32 %v796_v11, %v7705_v14  ;;  %v7835_v11 = vsub.f32 %v769_v31, %v7813_v21 }
 0x1ee   :  { %3545 = vmatpush.msrb.mxu1 %v7488_v50  ;;  %3594 = vmatpush.msrb.mxu2 %v9164_v9  ;;  %v7722_v53 = vand.u32 4294901760, %v790_v34 }
 0x1ef   :  { %3486 = vmatpush.msrb.mxu0 %v7467_v12  ;;  %3649 = vmatpush.msrb.mxu3 %v7462_v42  ;;  %v9166_v12 = vand.u32 4294901760, %v7525_v27  ;;  %v787_v42 = vld [vmem:[#allocation5 + $0x130] sm:$0xff]  ;;  %v7730_v7 = vsub.f32 %v793_v10, %v7712_v32  ;;  %v3757_v10 = vsub.f32 %v7794_v38, %v8968_v19 }
 0x1f0   :  { %3547 = vmatpush.msrb.mxu1 %v7501_v35  ;;  %3598 = vmatpush.msrb.mxu2 %v9165_v0  ;;  %v7732_v13 = vand.u32 4294901760, %v787_v42  ;;  %v7741_v63 = vsub.f32 %v790_v34, %v7722_v53  ;;  %v7847_v0 = vsub.f32 %v766_v36, %v7825_v46  ;;  %v7849_v34 = vand.u32 4294901760, %v760_v54 }
 0x1f1   :  { %3489 = vmatpush.msrb.mxu0 %v7476_v16  ;;  %3651 = vmatpush.msrb.mxu3 %v7471_v3  ;;  %v9167_v3 = vand.u32 4294901760, %v7537_v40  ;;  %v784_v16 = vld [vmem:[#allocation5 + $0x118] sm:$0xff] }
 0x1f2   :  { %3549 = vmatpush.msrb.mxu1 %v7514_v51  ;;  %3602 = vmatpush.msrb.mxu2 %v9166_v12 }
 0x1f3   :  { %3492 = vmatpush.msrb.mxu0 %v9161_v18  ;;  %3653 = vmatpush.msrb.mxu3 %v7488_v50  ;;  %v8975_v50 = vand.u32 4294901760, %v7720_v6 }
 0x1f4   :  { %3551 = vmatpush.msrb.mxu1 %v7527_v4  ;;  %3606 = vmatpush.msrb.mxu2 %v9167_v3 }
 0x1f5   :  { %3495 = vmatpush.msrb.mxu0 %v9163_v37  ;;  %3655 = vmatpush.msrb.mxu3 %v7501_v35  ;;  %v7743_v35 = vand.u32 4294901760, %v784_v16  ;;  %v7837_v37 = vand.u32 4294901760, %v763_v22 }
 0x1f6   :  { %3553 = vmatpush.msrb.mxu1 %v7539_v48  ;;  %3610 = vmatpush.msrb.mxu2 %v3433_v23  ;;  %v7757_v23 = vand.u32 4294901760, %v781_v62 }
 0x1f7   :  { %3498 = vmatpush.msrb.mxu0 %v7512_v1  ;;  %3657 = vmatpush.msrb.mxu3 %v7514_v51  ;;  %v8974_v51 = vand.u32 4294901760, %v7730_v7  ;;  %v7752_v1 = vsub.f32 %v787_v42, %v7732_v13  ;;  %v754_v42 = vld [vmem:[#allocation5 + $0x28] sm:$0xff] }
 0x1f8   :  { %3555 = vmatpush.msrb.mxu1 %v7551_v28  ;;  %3614 = vmatpush.msrb.mxu2 %v3439_v56  ;;  %v7766_v56 = vsub.f32 %v784_v16, %v7743_v35  ;;  %v8965_v16 = vand.u32 4294901760, %v7835_v11 }
 0x1f9   :  { %3501 = vmatpush.msrb.mxu0 %v7525_v27  ;;  %3659 = vmatpush.msrb.mxu3 %v7527_v4  ;;  %v3721_v4 = vsub.f32 %v7720_v6, %v8975_v50  ;;  %v8973_v27 = vand.u32 4294901760, %v7741_v63  ;;  %v814_v50 = vld [vmem:[#allocation5 + $0x208] sm:$0xff] }
 0x1fa   :  { %3557 = vmatpush.msrb.mxu1 %v7564_v49  ;;  %3618 = vmatpush.msrb.mxu2 %v3445_v57  ;;  %v7779_v57 = vand.u32 4294901760, %v775_v33  ;;  %v8971_v47 = vand.u32 4294901760, %v7766_v56  ;;  %v3775_v31 = vsub.f32 %v7835_v11, %v8965_v16 }
 0x1fb   :  { %3504 = vmatpush.msrb.mxu0 %v7537_v40  ;;  %3661 = vmatpush.msrb.mxu3 %v7539_v48  ;;  %v3727_v48 = vsub.f32 %v7730_v7, %v8974_v51  ;;  %v8972_v40 = vand.u32 4294901760, %v7752_v1 }
 0x1fc   :  { %3559 = vmatpush.msrb.mxu1 %v7577_v44  ;;  %3622 = vmatpush.msrb.mxu2 %v3451_v45  ;;  %v7785_v45 = vsub.f32 %v781_v62, %v7757_v23  ;;  %v7807_v59 = vsub.f32 %v775_v33, %v7779_v57  ;;  %v7859_v62 = vsub.f32 %v763_v22, %v7837_v37  ;;  %v751_v33 = vld [vmem:[#allocation5 + $0x10] sm:$0xff] }
 0x1fd   :  { %3507 = vmatpush.msrb.mxu0 %v7549_v29  ;;  %3663 = vmatpush.msrb.mxu3 %v7551_v28  ;;  %v3722_v28 = vand.u32 4294901760, %v3721_v4  ;;  %v3733_v29 = vsub.f32 %v7741_v63, %v8973_v27  ;;  %v9169_v4 = vld [vmem:[#allocation27_spill] sm:$0xff]  ;;  %v7885_v36 = vand.u32 4294901760, %v751_v33 }
 0x1fe   :  { %3561 = vmatpush.msrb.mxu1 %v7592_v15  ;;  %3626 = vmatpush.msrb.mxu2 %v3457_v24  ;;  %v7799_v24 = vand.u32 4294901760, %v772_v17  ;;  %v8967_v18 = vand.u32 4294901760, %v7807_v59  ;;  %v9173_v27 = vld [vmem:[#allocation11_spill] sm:$0xff] }
 0x1ff   :  { %3510 = vmatpush.msrb.mxu0 %v7562_v5  ;;  %3665 = vmatpush.msrb.mxu3 %v7564_v49  ;;  %v3728_v49 = vand.u32 4294901760, %v3727_v48  ;;  %v3739_v5 = vsub.f32 %v7752_v1, %v8972_v40 }
 0x200   :  { %3563 = vmatpush.msrb.mxu1 %v7605_v55  ;;  %3630 = vmatpush.msrb.mxu2 %v3463_v8  ;;  %v8969_v8 = vand.u32 4294901760, %v7785_v45  ;;  %v3763_v12 = vsub.f32 %v7807_v59, %v8967_v18  ;;  %v823_v18 = vld [vmem:[#allocation5 + $0x250] sm:$0xff] }
 0x201   :  { %3513 = vmatpush.msrb.mxu0 %v7575_v61  ;;  %3667 = vmatpush.msrb.mxu3 %v7577_v44  ;;  %v3734_v44 = vand.u32 4294901760, %v3733_v29  ;;  %v3745_v61 = vsub.f32 %v7766_v56, %v8971_v47  ;;  %v7873_v29 = vand.u32 4294901760, %v754_v42  ;;  %v7993_v40 = vand.u32 4294901760, %v823_v18 }
 0x202   :  { %3567 = vmatmul.f32.vlgmr.msrb.gmra.mxu1 %v9168_v2  ;;  %3634 = vmatpush.msrb.mxu2 %v3469_v30  ;;  %v7823_v30 = vsub.f32 %v772_v17, %v7799_v24  ;;  %v8964_v17 = vand.u32 4294901760, %v7847_v0 }
 0x203   :  { %3723 = vmatpush.msra.mxu1 %v3722_v28  ;;  %3516 = vmatpush.msrb.mxu0 %v7588_v58  ;;  %v3740_v58 = vand.u32 4294901760, %v3739_v5  ;;  %v3746_v9 = vand.u32 4294901760, %v3745_v61  ;;  %v7871_v28 = vsub.f32 %v760_v54, %v7849_v34  ;;  %v3776_v54 = vand.u32 4294901760, %v3775_v31 }
 0x204   :  { %3669 = vmatpush.msrb.mxu3 %v7592_v15  ;;  %3636 = vmatmul.f32.vlgmr.msrb.gmra.mxu2 %v9155_v43  ;;  %v3751_v15 = vsub.f32 %v7785_v45, %v8969_v8  ;;  %v3781_v61 = vsub.f32 %v7847_v0, %v8964_v17 }
 0x205   :  { %3729 = vmatpush.msra.mxu1 %v3728_v49  ;;  %3821 = vmatpush.msra.mxu2 %v7720_v6  ;;  %v8962_v49 = vand.u32 4294901760, %v7859_v62  ;;  %v8960_v22 = vand.u32 4294901760, %v7871_v28 }
 0x206   :  { %3519 = vmatpush.msrb.mxu0 %v7601_v25  ;;  %3671 = vmatpush.msrb.mxu3 %v7605_v55  ;;  %v757_v25 = vld [vmem:[#allocation5 + $0x40] sm:$0xff]  ;;  %v8966_v55 = vand.u32 4294901760, %v7823_v30  ;;  %v3752_v3 = vand.u32 4294901760, %v3751_v15 }
 0x207   :  { %3673 = vmatmul.f32.vlgmr.msrb.gmra.mxu3 %v9155_v43  ;;  %3735 = vmatpush.msra.mxu1 %v3734_v44  ;;  %v7861_v39 = vand.u32 4294901760, %v757_v25  ;;  %v3787_v15 = vsub.f32 %v7859_v62, %v8962_v49  ;;  %v832_v49 = vld [vmem:[#allocation5 + $0x298] sm:$0xff]  ;;  %v811_v43 = vld [vmem:[#allocation5 + $0x1f0] sm:$0xff] }
 0x208   :  { %3824 = vmatpush.msra.mxu2 %v7730_v7  ;;  %3874 = vmatpush.msra.mxu3 %v7705_v14  ;;  %v3769_v48 = vsub.f32 %v7823_v30, %v8966_v55  ;;  %v826_v55 = vld [vmem:[#allocation5 + $0x268] sm:$0xff] }
 0x209   :  { %3522 = vmatpush.msrb.mxu0 %v7616_v41  ;;  %3741 = vmatpush.msra.mxu1 %v3740_v58  ;;  %v3758_v41 = vand.u32 4294901760, %v3757_v10  ;;  %v7883_v5 = vsub.f32 %v757_v25, %v7861_v39  ;;  %v7895_v58 = vsub.f32 %v754_v42, %v7873_v29  ;;  %v7905_v10 = vsub.f32 %v751_v33, %v7885_v36  ;;  %v844_v25 = vld [vmem:[#allocation5 + $0x2f8] sm:$0xff] }
 0x20a   :  { %3827 = vmatpush.msra.mxu2 %v7741_v63  ;;  %3876 = vmatpush.msra.mxu3 %v7712_v32  ;;  %v3770_v44 = vand.u32 4294901760, %v3769_v48  ;;  %v3793_v42 = vsub.f32 %v7871_v28, %v8960_v22  ;;  %v3788_v33 = vand.u32 4294901760, %v3787_v15  ;;  %v7921_v31 = vand.u32 4294901760, %v844_v25  ;;  %v838_v15 = vld [vmem:[#allocation5 + $0x2c8] sm:$0xff]  ;;  %v835_v22 = vld [vmem:[#allocation5 + $0x2b0] sm:$0xff] }
 0x20b   :  { %3525 = vmatpush.msrb.mxu0 %v7627_v20  ;;  %3747 = vmatpush.msra.mxu1 %v3746_v9  ;;  %v3764_v20 = vand.u32 4294901760, %v3763_v12  ;;  %v8959_v9 = vand.u32 4294901760, %v7883_v5  ;;  %v3782_v12 = vand.u32 4294901760, %v3781_v61  ;;  %v7980_v8 = vand.u32 4294901760, %v826_v55 }
 0x20c   :  { %3528 = vmatmul.f32.vlgmr.msrb.gmra.mxu0 %v9169_v4  ;;  %3830 = vmatpush.msra.mxu2 %v7752_v1 }
 0x20d   :  { %3678 = vmatpush.msra.mxu0 %v7705_v14  ;;  %3878 = vmatpush.msra.mxu3 %v7722_v53  ;;  %v3799_v48 = vsub.f32 %v7883_v5, %v8959_v9 }
 0x20e   :  { %3753 = vmatpush.msra.mxu1 %v3752_v3  ;;  %3833 = vmatpush.msra.mxu2 %v7766_v56  ;;  %v8961_v3 = vand.u32 4294901760, %v7895_v58 }
 0x20f   :  { %3680 = vmatpush.msra.mxu0 %v7712_v32  ;;  %3880 = vmatpush.msra.mxu3 %v7732_v13  ;;  %v3800_v9 = vand.u32 4294901760, %v3799_v48 }
 0x210   :  { %3759 = vmatpush.msra.mxu1 %v3758_v41  ;;  %3836 = vmatpush.msra.mxu2 %v7785_v45  ;;  %v841_v41 = vld [vmem:[#allocation5 + $0x2e0] sm:$0xff]  ;;  %v3805_v61 = vsub.f32 %v7895_v58, %v8961_v3  ;;  %v7942_v3 = vand.u32 4294901760, %v838_v15 }
 0x211   :  { %3682 = vmatpush.msra.mxu0 %v7722_v53  ;;  %3882 = vmatpush.msra.mxu3 %v7743_v35 }
 0x212   :  { %3765 = vmatpush.msra.mxu1 %v3764_v20  ;;  %3839 = vmatpush.msra.mxu2 %v7794_v38  ;;  %v8963_v20 = vand.u32 4294901760, %v7905_v10 }
 0x213   :  { %3684 = vmatpush.msra.mxu0 %v7732_v13  ;;  %3884 = vmatpush.msra.mxu3 %v7757_v23 }
 0x214   :  { %3771 = vmatpush.msra.mxu1 %v3770_v44  ;;  %3842 = vmatpush.msra.mxu2 %v7807_v59  ;;  %v3794_v44 = vand.u32 4294901760, %v3793_v42  ;;  %v7938_v42 = vsub.f32 %v844_v25, %v7921_v31  ;;  %v7950_v25 = vand.u32 4294901760, %v835_v22 }
 0x215   :  { %3686 = vmatpush.msra.mxu0 %v7743_v35  ;;  %3886 = vmatpush.msra.mxu3 %v7768_v60 }
 0x216   :  { %3777 = vmatpush.msra.mxu1 %v3776_v54  ;;  %3845 = vmatpush.msra.mxu2 %v7823_v30  ;;  %v7929_v54 = vand.u32 4294901760, %v841_v41  ;;  %v8970_v16 = vand.u32 4294901760, %v7938_v42 }
 0x217   :  { %3688 = vmatpush.msra.mxu0 %v7757_v23  ;;  %3888 = vmatpush.msra.mxu3 %v7779_v57 }
 0x218   :  { %3783 = vmatpush.msra.mxu1 %v3782_v12  ;;  %3848 = vmatpush.msra.mxu2 %v7835_v11  ;;  %v3811_v12 = vsub.f32 %v7905_v10, %v8963_v20  ;;  %v7946_v48 = vsub.f32 %v841_v41, %v7929_v54  ;;  %v829_v20 = vld [vmem:[#allocation5 + $0x280] sm:$0xff]  ;;  %v7959_v41 = vsub.f32 %v838_v15, %v7942_v3 }
 0x219   :  { %3690 = vmatpush.msra.mxu0 %v7768_v60  ;;  %3890 = vmatpush.msra.mxu3 %v7799_v24  ;;  %v4062_v15 = vsub.f32 %v7938_v42, %v8970_v16  ;;  %v820_v16 = vld [vmem:[#allocation5 + $0x238] sm:$0xff] }
 0x21a   :  { %3789 = vmatpush.msra.mxu1 %v3788_v33  ;;  %3851 = vmatpush.msra.mxu2 %v7847_v0  ;;  %v3806_v33 = vand.u32 4294901760, %v3805_v61  ;;  %v3812_v17 = vand.u32 4294901760, %v3811_v12  ;;  %v8976_v61 = vand.u32 4294901760, %v7946_v48  ;;  %v7968_v12 = vsub.f32 %v835_v22, %v7950_v25  ;;  %v9171_v22 = vld [vmem:[#allocation10_spill] sm:$0xff] }
 0x21b   :  { %3692 = vmatpush.msra.mxu0 %v7779_v57  ;;  %3892 = vmatpush.msra.mxu3 %v7813_v21  ;;  %v8977_v19 = vand.u32 4294901760, %v7959_v41  ;;  %v4063_v51 = vand.u32 4294901760, %v4062_v15  ;;  %v8006_v47 = vand.u32 4294901760, %v820_v16 }
 0x21c   :  { %3795 = vmatpush.msra.mxu1 %v3794_v44  ;;  %3854 = vmatpush.msra.mxu2 %v7859_v62  ;;  %v7954_v44 = vand.u32 4294901760, %v832_v49  ;;  %v9175_v4 = vand.u32 4294901760, %v7968_v12 }
 0x21d   :  { %3694 = vmatpush.msra.mxu0 %v7799_v24  ;;  %3894 = vmatpush.msra.mxu3 %v7825_v46 }
 0x21e   :  { %3801 = vmatpush.msra.mxu1 %v3800_v9  ;;  %3857 = vmatpush.msra.mxu2 %v7871_v28  ;;  %v7963_v9 = vand.u32 4294901760, %v829_v20 }
 0x21f   :  { %3696 = vmatpush.msra.mxu0 %v7813_v21  ;;  %3896 = vmatpush.msra.mxu3 %v7837_v37 }
 0x220   :  { %3807 = vmatpush.msra.mxu1 %v3806_v33  ;;  %3860 = vmatpush.msra.mxu2 %v7883_v5  ;;  %v7975_v33 = vsub.f32 %v832_v49, %v7954_v44  ;;  %v7988_v49 = vsub.f32 %v829_v20, %v7963_v9  ;;  %v8004_v20 = vsub.f32 %v826_v55, %v7980_v8 }
 0x221   :  { %3698 = vmatpush.msra.mxu0 %v7825_v46  ;;  %3898 = vmatpush.msra.mxu3 %v7849_v34  ;;  %v8017_v55 = vsub.f32 %v823_v18, %v7993_v40  ;;  %v8029_v18 = vsub.f32 %v820_v16, %v8006_v47 }
 0x222   :  { %3813 = vmatpush.msra.mxu1 %v3812_v17  ;;  %3863 = vmatpush.msra.mxu2 %v7895_v58  ;;  %9170 = vst [vmem:[#allocation18_spill] sm:$0xff] %v7975_v33  ;;  %v4068_v17 = vsub.f32 %v7946_v48, %v8976_v61  ;;  %v817_v61 = vld [vmem:[#allocation5 + $0x220] sm:$0xff] }
 0x223   :  { %3700 = vmatpush.msra.mxu0 %v7837_v37  ;;  %3900 = vmatpush.msra.mxu3 %v7861_v39  ;;  %9172 = vst [vmem:[#allocation22_spill] sm:$0xff] %v7988_v49  ;;  %v8019_v2 = vand.u32 4294901760, %v817_v61 }
 0x224   :  { %3815 = vmatmul.f32.vlgmr.msra.gmra.mxu1 %v9171_v22  ;;  %3866 = vmatpush.msra.mxu2 %v7905_v10 }
 0x225   :  { %3982 = vmatpush.msrb.mxu1 %v7705_v14  ;;  %3702 = vmatpush.msra.mxu0 %v7849_v34  ;;  %v4074_v14 = vsub.f32 %v7959_v41, %v8977_v19  ;;  %v4080_v19 = vsub.f32 %v7968_v12, %v9175_v4  ;;  %v8041_v16 = vsub.f32 %v817_v61, %v8019_v2  ;;  %v8043_v4 = vand.u32 4294901760, %v811_v43 }
 0x226   :  { %3902 = vmatpush.msra.mxu3 %v7873_v29  ;;  %3869 = vmatmul.f32.vlgmr.msra.gmra.mxu2 %v9173_v27  ;;  %v4069_v27 = vand.u32 4294901760, %v4068_v17  ;;  %v9176_v17 = vand.u32 4294901760, %v7975_v33 }
 0x227   :  { %3984 = vmatpush.msrb.mxu1 %v7712_v32  ;;  %4019 = vmatpush.msrb.mxu2 %v7921_v31  ;;  %v9174_v32 = vld [vmem:[#allocation12_spill] sm:$0xff] }
 0x228   :  { %3704 = vmatpush.msra.mxu0 %v7861_v39  ;;  %3904 = vmatpush.msra.mxu3 %v7885_v36  ;;  %v4086_v15 = vsub.f32 %v7975_v33, %v9176_v17  ;;  %v805_v33 = vld [vmem:[#allocation5 + $0x1c0] sm:$0xff] }
 0x229   :  { %3908 = vmatmul.f32.vlgmr.msra.gmra.mxu3 %v9174_v32  ;;  %3986 = vmatpush.msrb.mxu1 %v7722_v53  ;;  %v4075_v53 = vand.u32 4294901760, %v4074_v14  ;;  %v8031_v32 = vand.u32 4294901760, %v814_v50  ;;  %v802_v14 = vld [vmem:[#allocation5 + $0x1a8] sm:$0xff] }
 0x22a   :  { %4021 = vmatpush.msrb.mxu2 %v7929_v54  ;;  %4064 = vmatpush.msrb.mxu3 %v4063_v51  ;;  %v9177_v51 = vand.u32 4294901760, %v7988_v49 }
 0x22b   :  { %3706 = vmatpush.msra.mxu0 %v7873_v29  ;;  %3988 = vmatpush.msrb.mxu1 %v7732_v13  ;;  %v4081_v13 = vand.u32 4294901760, %v4080_v19  ;;  %v8054_v61 = vsub.f32 %v814_v50, %v8031_v32  ;;  %v8067_v50 = vsub.f32 %v811_v43, %v8043_v4 }
 0x22c   :  { %4023 = vmatpush.msrb.mxu2 %v7942_v3  ;;  %4070 = vmatpush.msrb.mxu3 %v4069_v27  ;;  %v4092_v17 = vsub.f32 %v7988_v49, %v9177_v51  ;;  %v4087_v27 = vand.u32 4294901760, %v4086_v15  ;;  %v9179_v51 = vand.u32 4294901760, %v7720_v6  ;;  %v8056_v49 = vand.u32 4294901760, %v808_v26 }
 0x22d   :  { %3708 = vmatpush.msra.mxu0 %v7885_v36  ;;  %3990 = vmatpush.msrb.mxu1 %v7743_v35  ;;  %v9180_v35 = vand.u32 4294901760, %v8004_v20  ;;  %v9181_v6 = vand.u32 4294901760, %v7730_v7  ;;  %v9182_v15 = vand.u32 4294901760, %v8017_v55  ;;  %v9183_v7 = vand.u32 4294901760, %v7741_v63 }
 0x22e   :  { %3714 = vmatmul.f32.vlgmr.msra.gmra.mxu0 %v9178_v52  ;;  %4025 = vmatpush.msrb.mxu2 %v7950_v25  ;;  %v4093_v52 = vand.u32 4294901760, %v4092_v17  ;;  %v4121_v43 = vand.u32 4294901760, %v8054_v61  ;;  %v9185_v63 = vand.u32 4294901760, %v7752_v1  ;;  %v9187_v1 = vand.u32 4294901760, %v7766_v56 }
 0x22f   :  { %3915 = vmatpush.msrb.mxu0 %v9179_v51  ;;  %4076 = vmatpush.msrb.mxu3 %v4075_v53  ;;  %v4098_v19 = vsub.f32 %v8004_v20, %v9180_v35  ;;  %v4104_v53 = vsub.f32 %v8017_v55, %v9182_v15  ;;  %v8069_v35 = vand.u32 4294901760, %v805_v33  ;;  %v8082_v15 = vsub.f32 %v808_v26, %v8056_v49  ;;  %v799_v51 = vld [vmem:[#allocation5 + $0x190] sm:$0xff] }
 0x230   :  { %3992 = vmatpush.msrb.mxu1 %v7757_v23  ;;  %4027 = vmatpush.msrb.mxu2 %v7954_v44  ;;  %v8071_v23 = vpop.f32.mrf.mxu0  ;;  %v9188_v56 = vand.u32 4294901760, %v7785_v45 }
 0x231   :  { %3919 = vmatpush.msrb.mxu0 %v9181_v6  ;;  %4082 = vmatpush.msrb.mxu3 %v4081_v13  ;;  %v4099_v17 = vand.u32 4294901760, %v4098_v19  ;;  %v9184_v13 = vand.u32 4294901760, %v8029_v18  ;;  %v9186_v19 = vand.u32 4294901760, %v8041_v16  ;;  %v8095_v26 = vsub.f32 %v805_v33, %v8069_v35 }
 0x232   :  { %3994 = vmatpush.msrb.mxu1 %v7768_v60  ;;  %4029 = vmatpush.msrb.mxu2 %v7963_v9  ;;  %v8086_v60 = vand.u32 4294901760, %v802_v14 }
 0x233   :  { %3923 = vmatpush.msrb.mxu0 %v9183_v7  ;;  %4088 = vmatpush.msrb.mxu3 %v4087_v27  ;;  %v4110_v6 = vsub.f32 %v8029_v18, %v9184_v13  ;;  %v4105_v27 = vand.u32 4294901760, %v4104_v53  ;;  %v4116_v7 = vsub.f32 %v8041_v16, %v9186_v19  ;;  %v4127_v13 = vand.u32 4294901760, %v8067_v50  ;;  %v8107_v19 = vpop.f32.mrf.mxu1 }
 0x234   :  { %3996 = vmatpush.msrb.mxu1 %v7779_v57  ;;  %4031 = vmatpush.msrb.mxu2 %v7980_v8  ;;  %v8099_v57 = vand.u32 4294901760, %v799_v51  ;;  %v4122_v53 = vsub.f32 %v8054_v61, %v4121_v43 }
 0x235   :  { %3927 = vmatpush.msrb.mxu0 %v9185_v63  ;;  %4094 = vmatpush.msrb.mxu3 %v4093_v52  ;;  %v4111_v52 = vand.u32 4294901760, %v4110_v6  ;;  %v4133_v63 = vand.u32 4294901760, %v8082_v15  ;;  %v4117_v33 = vand.u32 4294901760, %v4116_v7  ;;  %v4139_v6 = vand.u32 4294901760, %v8095_v26 }
 0x236   :  { %3998 = vmatpush.msrb.mxu1 %v7799_v24  ;;  %4033 = vmatpush.msrb.mxu2 %v7993_v40  ;;  %v8112_v24 = vsub.f32 %v802_v14, %v8086_v60  ;;  %v9189_v14 = vand.u32 4294901760, %v7794_v38  ;;  %v4123_v45 = vand.u32 4294901760, %v4122_v53  ;;  %v9191_v53 = vand.u32 4294901760, %v7823_v30 }
 0x237   :  { %3931 = vmatpush.msrb.mxu0 %v9187_v1  ;;  %4100 = vmatpush.msrb.mxu3 %v4099_v17  ;;  %v4128_v17 = vsub.f32 %v8067_v50, %v4127_v13  ;;  %v4140_v1 = vsub.f32 %v8095_v26, %v4139_v6 }
 0x238   :  { %4000 = vmatpush.msrb.mxu1 %v7813_v21  ;;  %4035 = vmatpush.msrb.mxu2 %v8006_v47  ;;  %v8123_v21 = vsub.f32 %v799_v51, %v8099_v57  ;;  %v8130_v7 = vpop.f32.mrf.mxu0  ;;  %v9190_v51 = vand.u32 4294901760, %v7807_v59 }
 0x239   :  { %3935 = vmatpush.msrb.mxu0 %v9188_v56  ;;  %4106 = vmatpush.msrb.mxu3 %v4105_v27  ;;  %v4134_v27 = vsub.f32 %v8082_v15, %v4133_v63  ;;  %v4129_v38 = vand.u32 4294901760, %v4128_v17 }
 0x23a   :  { %4002 = vmatpush.msrb.mxu1 %v7825_v46  ;;  %4037 = vmatpush.msrb.mxu2 %v8019_v2  ;;  %v4145_v46 = vand.u32 4294901760, %v8112_v24 }
 0x23b   :  { %3939 = vmatpush.msrb.mxu0 %v9189_v14  ;;  %4112 = vmatpush.msrb.mxu3 %v4111_v52  ;;  %v8140_v52 = vpop.f32.mrf.mxu2  ;;  %v4135_v59 = vand.u32 4294901760, %v4134_v27  ;;  %v8154_v17 = vpop.f32.mrf.mxu1  ;;  %v9194_v27 = vand.u32 4294901760, %v7859_v62  ;;  %v9197_v62 = vand.u32 4294901760, %v7938_v42 }
 0x23c   :  { %4004 = vmatpush.msrb.mxu1 %v7837_v37  ;;  %4039 = vmatpush.msrb.mxu2 %v8031_v32  ;;  %v8985_v37 = vand.u32 4294901760, %v8123_v21  ;;  %v4146_v56 = vsub.f32 %v8112_v24, %v4145_v46  ;;  %v8156_v14 = vpop.f32.mrf.mxu3 }
 0x23d   :  { %3943 = vmatpush.msrb.mxu0 %v9190_v51  ;;  %4118 = vmatpush.msrb.mxu3 %v4117_v33  ;;  %v9192_v33 = vand.u32 4294901760, %v7835_v11  ;;  %v9195_v51 = vand.u32 4294901760, %v7871_v28 }
 0x23e   :  { %4006 = vmatpush.msrb.mxu1 %v7849_v34  ;;  %4041 = vmatpush.msrb.mxu2 %v8043_v4  ;;  %v4141_v34 = vand.u32 4294901760, %v4140_v1  ;;  %v4152_v30 = vsub.f32 %v8123_v21, %v8985_v37 }
 0x23f   :  { %3947 = vmatpush.msrb.mxu0 %v9191_v53  ;;  %4124 = vmatpush.msrb.mxu3 %v4123_v45  ;;  %v4147_v45 = vand.u32 4294901760, %v4146_v56  ;;  %v9198_v53 = vand.u32 4294901760, %v7883_v5  ;;  %v9200_v56 = vand.u32 4294901760, %v7946_v48  ;;  %v9202_v5 = vand.u32 4294901760, %v7959_v41 }
 0x240   :  { %4008 = vmatpush.msrb.mxu1 %v7861_v39  ;;  %4043 = vmatpush.msrb.mxu2 %v8056_v49  ;;  %v9193_v39 = vand.u32 4294901760, %v7847_v0  ;;  %v8165_v11 = vpop.f32.mrf.mxu0  ;;  %v4153_v0 = vand.u32 4294901760, %v4152_v30  ;;  %v9203_v30 = vand.u32 4294901760, %v7905_v10 }
 0x241   :  { %3951 = vmatpush.msrb.mxu0 %v9192_v33  ;;  %4130 = vmatpush.msrb.mxu3 %v4129_v38  ;;  %v9201_v33 = vand.u32 4294901760, %v7895_v58 }
 0x242   :  { %4010 = vmatpush.msrb.mxu1 %v7873_v29  ;;  %4045 = vmatpush.msrb.mxu2 %v8069_v35 }
 0x243   :  { %3955 = vmatpush.msrb.mxu0 %v9193_v39  ;;  %4136 = vmatpush.msrb.mxu3 %v4135_v59  ;;  %v8171_v29 = vpop.f32.mrf.mxu2  ;;  %v8184_v1 = vpop.f32.mrf.mxu1  ;;  %v9199_v59 = vld [vmem:[#allocation14_spill] sm:$0xff] }
 0x244   :  { %4012 = vmatpush.msrb.mxu1 %v7885_v36  ;;  %4047 = vmatpush.msrb.mxu2 %v8086_v60  ;;  %v9196_v36 = vld [vmem:[#allocation17_spill] sm:$0xff]  ;;  %v8182_v38 = vpop.f32.mrf.mxu3 }
 0x245   :  { %3959 = vmatpush.msrb.mxu0 %v9194_v27  ;;  %4142 = vmatpush.msrb.mxu3 %v4141_v34  ;;  %v889_v27 = vld [vmem:[#allocation5 + $0x460] sm:$0xff] }
 0x246   :  { %4014 = vmatmul.f32.vlgmr.msrb.gmra.mxu1 %v9171_v22  ;;  %4049 = vmatpush.msrb.mxu2 %v8099_v57 }
 0x247   :  { %4215 = vmatpush.msra.mxu1 %v7921_v31  ;;  %3963 = vmatpush.msrb.mxu0 %v9195_v51 }
 0x248   :  { %4148 = vmatpush.msrb.mxu3 %v4147_v45  ;;  %4055 = vmatmul.f32.vlgmr.msrb.gmra.mxu2 %v9196_v36  ;;  %v8190_v28 = vpop.f32.mrf.mxu0  ;;  %v892_v45 = vld [vmem:[#allocation5 + $0x478] sm:$0xff]  ;;  %v8236_v36 = vand.u32 4294901760, %v889_v27 }
 0x249   :  { %4217 = vmatpush.msra.mxu1 %v7929_v54  ;;  %4256 = vmatpush.msra.mxu2 %v9197_v62  ;;  %v8244_v62 = vld [vmem:[%s8841_s4] sm:$0x7] }
 0x24a   :  { %3967 = vmatpush.msrb.mxu0 %v9198_v53  ;;  %4154 = vmatpush.msrb.mxu3 %v4153_v0  ;;  %v8227_v0 = vand.u32 4294901760, %v892_v45 }
 0x24b   :  { %4156 = vmatmul.f32.vlgmr.msrb.gmra.mxu3 %v9199_v59  ;;  %4219 = vmatpush.msra.mxu1 %v7942_v3  ;;  %v8198_v34 = vpop.f32.mrf.mxu2  ;;  %v8213_v39 = vpop.f32.mrf.mxu1 }
 0x24c   :  { %4260 = vmatpush.msra.mxu2 %v9200_v56  ;;  %4323 = vmatpush.msra.mxu3 %v7921_v31  ;;  %v9204_v31 = vand.u32 4294901760, %v7968_v12  ;;  %v8211_v58 = vpop.f32.mrf.mxu3 }
 0x24d   :  { %3971 = vmatpush.msrb.mxu0 %v9201_v33  ;;  %4221 = vmatpush.msra.mxu1 %v7950_v25  ;;  %v9211_v33 = vand.u32 4294901760, %v8029_v18 }
 0x24e   :  { %4264 = vmatpush.msra.mxu2 %v9202_v5  ;;  %4325 = vmatpush.msra.mxu3 %v7929_v54  ;;  %v9205_v54 = vld [vmem:[#allocation18_spill] sm:$0xff] }
 0x24f   :  { %3975 = vmatpush.msrb.mxu0 %v9203_v30  ;;  %4223 = vmatpush.msra.mxu1 %v7954_v44  ;;  %v9206_v10 = vand.u32 4294901760, %v9205_v54  ;;  %v880_v5 = vld [vmem:[#allocation5 + $0x418] sm:$0xff] }
 0x250   :  { %3977 = vmatmul.f32.vlgmr.msrb.gmra.mxu0 %v9171_v22  ;;  %4268 = vmatpush.msra.mxu2 %v9204_v31  ;;  %v8220_v22 = vpop.f32.mrf.mxu0  ;;  %v943_v31 = vperm.slane %v8244_v62, 0 }
 0x251   :  { %4162 = vmatpush.msra.mxu0 %v7938_v42  ;;  %4327 = vmatpush.msra.mxu3 %v7942_v3  ;;  %v9207_v42 = vld [vmem:[#allocation22_spill] sm:$0xff] }
 0x252   :  { %4225 = vmatpush.msra.mxu1 %v7963_v9  ;;  %4272 = vmatpush.msra.mxu2 %v9206_v10  ;;  %v9208_v3 = vand.u32 4294901760, %v9207_v42  ;;  %v9213_v10 = vand.u32 4294901760, %v8041_v16 }
 0x253   :  { %4165 = vmatpush.msra.mxu0 %v7946_v48  ;;  %4329 = vmatpush.msra.mxu3 %v7950_v25  ;;  %v8229_v51 = vpop.f32.mrf.mxu2  ;;  %v9209_v48 = vand.u32 4294901760, %v8004_v20  ;;  %v886_v25 = vld [vmem:[#allocation5 + $0x448] sm:$0xff]  ;;  %v8255_v56 = vpop.f32.mrf.mxu1 }
 0x254   :  { %4227 = vmatpush.msra.mxu1 %v7980_v8  ;;  %4276 = vmatpush.msra.mxu2 %v9208_v3  ;;  %v8253_v53 = vpop.f32.mrf.mxu3  ;;  %v877_v3 = vld [vmem:[#allocation5 + $0x400] sm:$0xff] }
 0x255   :  { %4168 = vmatpush.msra.mxu0 %v7959_v41  ;;  %4331 = vmatpush.msra.mxu3 %v7954_v44  ;;  %v9210_v44 = vand.u32 4294901760, %v8017_v55  ;;  %v883_v41 = vld [vmem:[#allocation5 + $0x430] sm:$0xff] }
 0x256   :  { %4229 = vmatpush.msra.mxu1 %v7993_v40  ;;  %4280 = vmatpush.msra.mxu2 %v9209_v48  ;;  %v8265_v30 = vand.u32 4294901760, %v883_v41  ;;  %v874_v48 = vld [vmem:[#allocation5 + $0x3e8] sm:$0xff] }
 0x257   :  { %4171 = vmatpush.msra.mxu0 %v7968_v12  ;;  %4333 = vmatpush.msra.mxu3 %v7963_v9  ;;  %v8249_v12 = vsub.f32 %v892_v45, %v8227_v0  ;;  %v8251_v9 = vand.u32 4294901760, %v886_v25 }
 0x258   :  { %4231 = vmatpush.msra.mxu1 %v8006_v47  ;;  %4284 = vmatpush.msra.mxu2 %v9210_v44  ;;  %v8296_v44 = vand.u32 4294901760, %v877_v3 }
 0x259   :  { %4174 = vmatpush.msra.mxu0 %v9205_v54  ;;  %4335 = vmatpush.msra.mxu3 %v7980_v8  ;;  %v8263_v8 = vsub.f32 %v889_v27, %v8236_v36  ;;  %v8268_v54 = vpop.f32.mrf.mxu0  ;;  %v8277_v45 = vsub.f32 %v886_v25, %v8251_v9  ;;  %v988_v25 = vadd.f32 %v8071_v23, %v943_v31 }
 0x25a   :  { %4233 = vmatpush.msra.mxu1 %v8019_v2  ;;  %4288 = vmatpush.msra.mxu2 %v9211_v33  ;;  %9212 = vst [vmem:[#allocation19_spill] sm:$0xff] %v8268_v54  ;;  %v925_v54 = vld [vmem:[#allocation5 + $0x580] sm:$0xff] }
 0x25b   :  { %4177 = vmatpush.msra.mxu0 %v9207_v42  ;;  %4337 = vmatpush.msra.mxu3 %v7993_v40  ;;  %v8984_v40 = vand.u32 4294901760, %v8249_v12  ;;  %v8279_v42 = vand.u32 4294901760, %v880_v5  ;;  %v8281_v27 = vpop.f32.mrf.mxu2 }
 0x25c   :  { %4235 = vmatpush.msra.mxu1 %v8031_v32  ;;  %4292 = vmatpush.msra.mxu2 %v9213_v10  ;;  %v8309_v33 = vpop.f32.mrf.mxu3  ;;  %v868_v10 = vld [vmem:[#allocation5 + $0x3b8] sm:$0xff] }
 0x25d   :  { %4180 = vmatpush.msra.mxu0 %v8004_v20  ;;  %4339 = vmatpush.msra.mxu3 %v8006_v47  ;;  %v8986_v47 = vand.u32 4294901760, %v8263_v8  ;;  %v8290_v20 = vsub.f32 %v883_v41, %v8265_v30  ;;  %v8305_v23 = vsub.f32 %v880_v5, %v8279_v42  ;;  %v8307_v41 = vand.u32 4294901760, %v874_v48 }
 0x25e   :  { %4237 = vmatpush.msra.mxu1 %v8043_v4  ;;  %4296 = vmatpush.msra.mxu2 %v4121_v43  ;;  %v871_v43 = vld [vmem:[#allocation5 + $0x3d0] sm:$0xff] }
 0x25f   :  { %4183 = vmatpush.msra.mxu0 %v8017_v55  ;;  %4341 = vmatpush.msra.mxu3 %v8019_v2  ;;  %v4403_v2 = vsub.f32 %v8249_v12, %v8984_v40  ;;  %v8987_v55 = vand.u32 4294901760, %v8277_v45  ;;  %v8988_v5 = vand.u32 4294901760, %v8290_v20  ;;  %v8323_v31 = vand.u32 4294901760, %v871_v43 }
 0x260   :  { %4239 = vmatpush.msra.mxu1 %v8056_v49  ;;  %4300 = vmatpush.msra.mxu2 %v4127_v13  ;;  %v8311_v13 = vpop.f32.mrf.mxu1  ;;  %v1089_v40 = vadd.f32 %v8107_v19, %v988_v25  ;;  %v8989_v19 = vand.u32 4294901760, %v8305_v23  ;;  %v865_v25 = vld [vmem:[#allocation5 + $0x3a0] sm:$0xff] }
 0x261   :  { %4186 = vmatpush.msra.mxu0 %v8029_v18  ;;  %4343 = vmatpush.msra.mxu3 %v8031_v32  ;;  %9214 = vst [vmem:[#allocation24_spill] sm:$0xff] %v8311_v13  ;;  %v944_v18 = vperm.slane %v8244_v62, 1  ;;  %v4409_v32 = vsub.f32 %v8263_v8, %v8986_v47  ;;  %v2351_v37 = vpop.f32.mrf.mxu0  ;;  %v8339_v62 = vsub.f32 %v874_v48, %v8307_v41 }
 0x262   :  { %4241 = vmatpush.msra.mxu1 %v8069_v35  ;;  %4304 = vmatpush.msra.mxu2 %v4133_v63  ;;  %v4415_v63 = vsub.f32 %v8277_v45, %v8987_v55  ;;  %v8354_v48 = vsub.f32 %v871_v43, %v8323_v31  ;;  %v9216_v55 = vld [vmem:[#allocation16_spill] sm:$0xff]  ;;  %v4427_v43 = vsub.f32 %v8305_v23, %v8989_v19  ;;  %v856_v19 = vld [vmem:[#allocation5 + $0x358] sm:$0xff] }
 0x263   :  { %4189 = vmatpush.msra.mxu0 %v8041_v16  ;;  %4345 = vmatpush.msra.mxu3 %v8043_v4  ;;  %v8330_v16 = vsub.f32 %v877_v3, %v8296_v44  ;;  %v4404_v4 = vand.u32 4294901760, %v4403_v2  ;;  %v8341_v47 = vpop.f32.mrf.mxu2  ;;  %v4421_v3 = vsub.f32 %v8290_v20, %v8988_v5  ;;  %v862_v2 = vld [vmem:[#allocation5 + $0x388] sm:$0xff] }
 0x264   :  { %4243 = vmatpush.msra.mxu1 %v8086_v60  ;;  %4308 = vmatpush.msra.mxu2 %v4139_v6  ;;  %9215 = vst [vmem:[#allocation10_spill] sm:$0xff] %v8341_v47  ;;  %v4410_v6 = vand.u32 4294901760, %v4409_v32  ;;  %v8368_v5 = vpop.f32.mrf.mxu3 }
 0x265   :  { %4192 = vmatpush.msra.mxu0 %v8054_v61  ;;  %4347 = vmatpush.msra.mxu3 %v8056_v49  ;;  %v8346_v61 = vand.u32 4294901760, %v868_v10  ;;  %v2352_v49 = vadd.f32 %v2351_v37, %v944_v18  ;;  %v8990_v37 = vand.u32 4294901760, %v8330_v16  ;;  %v8360_v18 = vand.u32 4294901760, %v865_v25  ;;  %9218 = vst [vmem:[#allocation11_spill] sm:$0xff] %v8368_v5  ;;  %v9222_v5 = vld [vmem:[#allocation15_spill] sm:$0xff] }
 0x266   :  { %4245 = vmatpush.msra.mxu1 %v8099_v57  ;;  %4312 = vmatpush.msra.mxu2 %v4145_v46  ;;  %v9217_v46 = vand.u32 4294901760, %v8123_v21 }
 0x267   :  { %4195 = vmatpush.msra.mxu0 %v8067_v50  ;;  %4349 = vmatpush.msra.mxu3 %v8069_v35  ;;  %v1143_v50 = vadd.f32 %v8140_v52, %v1089_v40  ;;  %v4416_v35 = vand.u32 4294901760, %v4415_v63  ;;  %v8373_v52 = vsub.f32 %v868_v10, %v8346_v61  ;;  %v8375_v40 = vand.u32 4294901760, %v862_v2 }
 0x268   :  { %4249 = vmatmul.f32.vlgmr.msra.gmra.mxu1 %v9216_v55  ;;  %4316 = vmatpush.msra.mxu2 %v9217_v46  ;;  %v859_v55 = vld [vmem:[#allocation5 + $0x370] sm:$0xff]  ;;  %v2452_v46 = vpop.f32.mrf.mxu1  ;;  %v8991_v63 = vand.u32 4294901760, %v8354_v48  ;;  %v8385_v10 = vsub.f32 %v865_v25, %v8360_v18 }
 0x269   :  { %4405 = vmatpush.msrb.mxu1 %v4404_v4  ;;  %4198 = vmatpush.msra.mxu0 %v8082_v15  ;;  %v2453_v15 = vadd.f32 %v2452_v46, %v2352_v49  ;;  %v4422_v4 = vand.u32 4294901760, %v4421_v3  ;;  %v8387_v32 = vand.u32 4294901760, %v859_v55  ;;  %v1182_v49 = vadd.f32 %v8156_v14, %v1143_v50 }
 0x26a   :  { %4351 = vmatpush.msra.mxu3 %v8086_v60  ;;  %4318 = vmatmul.f32.vlgmr.msra.gmra.mxu2 %v9199_v59  ;;  %v4433_v60 = vsub.f32 %v8330_v16, %v8990_v37  ;;  %9219 = vst [vmem:[#allocation12_spill] sm:$0xff] %v8385_v10  ;;  %v9220_v3 = vand.u32 4294901760, %v8339_v62  ;;  %v8398_v37 = vsub.f32 %v862_v2, %v8375_v40  ;;  %v8400_v14 = vand.u32 4294901760, %v856_v19 }
 0x26b   :  { %4411 = vmatpush.msrb.mxu1 %v4410_v6  ;;  %4503 = vmatpush.msrb.mxu2 %v8249_v12  ;;  %v4428_v6 = vand.u32 4294901760, %v4427_v43  ;;  %v2506_v46 = vpop.f32.mrf.mxu2  ;;  %v4445_v50 = vsub.f32 %v8354_v48, %v8991_v63  ;;  %v8410_v2 = vsub.f32 %v859_v55, %v8387_v32  ;;  %v2614_v63 = vpop.f32.mrf.mxu0 }
 0x26c   :  { %4201 = vmatpush.msra.mxu0 %v8095_v26  ;;  %4353 = vmatpush.msra.mxu3 %v8099_v57  ;;  %v4439_v26 = vsub.f32 %v8339_v62, %v9220_v3  ;;  %v853_v57 = vld [vmem:[#allocation5 + $0x340] sm:$0xff]  ;;  %9221 = vst [vmem:[#allocation13_spill] sm:$0xff] %v8398_v37  ;;  %v4434_v43 = vand.u32 4294901760, %v4433_v60  ;;  %v9223_v60 = vand.u32 4294901760, %v8373_v52  ;;  %v8995_v3 = vand.u32 4294901760, %v8398_v37 }
 0x26d   :  { %4355 = vmatmul.f32.vlgmr.msra.gmra.mxu3 %v9199_v59  ;;  %4417 = vmatpush.msrb.mxu1 %v4416_v35  ;;  %v2507_v59 = vadd.f32 %v2506_v46, %v2453_v15  ;;  %v850_v35 = vld [vmem:[#allocation5 + $0x328] sm:$0xff]  ;;  %v8412_v25 = vand.u32 4294901760, %v853_v57  ;;  %v2545_v46 = vpop.f32.mrf.mxu3  ;;  %v8423_v47 = vsub.f32 %v856_v19, %v8400_v14 }
 0x26e   :  { %4506 = vmatpush.msrb.mxu2 %v8263_v8  ;;  %4556 = vmatpush.msrb.mxu3 %v8227_v0  ;;  %v4440_v15 = vand.u32 4294901760, %v4439_v26  ;;  %v4451_v55 = vsub.f32 %v8373_v52, %v9223_v60  ;;  %v8992_v26 = vand.u32 4294901760, %v8410_v2 }
 0x26f   :  { %4204 = vmatpush.msra.mxu0 %v8112_v24  ;;  %4423 = vmatpush.msrb.mxu1 %v4422_v4  ;;  %v1251_v24 = vadd.f32 %v8130_v7, %v1182_v49  ;;  %v847_v4 = vld [vmem:[#allocation5 + $0x310] sm:$0xff]  ;;  %9224 = vst [vmem:[#allocation17_spill] sm:$0xff] %v8423_v47  ;;  %v8425_v7 = vand.u32 4294901760, %v850_v35  ;;  %v4446_v49 = vand.u32 4294901760, %v4445_v50  ;;  %v8435_v19 = vsub.f32 %v853_v57, %v8412_v25 }
 0x270   :  { %4509 = vmatpush.msrb.mxu2 %v8277_v45  ;;  %4558 = vmatpush.msrb.mxu3 %v8236_v36  ;;  %v8437_v60 = vand.u32 4294901760, %v847_v4  ;;  %v4452_v50 = vand.u32 4294901760, %v4451_v55  ;;  %v8993_v57 = vand.u32 4294901760, %v8423_v47 }
 0x271   :  { %4207 = vmatpush.msra.mxu0 %v8123_v21  ;;  %4429 = vmatpush.msrb.mxu1 %v4428_v6  ;;  %v2546_v21 = vadd.f32 %v2545_v46, %v2507_v59  ;;  %9226 = vst [vmem:[#allocation14_spill] sm:$0xff] %v8435_v19  ;;  %v1288_v59 = vadd.f32 %v8154_v17, %v1251_v24 }
 0x272   :  { %4210 = vmatmul.f32.vlgmr.msra.gmra.mxu0 %v9222_v5  ;;  %4512 = vmatpush.msrb.mxu2 %v8290_v20  ;;  %v9225_v5 = vand.u32 4294901760, %v8385_v10  ;;  %v4469_v24 = vsub.f32 %v8410_v2, %v8992_v26  ;;  %v8459_v55 = vsub.f32 %v847_v4, %v8437_v60  ;;  %v937_v26 = vld [vmem:[#allocation5 + $0x5e0] sm:$0xff] }
 0x273   :  { %4360 = vmatpush.msrb.mxu0 %v8227_v0  ;;  %4560 = vmatpush.msrb.mxu3 %v8251_v9  ;;  %v2615_v46 = vadd.f32 %v2614_v63, %v2546_v21  ;;  %v1329_v17 = vadd.f32 %v8171_v29, %v1288_v59  ;;  %v940_v29 = vld [vmem:[#allocation5 + $0x5f8] sm:$0xff] }
 0x274   :  { %4435 = vmatpush.msrb.mxu1 %v4434_v43  ;;  %4515 = vmatpush.msrb.mxu2 %v8305_v23  ;;  %v4457_v6 = vsub.f32 %v8385_v10, %v9225_v5  ;;  %v4463_v43 = vsub.f32 %v8398_v37, %v8995_v3  ;;  %v8448_v5 = vsub.f32 %v850_v35, %v8425_v7  ;;  %v2651_v35 = vpop.f32.mrf.mxu1  ;;  %v934_v3 = vld [vmem:[#allocation5 + $0x5c8] sm:$0xff] }
 0x275   :  { %4362 = vmatpush.msrb.mxu0 %v8236_v36  ;;  %4562 = vmatpush.msrb.mxu3 %v8265_v30  ;;  %9228 = vst [vmem:[#allocation22_spill] sm:$0xff] %v8459_v55  ;;  %v2652_v21 = vadd.f32 %v2651_v35, %v2615_v46  ;;  %v1430_v4 = vadd.f32 %v8182_v38, %v1329_v17  ;;  %v4470_v46 = vand.u32 4294901760, %v4469_v24  ;;  %v8476_v35 = vand.u32 4294901760, %v940_v29  ;;  %v2692_v38 = vpop.f32.mrf.mxu2 }
 0x276   :  { %4441 = vmatpush.msrb.mxu1 %v4440_v15  ;;  %4518 = vmatpush.msrb.mxu2 %v8330_v16  ;;  %9227 = vst [vmem:[#allocation18_spill] sm:$0xff] %v8448_v5  ;;  %v4458_v63 = vand.u32 4294901760, %v4457_v6  ;;  %v8994_v15 = vand.u32 4294901760, %v8435_v19  ;;  %v4475_v6 = vsub.f32 %v8423_v47, %v8993_v57  ;;  %v8996_v59 = vand.u32 4294901760, %v8448_v5 }
 0x277   :  { %4364 = vmatpush.msrb.mxu0 %v8251_v9  ;;  %4564 = vmatpush.msrb.mxu3 %v8279_v42  ;;  %v1484_v57 = vadd.f32 %v8165_v11, %v1430_v4  ;;  %v2693_v17 = vadd.f32 %v2692_v38, %v2652_v21  ;;  %v2793_v4 = vpop.f32.mrf.mxu3  ;;  %v2847_v38 = vpop.f32.mrf.mxu0 }
 0x278   :  { %4447 = vmatpush.msrb.mxu1 %v4446_v49  ;;  %4521 = vmatpush.msrb.mxu2 %v8339_v62  ;;  %v4464_v49 = vand.u32 4294901760, %v4463_v43  ;;  %v8997_v43 = vand.u32 4294901760, %v8459_v55  ;;  %v4487_v24 = vsub.f32 %v8448_v5, %v8996_v59  ;;  %v8498_v59 = vand.u32 4294901760, %v934_v3 }
 0x279   :  { %4366 = vmatpush.msrb.mxu0 %v8265_v30  ;;  %4566 = vmatpush.msrb.mxu3 %v8296_v44  ;;  %v1523_v13 = vadd.f32 %v8184_v1, %v1484_v57 }
 0x27a   :  { %4453 = vmatpush.msrb.mxu1 %v4452_v50  ;;  %4524 = vmatpush.msrb.mxu2 %v8354_v48  ;;  %v4481_v50 = vsub.f32 %v8435_v19, %v8994_v15  ;;  %v8485_v15 = vand.u32 4294901760, %v937_v26  ;;  %v4493_v21 = vsub.f32 %v8459_v55, %v8997_v43  ;;  %v4488_v43 = vand.u32 4294901760, %v4487_v24 }
 0x27b   :  { %4368 = vmatpush.msrb.mxu0 %v8279_v42  ;;  %4568 = vmatpush.msrb.mxu3 %v8307_v41 }
 0x27c   :  { %4459 = vmatpush.msrb.mxu1 %v4458_v63  ;;  %4527 = vmatpush.msrb.mxu2 %v8373_v52  ;;  %v4476_v63 = vand.u32 4294901760, %v4475_v6  ;;  %v4482_v11 = vand.u32 4294901760, %v4481_v50  ;;  %v931_v6 = vld [vmem:[#allocation5 + $0x5b0] sm:$0xff]  ;;  %v2794_v50 = vadd.f32 %v2793_v4, %v2693_v17  ;;  %v4494_v1 = vand.u32 4294901760, %v4493_v21  ;;  %v922_v21 = vld [vmem:[#allocation5 + $0x568] sm:$0xff]  ;;  %v2886_v4 = vpop.f32.mrf.mxu1 }
 0x27d   :  { %4370 = vmatpush.msrb.mxu0 %v8296_v44  ;;  %4570 = vmatpush.msrb.mxu3 %v8323_v31 }
 0x27e   :  { %4465 = vmatpush.msrb.mxu1 %v4464_v49  ;;  %4530 = vmatpush.msrb.mxu2 %v8385_v10  ;;  %v8494_v49 = vsub.f32 %v940_v29, %v8476_v35  ;;  %v8503_v29 = vsub.f32 %v937_v26, %v8485_v15  ;;  %v2848_v10 = vadd.f32 %v2847_v38, %v2794_v50 }
 0x27f   :  { %4372 = vmatpush.msrb.mxu0 %v8307_v41  ;;  %4572 = vmatpush.msrb.mxu3 %v8346_v61  ;;  %v8516_v26 = vsub.f32 %v934_v3, %v8498_v59 }
 0x280   :  { %4471 = vmatpush.msrb.mxu1 %v4470_v46  ;;  %4533 = vmatpush.msrb.mxu2 %v8398_v37  ;;  %9229 = vst [vmem:[#allocation16_spill] sm:$0xff] %v8494_v49  ;;  %v928_v46 = vld [vmem:[#allocation5 + $0x598] sm:$0xff]  ;;  %v8507_v37 = vand.u32 4294901760, %v931_v6  ;;  %v9000_v57 = vand.u32 4294901760, %v8494_v49  ;;  %v9004_v24 = vand.u32 4294901760, %v8503_v29  ;;  %v2887_v3 = vadd.f32 %v2886_v4, %v2848_v10 }
 0x281   :  { %4374 = vmatpush.msrb.mxu0 %v8323_v31  ;;  %4574 = vmatpush.msrb.mxu3 %v8360_v18  ;;  %9230 = vst [vmem:[#allocation15_spill] sm:$0xff] %v8503_v29  ;;  %v8511_v17 = vand.u32 4294901760, %v928_v46 }
 0x282   :  { %4477 = vmatpush.msrb.mxu1 %v4476_v63  ;;  %4536 = vmatpush.msrb.mxu2 %v8410_v2  ;;  %9231 = vst [vmem:[#allocation30_spill] sm:$0xff] %v8516_v26  ;;  %v1592_v63 = vadd.f32 %v8198_v34, %v1523_v13  ;;  %v8526_v38 = vsub.f32 %v931_v6, %v8507_v37  ;;  %v8538_v6 = vand.u32 4294901760, %v922_v21 }
 0x283   :  { %4376 = vmatpush.msrb.mxu0 %v8346_v61  ;;  %4576 = vmatpush.msrb.mxu3 %v8375_v40  ;;  %v4744_v34 = vsub.f32 %v8494_v49, %v9000_v57  ;;  %v8533_v13 = vsub.f32 %v928_v46, %v8511_v17  ;;  %v4750_v46 = vsub.f32 %v8503_v29, %v9004_v24  ;;  %v916_v57 = vld [vmem:[#allocation5 + $0x538] sm:$0xff]  ;;  %v913_v29 = vld [vmem:[#allocation5 + $0x520] sm:$0xff] }
 0x284   :  { %4483 = vmatpush.msrb.mxu1 %v4482_v11  ;;  %4539 = vmatpush.msrb.mxu2 %v8423_v47  ;;  %v8521_v11 = vand.u32 4294901760, %v925_v54  ;;  %9232 = vst [vmem:[#allocation31_spill] sm:$0xff] %v8526_v38  ;;  %v1629_v10 = vadd.f32 %v8211_v58, %v1592_v63  ;;  %v8564_v49 = vsub.f32 %v922_v21, %v8538_v6 }
 0x285   :  { %4378 = vmatpush.msrb.mxu0 %v8360_v18  ;;  %4578 = vmatpush.msrb.mxu3 %v8387_v32  ;;  %v4745_v24 = vand.u32 4294901760, %v4744_v34  ;;  %v3033_v34 = vpop.f32.mrf.mxu0 }
 0x286   :  { %4489 = vmatpush.msrb.mxu1 %v4488_v43  ;;  %4542 = vmatpush.msrb.mxu2 %v8435_v19  ;;  %v919_v43 = vld [vmem:[#allocation5 + $0x550] sm:$0xff]  ;;  %v8547_v4 = vsub.f32 %v925_v54, %v8521_v11  ;;  %v1670_v63 = vadd.f32 %v8190_v28, %v1629_v10  ;;  %v8566_v28 = vand.u32 4294901760, %v916_v57  ;;  %v9237_v10 = vld [vmem:[#allocation23_spill] sm:$0xff] }
 0x287   :  { %4380 = vmatpush.msrb.mxu0 %v8375_v40  ;;  %4580 = vmatpush.msrb.mxu3 %v8400_v14  ;;  %v8552_v58 = vand.u32 4294901760, %v919_v43  ;;  %v9235_v19 = vld [vmem:[#allocation21_spill] sm:$0xff] }
 0x288   :  { %4495 = vmatpush.msrb.mxu1 %v4494_v1  ;;  %4545 = vmatpush.msrb.mxu2 %v8448_v5  ;;  %v9233_v1 = vld [vmem:[#allocation20_spill] sm:$0xff]  ;;  %v2955_v5 = vpop.f32.mrf.mxu2 }
 0x289   :  { %4382 = vmatpush.msrb.mxu0 %v8387_v32  ;;  %4582 = vmatpush.msrb.mxu3 %v8412_v25  ;;  %9234 = vst [vmem:[#allocation20_spill] sm:$0xff] %v8547_v4  ;;  %v8577_v54 = vsub.f32 %v919_v43, %v8552_v58  ;;  %v3134_v43 = vpop.f32.mrf.mxu1 }
 0x28a   :  { %4497 = vmatmul.f32.vlgmr.msrb.gmra.mxu1 %v9233_v1  ;;  %4548 = vmatpush.msrb.mxu2 %v8459_v55  ;;  %v2956_v55 = vadd.f32 %v2955_v5, %v2887_v3  ;;  %v910_v3 = vld [vmem:[#allocation5 + $0x508] sm:$0xff]  ;;  %v9239_v5 = vand.u32 4294901760, %v8533_v13 }
 0x28b   :  { %4664 = vmatpush.msra.mxu1 %v8227_v0  ;;  %4384 = vmatpush.msrb.mxu0 %v8400_v14  ;;  %v9236_v0 = vand.u32 4294901760, %v8516_v26 }
 0x28c   :  { %4584 = vmatpush.msrb.mxu3 %v8425_v7  ;;  %4551 = vmatmul.f32.vlgmr.msrb.gmra.mxu2 %v9235_v19  ;;  %v4751_v19 = vand.u32 4294901760, %v4750_v46  ;;  %v1771_v46 = vadd.f32 %v8213_v39, %v1670_v63  ;;  %v8592_v39 = vand.u32 4294901760, %v910_v3 }
 0x28d   :  { %4666 = vmatpush.msra.mxu1 %v8236_v36  ;;  %4701 = vmatpush.msra.mxu2 %v8476_v35  ;;  %v4756_v50 = vsub.f32 %v8516_v26, %v9236_v0  ;;  %v2992_v36 = vpop.f32.mrf.mxu3  ;;  %v9238_v0 = vand.u32 4294901760, %v8526_v38  ;;  %v8579_v26 = vand.u32 4294901760, %v913_v29 }
 0x28e   :  { %4386 = vmatpush.msrb.mxu0 %v8412_v25  ;;  %4586 = vmatpush.msrb.mxu3 %v8437_v60  ;;  %v2993_v47 = vadd.f32 %v2992_v36, %v2956_v55 }
 0x28f   :  { %4590 = vmatmul.f32.vlgmr.msrb.gmra.mxu3 %v9237_v10  ;;  %4668 = vmatpush.msra.mxu1 %v8251_v9  ;;  %v4762_v21 = vsub.f32 %v8526_v38, %v9238_v0  ;;  %v4768_v10 = vsub.f32 %v8533_v13, %v9239_v5  ;;  %v907_v9 = vld [vmem:[#allocation5 + $0x4f0] sm:$0xff]  ;;  %v4757_v0 = vand.u32 4294901760, %v4756_v50  ;;  %v8590_v38 = vsub.f32 %v916_v57, %v8566_v28  ;;  %v904_v5 = vld [vmem:[#allocation5 + $0x4d8] sm:$0xff] }
 0x290   :  { %4703 = vmatpush.msra.mxu2 %v8485_v15  ;;  %4746 = vmatpush.msra.mxu3 %v4745_v24  ;;  %v3034_v55 = vadd.f32 %v3033_v34, %v2993_v47  ;;  %v9240_v24 = vand.u32 4294901760, %v8547_v4  ;;  %v8602_v57 = vsub.f32 %v913_v29, %v8579_v26  ;;  %v8604_v36 = vand.u32 4294901760, %v907_v9 }
 0x291   :  { %4388 = vmatpush.msrb.mxu0 %v8425_v7  ;;  %4670 = vmatpush.msra.mxu1 %v8265_v30  ;;  %v4763_v30 = vand.u32 4294901760, %v4762_v21  ;;  %v1825_v47 = vadd.f32 %v8229_v51, %v1771_v46  ;;  %v4769_v34 = vand.u32 4294901760, %v4768_v10  ;;  %v4791_v21 = vand.u32 4294901760, %v8590_v38 }
 0x292   :  { %4705 = vmatpush.msra.mxu2 %v8498_v59  ;;  %4752 = vmatpush.msra.mxu3 %v4751_v19  ;;  %v4774_v63 = vsub.f32 %v8547_v4, %v9240_v24  ;;  %v9241_v19 = vld [vmem:[#allocation25_spill] sm:$0xff]  ;;  %v901_v24 = vld [vmem:[#allocation5 + $0x4c0] sm:$0xff]  ;;  %v9242_v4 = vand.u32 4294901760, %v8249_v12  ;;  %v8616_v50 = vsub.f32 %v910_v3, %v8592_v39  ;;  %v8618_v51 = vand.u32 4294901760, %v904_v5 }
 0x293   :  { %4390 = vmatpush.msrb.mxu0 %v8437_v60  ;;  %4672 = vmatpush.msra.mxu1 %v8279_v42  ;;  %v9243_v42 = vand.u32 4294901760, %v8564_v49  ;;  %v3135_v46 = vadd.f32 %v3134_v43, %v3034_v55  ;;  %v9244_v12 = vand.u32 4294901760, %v8263_v8  ;;  %v8629_v3 = vsub.f32 %v907_v9, %v8604_v36  ;;  %v898_v43 = vld [vmem:[#allocation5 + $0x4a8] sm:$0xff]  ;;  %v3188_v8 = vpop.f32.mrf.mxu2 }
 0x294   :  { %4396 = vmatmul.f32.vlgmr.msrb.gmra.mxu0 %v9241_v19  ;;  %4707 = vmatpush.msra.mxu2 %v8507_v37  ;;  %v4775_v10 = vand.u32 4294901760, %v4774_v63  ;;  %v4797_v19 = vand.u32 4294901760, %v8602_v57  ;;  %v9246_v55 = vand.u32 4294901760, %v8277_v45  ;;  %v4792_v9 = vsub.f32 %v8590_v38, %v4791_v21 }
 0x295   :  { %4597 = vmatpush.msra.mxu0 %v9242_v4  ;;  %4758 = vmatpush.msra.mxu3 %v4757_v0  ;;  %v4780_v29 = vsub.f32 %v8564_v49, %v9243_v42  ;;  %v9245_v4 = vand.u32 4294901760, %v8577_v54  ;;  %v8631_v42 = vand.u32 4294901760, %v901_v24  ;;  %v8648_v45 = vand.u32 4294901760, %v898_v43 }
 0x296   :  { %4674 = vmatpush.msra.mxu1 %v8296_v44  ;;  %4709 = vmatpush.msra.mxu2 %v8511_v17  ;;  %v1864_v44 = vadd.f32 %v8253_v53, %v1825_v47  ;;  %v895_v53 = vld [vmem:[#allocation5 + $0x490] sm:$0xff]  ;;  %v3189_v47 = vadd.f32 %v3188_v8, %v3135_v46  ;;  %v4793_v46 = vand.u32 4294901760, %v4792_v9  ;;  %v3296_v8 = vpop.f32.mrf.mxu0 }
 0x297   :  { %4601 = vmatpush.msra.mxu0 %v9244_v12  ;;  %4764 = vmatpush.msra.mxu3 %v4763_v30  ;;  %v4786_v0 = vsub.f32 %v8577_v54, %v9245_v4  ;;  %v4781_v63 = vand.u32 4294901760, %v4780_v29  ;;  %v4803_v30 = vand.u32 4294901760, %v8616_v50  ;;  %v8643_v12 = vsub.f32 %v904_v5, %v8618_v51 }
 0x298   :  { %4676 = vmatpush.msra.mxu1 %v8307_v41  ;;  %4711 = vmatpush.msra.mxu2 %v8521_v11  ;;  %v1933_v41 = vadd.f32 %v8220_v22, %v1864_v44  ;;  %v4798_v5 = vsub.f32 %v8602_v57, %v4797_v19  ;;  %v4809_v4 = vand.u32 4294901760, %v8629_v3  ;;  %v8657_v22 = vsub.f32 %v901_v24, %v8631_v42  ;;  %v3227_v44 = vpop.f32.mrf.mxu3 }
 0x299   :  { %4605 = vmatpush.msra.mxu0 %v9246_v55  ;;  %4770 = vmatpush.msra.mxu3 %v4769_v34  ;;  %v9247_v34 = vand.u32 4294901760, %v8290_v20  ;;  %v4787_v29 = vand.u32 4294901760, %v4786_v0  ;;  %v9248_v20 = vand.u32 4294901760, %v8305_v23  ;;  %v4815_v0 = vand.u32 4294901760, %v8643_v12 }
 0x29a   :  { %4678 = vmatpush.msra.mxu1 %v8323_v31  ;;  %4713 = vmatpush.msra.mxu2 %v8538_v6  ;;  %v8661_v31 = vand.u32 4294901760, %v895_v53  ;;  %v1970_v24 = vadd.f32 %v8255_v56, %v1933_v41  ;;  %v3228_v23 = vadd.f32 %v3227_v44, %v3189_v47  ;;  %v9249_v55 = vand.u32 4294901760, %v8330_v16 }
 0x29b   :  { %4609 = vmatpush.msra.mxu0 %v9247_v34  ;;  %4776 = vmatpush.msra.mxu3 %v4775_v10  ;;  %v4804_v10 = vsub.f32 %v8616_v50, %v4803_v30  ;;  %v4810_v9 = vsub.f32 %v8629_v3, %v4809_v4  ;;  %v4821_v56 = vand.u32 4294901760, %v8657_v22  ;;  %v9250_v41 = vand.u32 4294901760, %v8339_v62 }
 0x29c   :  { %4680 = vmatpush.msra.mxu1 %v8346_v61  ;;  %4715 = vmatpush.msra.mxu2 %v8552_v58  ;;  %v8673_v61 = vsub.f32 %v898_v43, %v8648_v45  ;;  %v3297_v43 = vadd.f32 %v3296_v8, %v3228_v23  ;;  %v4816_v47 = vsub.f32 %v8643_v12, %v4815_v0  ;;  %v3374_v8 = vpop.f32.mrf.mxu2 }
 0x29d   :  { %4613 = vmatpush.msra.mxu0 %v9248_v20  ;;  %4782 = vmatpush.msra.mxu3 %v4781_v63  ;;  %v4799_v63 = vand.u32 4294901760, %v4798_v5  ;;  %v4805_v16 = vand.u32 4294901760, %v4804_v10  ;;  %v2011_v34 = vadd.f32 %v8281_v27, %v1970_v24  ;;  %v4811_v62 = vand.u32 4294901760, %v4810_v9  ;;  %v3333_v5 = vpop.f32.mrf.mxu1  ;;  %v9253_v10 = vld [vmem:[#allocation12_spill] sm:$0xff] }
 0x29e   :  { %4682 = vmatpush.msra.mxu1 %v8360_v18  ;;  %4717 = vmatpush.msra.mxu2 %v8566_v28  ;;  %v8684_v18 = vsub.f32 %v895_v53, %v8661_v31  ;;  %v9251_v53 = vand.u32 4294901760, %v8354_v48  ;;  %v3334_v20 = vadd.f32 %v3333_v5, %v3297_v43  ;;  %v4817_v27 = vand.u32 4294901760, %v4816_v47  ;;  %v9259_v47 = vld [vmem:[#allocation24_spill] sm:$0xff] }
 0x29f   :  { %4617 = vmatpush.msra.mxu0 %v9249_v55  ;;  %4788 = vmatpush.msra.mxu3 %v4787_v29  ;;  %v4822_v29 = vsub.f32 %v8657_v22, %v4821_v56  ;;  %v9254_v24 = vand.u32 4294901760, %v9253_v10  ;;  %v9263_v5 = vld [vmem:[#allocation16_spill] sm:$0xff]  ;;  %v9268_v10 = vld [vmem:[#allocation26_spill] sm:$0xff] }
 0x2a0   :  { %4684 = vmatpush.msra.mxu1 %v8375_v40  ;;  %4719 = vmatpush.msra.mxu2 %v8579_v26  ;;  %v4827_v40 = vand.u32 4294901760, %v8673_v61  ;;  %v3375_v55 = vadd.f32 %v3374_v8, %v3334_v20  ;;  %v3475_v43 = vpop.f32.mrf.mxu3  ;;  %v9264_v20 = vand.u32 4294901760, %v9263_v5 }
 0x2a1   :  { %4621 = vmatpush.msra.mxu0 %v9250_v41  ;;  %4794 = vmatpush.msra.mxu3 %v4793_v46  ;;  %v9252_v46 = vand.u32 4294901760, %v8373_v52  ;;  %v4823_v44 = vand.u32 4294901760, %v4822_v29  ;;  %v3529_v41 = vpop.f32.mrf.mxu0  ;;  %v9262_v29 = vld [vmem:[#allocation29_spill] sm:$0xff] }
 0x2a2   :  { %4686 = vmatpush.msra.mxu1 %v8387_v32  ;;  %4721 = vmatpush.msra.mxu2 %v8592_v39  ;;  %v4833_v32 = vand.u32 4294901760, %v8684_v18  ;;  %v4828_v48 = vsub.f32 %v8673_v61, %v4827_v40 }
 0x2a3   :  { %4625 = vmatpush.msra.mxu0 %v9251_v53  ;;  %4800 = vmatpush.msra.mxu3 %v4799_v63  ;;  %v9256_v63 = vld [vmem:[#allocation13_spill] sm:$0xff]  ;;  %v3476_v53 = vadd.f32 %v3475_v43, %v3375_v55  ;;  %v9273_v55 = vld [vmem:[#allocation30_spill] sm:$0xff] }
 0x2a4   :  { %4688 = vmatpush.msra.mxu1 %v8400_v14  ;;  %4723 = vmatpush.msra.mxu2 %v8604_v36  ;;  %v2112_v14 = vadd.f32 %v8309_v33, %v2011_v34  ;;  %v4834_v52 = vsub.f32 %v8684_v18, %v4833_v32  ;;  %v9257_v9 = vand.u32 4294901760, %v9256_v63  ;;  %v4829_v33 = vand.u32 4294901760, %v4828_v48  ;;  %v9267_v48 = vld [vmem:[#allocation10_spill] sm:$0xff] }
 0x2a5   :  { %4629 = vmatpush.msra.mxu0 %v9252_v46  ;;  %4806 = vmatpush.msra.mxu3 %v4805_v16  ;;  %v9265_v46 = vld [vmem:[#allocation14_spill] sm:$0xff]  ;;  %v9274_v63 = vand.u32 4294901760, %v9273_v55 }
 0x2a6   :  { %4690 = vmatpush.msra.mxu1 %v8412_v25  ;;  %4725 = vmatpush.msra.mxu2 %v8618_v51  ;;  %v9255_v25 = vld [vmem:[#allocation19_spill] sm:$0xff]  ;;  %v4835_v16 = vand.u32 4294901760, %v4834_v52 }
 0x2a7   :  { %4633 = vmatpush.msra.mxu0 %v9254_v24  ;;  %4812 = vmatpush.msra.mxu3 %v4811_v62  ;;  %v2166_v23 = vadd.f32 %v9255_v25, %v2112_v14  ;;  %v3568_v24 = vpop.f32.mrf.mxu1  ;;  %v9271_v25 = vld [vmem:[#allocation18_spill] sm:$0xff] }
 0x2a8   :  { %4692 = vmatpush.msra.mxu1 %v8425_v7  ;;  %4727 = vmatpush.msra.mxu2 %v8631_v42  ;;  %v9258_v7 = vand.u32 4294901760, %v8410_v2  ;;  %v3530_v2 = vadd.f32 %v3529_v41, %v3476_v53  ;;  %v3637_v41 = vpop.f32.mrf.mxu2  ;;  %v3674_v53 = vpop.f32.mrf.mxu3 }
 0x2a9   :  { %4637 = vmatpush.msra.mxu0 %v9257_v9  ;;  %4818 = vmatpush.msra.mxu3 %v4817_v27  ;;  %v2205_v34 = vadd.f32 %v9259_v47, %v2166_v23  ;;  %v9266_v27 = vand.u32 4294901760, %v9265_v46  ;;  %v9272_v23 = vand.u32 4294901760, %v9271_v25  ;;  %v9275_v9 = vld [vmem:[#allocation11_spill] sm:$0xff] }
 0x2aa   :  { %4694 = vmatpush.msra.mxu1 %v8437_v60  ;;  %4729 = vmatpush.msra.mxu2 %v8648_v45  ;;  %v9260_v60 = vld [vmem:[#allocation17_spill] sm:$0xff]  ;;  %v3569_v52 = vadd.f32 %v3568_v24, %v3530_v2 }
 0x2ab   :  { %4641 = vmatpush.msra.mxu0 %v9258_v7  ;;  %4824 = vmatpush.msra.mxu3 %v4823_v44  ;;  %v9261_v62 = vand.u32 4294901760, %v9260_v60  ;;  %v2274_v14 = vadd.f32 %v9267_v48, %v2205_v34  ;;  %v9269_v44 = vld [vmem:[#allocation15_spill] sm:$0xff]  ;;  %v9276_v7 = vld [vmem:[#allocation22_spill] sm:$0xff] }
 0x2ac   :  { %4696 = vmatmul.f32.vlgmr.msra.gmra.mxu1 %v9233_v1  ;;  %4731 = vmatpush.msra.mxu2 %v8661_v31  ;;  %v9270_v8 = vand.u32 4294901760, %v9269_v44  ;;  %v9277_v43 = vand.u32 4294901760, %v9276_v7  ;;  %v3638_v47 = vadd.f32 %v3637_v41, %v3569_v52 }
 0x2ad   :  { %4897 = vmatpush.msrb.mxu1 %v8476_v35  ;;  %4645 = vmatpush.msra.mxu0 %v9261_v62 }
 0x2ae   :  { %4830 = vmatpush.msra.mxu3 %v4829_v33  ;;  %4737 = vmatmul.f32.vlgmr.msra.gmra.mxu2 %v9262_v29  ;;  %v2311_v33 = vadd.f32 %v9275_v9, %v2274_v14  ;;  %v3675_v62 = vadd.f32 %v3674_v53, %v3638_v47 }
 0x2af   :  { %4899 = vmatpush.msrb.mxu1 %v8485_v15  ;;  %4938 = vmatpush.msrb.mxu2 %v9264_v20 }
 0x2b0   :  { %4649 = vmatpush.msra.mxu0 %v9266_v27  ;;  %4836 = vmatpush.msra.mxu3 %v4835_v16  ;;  %v5041_v34 = vmax.f32 %v2311_v33, 0.0  ;;  %v5042_v2 = vmax.f32 %v3675_v62, 0.0 }
 0x2b1   :  { %4838 = vmatmul.f32.vlgmr.msra.gmra.mxu3 %v9268_v10  ;;  %4901 = vmatpush.msrb.mxu1 %v8498_v59 }
 0x2b2   :  { %4942 = vmatpush.msrb.mxu2 %v9270_v8  ;;  %5005 = vmatpush.msrb.mxu3 %v8476_v35  ;;  %v9278_v35 = vld [vmem:[#allocation31_spill] sm:$0xff]  ;;  %v8771_v29 = vand.u32 4294901760, %v5041_v34 }
 0x2b3   :  { %4653 = vmatpush.msra.mxu0 %v9272_v23  ;;  %4903 = vmatpush.msrb.mxu1 %v8507_v37  ;;  %v9279_v16 = vand.u32 4294901760, %v9278_v35 }
 0x2b4   :  { %4946 = vmatpush.msrb.mxu2 %v9274_v63  ;;  %5007 = vmatpush.msrb.mxu3 %v8485_v15  ;;  %v9280_v15 = vand.u32 4294901760, %v8533_v13 }
 0x2b5   :  { %4657 = vmatpush.msra.mxu0 %v9277_v43  ;;  %4905 = vmatpush.msrb.mxu1 %v8511_v17 }
 0x2b6   :  { %4659 = vmatmul.f32.vlgmr.msra.gmra.mxu0 %v9233_v1  ;;  %4950 = vmatpush.msrb.mxu2 %v9279_v16  ;;  %v9281_v1 = vld [vmem:[#allocation20_spill] sm:$0xff] }
 0x2b7   :  { %4844 = vmatpush.msrb.mxu0 %v9263_v5  ;;  %5009 = vmatpush.msrb.mxu3 %v8498_v59  ;;  %v9282_v60 = vand.u32 4294901760, %v9281_v1  ;;  %v9283_v59 = vand.u32 4294901760, %v8564_v49 }
 0x2b8   :  { %4907 = vmatpush.msrb.mxu1 %v8521_v11  ;;  %4954 = vmatpush.msrb.mxu2 %v9280_v15 }
 0x2b9   :  { %4847 = vmatpush.msrb.mxu0 %v9269_v44  ;;  %5011 = vmatpush.msrb.mxu3 %v8507_v37  ;;  %v9284_v37 = vand.u32 4294901760, %v8577_v54 }
 0x2ba   :  { %4909 = vmatpush.msrb.mxu1 %v8538_v6  ;;  %4958 = vmatpush.msrb.mxu2 %v9282_v60 }
 0x2bb   :  { %4850 = vmatpush.msrb.mxu0 %v9273_v55  ;;  %5013 = vmatpush.msrb.mxu3 %v8511_v17  ;;  %v5089_v17 = vsub.f32 %v5041_v34, %v8771_v29 }
 0x2bc   :  { %4911 = vmatpush.msrb.mxu1 %v8552_v58  ;;  %4962 = vmatpush.msrb.mxu2 %v9283_v59 }
 0x2bd   :  { %4853 = vmatpush.msrb.mxu0 %v9278_v35  ;;  %5015 = vmatpush.msrb.mxu3 %v8521_v11  ;;  %v5208_v11 = vand.u32 4294901760, %v5042_v2 }
 0x2be   :  { %4913 = vmatpush.msrb.mxu1 %v8566_v28  ;;  %4966 = vmatpush.msrb.mxu2 %v9284_v37 }
 0x2bf   :  { %4856 = vmatpush.msrb.mxu0 %v8533_v13  ;;  %5017 = vmatpush.msrb.mxu3 %v8538_v6  ;;  %v5090_v13 = vand.u32 4294901760, %v5089_v17  ;;  %v5235_v6 = vsub.f32 %v5042_v2, %v5208_v11 }
 0x2c0   :  { %4915 = vmatpush.msrb.mxu1 %v8579_v26  ;;  %4970 = vmatpush.msrb.mxu2 %v4791_v21  ;;  %v9286_v21 = vld [vmem:[#allocation27_spill] sm:$0xff] }
 0x2c1   :  { %4859 = vmatpush.msrb.mxu0 %v9281_v1  ;;  %5019 = vmatpush.msrb.mxu3 %v8552_v58  ;;  %v5091_v58 = vsub.f32 %v5089_v17, %v5090_v13 }
 0x2c2   :  { %4917 = vmatpush.msrb.mxu1 %v8592_v39  ;;  %4974 = vmatpush.msrb.mxu2 %v4797_v19 }
 0x2c3   :  { %4862 = vmatpush.msrb.mxu0 %v8564_v49  ;;  %5021 = vmatpush.msrb.mxu3 %v8566_v28  ;;  %v5044_v49 = vld [vmem:[#allocation7] sm:$0xff]  ;;  %v9285_v28 = vld [vmem:[#allocation28_spill] sm:$0xff] }
 0x2c4   :  { %4919 = vmatpush.msrb.mxu1 %v8604_v36  ;;  %4978 = vmatpush.msrb.mxu2 %v4803_v30  ;;  %v3715_v30 = vpop.f32.mrf.mxu0 }
 0x2c5   :  { %4865 = vmatpush.msrb.mxu0 %v8577_v54  ;;  %5023 = vmatpush.msrb.mxu3 %v8579_v26  ;;  %v5236_v26 = vand.u32 4294901760, %v5235_v6  ;;  %v5092_v54 = vand.u32 4294901760, %v5091_v58  ;;  %v5485_v58 = vld [vmem:[#allocation2] sm:$0x1] }
 0x2c6   :  { %4921 = vmatpush.msrb.mxu1 %v8618_v51  ;;  %4982 = vmatpush.msrb.mxu2 %v4809_v4 }
 0x2c7   :  { %4868 = vmatpush.msrb.mxu0 %v8590_v38  ;;  %5025 = vmatpush.msrb.mxu3 %v8592_v39  ;;  %v5064_v38 = vand.u32 4294901760, %v5044_v49  ;;  %v5237_v39 = vsub.f32 %v5235_v6, %v5236_v26 }
 0x2c8   :  { %4923 = vmatpush.msrb.mxu1 %v8631_v42  ;;  %4986 = vmatpush.msrb.mxu2 %v4815_v0  ;;  %v3909_v0 = vpop.f32.mrf.mxu3 }
 0x2c9   :  { %4871 = vmatpush.msrb.mxu0 %v8602_v57  ;;  %5027 = vmatpush.msrb.mxu3 %v8604_v36  ;;  %v5238_v57 = vand.u32 4294901760, %v5237_v39 }
 0x2ca   :  { %4925 = vmatpush.msrb.mxu1 %v8648_v45  ;;  %4990 = vmatpush.msrb.mxu2 %v4821_v56 }
 0x2cb   :  { %4874 = vmatpush.msrb.mxu0 %v8616_v50  ;;  %5029 = vmatpush.msrb.mxu3 %v8618_v51  ;;  %v5065_v50 = vsub.f32 %v5044_v49, %v5064_v38 }
 0x2cc   :  { %4927 = vmatpush.msrb.mxu1 %v8661_v31  ;;  %4994 = vmatpush.msrb.mxu2 %v4827_v40 }
 0x2cd   :  { %4877 = vmatpush.msrb.mxu0 %v8629_v3  ;;  %5031 = vmatpush.msrb.mxu3 %v8631_v42  ;;  %v5066_v36 = vand.u32 4294901760, %v5065_v50  ;;  %v5510_v3 = vld [vmem:[%s8841_s4] sm:$0x7] }
 0x2ce   :  { %4931 = vmatmul.f32.vlgmr.msrb.gmra.mxu1 %v9285_v28  ;;  %4998 = vmatpush.msrb.mxu2 %v4833_v32  ;;  %v945_v42 = vperm.slane %v5510_v3, 2 }
 0x2cf   :  { %5093 = vmatpush.xpose.msra.mxu1 %v5092_v54  ;;  %4880 = vmatpush.msrb.mxu0 %v8643_v12  ;;  %v5067_v51 = vsub.f32 %v5065_v50, %v5066_v36 }
 0x2d0   :  { %5033 = vmatpush.msrb.mxu3 %v8648_v45  ;;  %5000 = vmatmul.f32.vlgmr.msrb.gmra.mxu2 %v9268_v10  ;;  %v3716_v12 = vadd.f32 %v3715_v30, %v945_v42  ;;  %v3816_v45 = vpop.f32.mrf.mxu1  ;;  %v4157_v46 = vpop.f32.mrf.mxu3 }
 0x2d1   :  { %4883 = vmatpush.msrb.mxu0 %v8657_v22  ;;  %5116 = vmatpush.xpose.msra.mxu2 %v5089_v17  ;;  %v5068_v19 = vand.u32 4294901760, %v5067_v51  ;;  %v3870_v22 = vpop.f32.mrf.mxu2 }
 0x2d2   :  { %5035 = vmatpush.msrb.mxu3 %v8661_v31  ;;  %v3817_v4 = vadd.f32 %v3816_v45, %v3716_v12 }
 0x2d3   :  { %5187 = vmatpush.xpose.msrb.mxu1 %v8771_v29  ;;  %5037 = vmatmul.f32.vlgmr.msrb.gmra.mxu3 %v9268_v10  ;;  %v5045_v10 = vld [vmem:[#allocation7 + $0x8] sm:$0xff] }
 0x2d4   :  { %5139 = vmatpush.xpose.msra.mxu3 %v8771_v29  ;;  %4886 = vmatpush.msrb.mxu0 %v8673_v61  ;;  %v3871_v31 = vadd.f32 %v3870_v22, %v3817_v4  ;;  %v3978_v61 = vpop.f32.mrf.mxu0  ;;  %v5210_v24 = vand.u32 4294901760, %v5045_v10 }
 0x2d5   :  { %5209 = vmatpush.xpose.msrb.mxu2 %v5208_v11 }
 0x2d6   :  { %4889 = vmatpush.msrb.mxu0 %v8684_v18  ;;  %5095 = vmatmul.f32.vlgmr.msra.gmra.mxu1 %v5064_v38  ;;  %v3910_v56 = vadd.f32 %v3909_v0, %v3871_v31  ;;  %v5211_v52 = vsub.f32 %v5045_v10, %v5210_v24 }
 0x2d7   :  { %4892 = vmatmul.f32.vlgmr.msrb.gmra.mxu0 %v9286_v21  ;;  %5285 = vmatpush.xpose.msra.mxu1 %v5208_v11 }
 0x2d8   :  { %5239 = vmatpush.xpose.msrb.mxu3 %v5238_v57  ;;  %5063 = vmatpush.xpose.msra.mxu0 %v8771_v29  ;;  %v3979_v18 = vadd.f32 %v3978_v61, %v3910_v56  ;;  %v4015_v40 = vpop.f32.mrf.mxu1  ;;  %v5212_v25 = vand.u32 4294901760, %v5211_v52  ;;  %v5046_v29 = vld [vmem:[#allocation7 + $0x10] sm:$0xff] }
 0x2d9   :  { %5119 = vmatmul.f32.vlgmr.msra.gmra.mxu2 %v5065_v50  ;;  %v4056_v5 = vpop.f32.mrf.mxu2  ;;  %v5356_v17 = vand.u32 4294901760, %v5046_v29 }
 0x2da   :  { %5311 = vmatpush.xpose.msra.mxu2 %v5236_v26  ;;  %v4016_v32 = vadd.f32 %v4015_v40, %v3979_v18  ;;  %v5213_v63 = vsub.f32 %v5211_v52, %v5212_v25 }
 0x2db   :  { %5143 = vmatmul.f32.vlgmr.msra.gmra.mxu3 %v5066_v36  ;;  %v5357_v49 = vsub.f32 %v5046_v29, %v5356_v17 }
 0x2dc   :  { %5165 = vmatpush.xpose.msrb.mxu0 %v5090_v13  ;;  %5333 = vmatpush.xpose.msra.mxu3 %v5208_v11  ;;  %v4057_v20 = vadd.f32 %v4056_v5, %v4016_v32  ;;  %v5214_v9 = vand.u32 4294901760, %v5213_v63 }
 0x2dd   :  { %v5358_v50 = vand.u32 4294901760, %v5357_v49 }
 0x2de   :  { %5189 = vmatmul.f32.vlgmr.msrb.gmra.mxu1 %v5064_v38  ;;  %v4158_v48 = vadd.f32 %v4157_v46, %v4057_v20 }
 0x2df   :  { %5069 = vmatmul.f32.vlgmr.msra.gmra.mxu0 %v5068_v19  ;;  %v5359_v51 = vsub.f32 %v5357_v49, %v5358_v50 }
 0x2e0   :  { %5262 = vmatpush.xpose.msra.mxu0 %v5235_v6 }
 0x2e1   :  { %5215 = vmatmul.f32.vlgmr.msrb.gmra.mxu2 %v5214_v9  ;;  %v5360_v42 = vand.u32 4294901760, %v5359_v51 }
 0x2e3   :  { %5241 = vmatmul.f32.vlgmr.msrb.gmra.mxu3 %v5210_v24 }
 0x2e5   :  { %v4250_v44 = vpop.f32.mrf.mxu1 }
 0x2e6   :  { %5289 = vmatmul.f32.vlgmr.msra.gmra.mxu1 %v5212_v25 }
 0x2e7   :  { %5167 = vmatmul.f32.vlgmr.msrb.gmra.mxu0 %v5064_v38  ;;  %v5594_v38 = vmov 0  }
 0x2e8   :  { %5509 = vset.pattern.permute.xlu0 %v5594_v38 }
 0x2e9   :  { %5313 = vmatmul.f32.vlgmr.msra.gmra.mxu2 %v5210_v24  ;;  %5488 = vperm.xlu0 %5509, %v5485_v58  }
 0x2eb   :  { %5335 = vmatmul.f32.vlgmr.msra.gmra.mxu3 %v5210_v24 }
 0x2ed   :  { %v4319_v23 = vpop.f32.mrf.mxu2 }
 0x2ef   :  { %v4211_v27 = vpop.f32.mrf.mxu0  ;;  %5265 = vmatmul.f32.vlgmr.msra.gmra.mxu0 %v5211_v52 }
 0x2f0   :  { %v4212_v14 = vadd.f32 %v4211_v27, %v4158_v48  ;;  %v4356_v33 = vpop.f32.mrf.mxu3 }
 0x2f2   :  { %v4251_v8 = vadd.f32 %v4250_v44, %v4212_v14 }
 0x2f4   :  { %v4320_v55 = vadd.f32 %v4319_v23, %v4251_v8 }
 0x2f6   :  { %v4357_v43 = vadd.f32 %v4356_v33, %v4320_v55 }
 0x307   :  { %v4498_v35 = vpop.f32.mrf.mxu1 }
 0x30f   :  { %v4552_v47 = vpop.f32.mrf.mxu2 }
 0x311   :  { %v4397_v7 = vpop.f32.mrf.mxu0 }
 0x312   :  { %v4398_v41 = vadd.f32 %v4397_v7, %v4357_v43  ;;  %v4591_v34 = vpop.f32.mrf.mxu3 }
 0x314   :  { %v4499_v16 = vadd.f32 %v4498_v35, %v4398_v41 }
 0x316   :  { %v4553_v15 = vadd.f32 %v4552_v47, %v4499_v16 }
 0x318   :  { %v4592_v1 = vadd.f32 %v4591_v34, %v4553_v15 }
 0x329   :  { %v4697_v62 = vpop.f32.mrf.mxu1 }
 0x331   :  { %v4738_v37 = vpop.f32.mrf.mxu2 }
 0x333   :  { %v4660_v53 = vpop.f32.mrf.mxu0 }
 0x334   :  { %v4661_v60 = vadd.f32 %v4660_v53, %v4592_v1  ;;  %v4839_v11 = vpop.f32.mrf.mxu3 }
 0x336   :  { %v4698_v59 = vadd.f32 %v4697_v62, %v4661_v60 }
 0x338   :  { %v4739_v2 = vadd.f32 %v4738_v37, %v4698_v59 }
 0x33a   :  { %v4840_v13 = vadd.f32 %v4839_v11, %v4739_v2 }
 0x34b   :  { %v4932_v54 = vpop.f32.mrf.mxu1 }
 0x353   :  { %v5001_v39 = vpop.f32.mrf.mxu2  ;;  %v5096_v22 = vpop.f32.mrf.mxu1 }
 0x354   :  { %v4893_v6 = vpop.f32.mrf.mxu0 }
 0x355   :  { %v4894_v26 = vadd.f32 %v4893_v6, %v4840_v13 }
 0x356   :  { %v5038_v36 = vpop.f32.mrf.mxu3 }
 0x357   :  { %v4933_v28 = vadd.f32 %v4932_v54, %v4894_v26 }
 0x359   :  { %v5002_v57 = vadd.f32 %v5001_v39, %v4933_v28 }
 0x35b   :  { %v5039_v21 = vadd.f32 %v5038_v36, %v5002_v57  ;;  %v5190_v20 = vpop.f32.mrf.mxu1  ;;  %v5489_v15 = vpop.permute.xlu0 %5488 }
 0x35c   :  { %v5070_v31 = vpop.f32.mrf.mxu0  ;;  %v5120_v61 = vpop.f32.mrf.mxu2  ;;  %v5491_v1 = vperm.slane %v5489_v15, 0 }
 0x35d   :  { %v5043_v19 = vmax.f32 %v5039_v21, 0.0  ;;  %v5097_v0 = vadd.f32 %v5096_v22, %v5070_v31 }
 0x35e   :  { %v5144_v18 = vpop.f32.mrf.mxu3 }
 0x35f   :  { %v5354_v3 = vand.u32 4294901760, %v5043_v19  ;;  %v5121_v56 = vadd.f32 %v5120_v61, %v5097_v0 }
 0x361   :  { %v5381_v30 = vsub.f32 %v5043_v19, %v5354_v3  ;;  %5355 = vmatpush.xpose.msrb.mxu0 %v5354_v3  ;;  %5431 = vmatpush.xpose.msrb.mxu3 %v5354_v3  ;;  %v5145_v40 = vadd.f32 %v5144_v18, %v5121_v56 }
 0x363   :  { %v5382_v12 = vand.u32 4294901760, %v5381_v30  ;;  %5408 = vmatpush.xpose.msrb.mxu2 %v5381_v30  ;;  %v5290_v8 = vpop.f32.mrf.mxu1 }
 0x364   :  { %5361 = vmatmul.f32.vlgmr.msrb.gmra.mxu0 %v5360_v42  ;;  %5435 = vmatmul.f32.vlgmr.msrb.gmra.mxu3 %v5358_v50  ;;  %v5168_v32 = vpop.f32.mrf.mxu0  ;;  %v5216_v27 = vpop.f32.mrf.mxu2 }
 0x365   :  { %v5383_v45 = vsub.f32 %v5381_v30, %v5382_v12  ;;  %5457 = vmatpush.xpose.msra.mxu0 %v5382_v12  ;;  %v5169_v5 = vadd.f32 %v5168_v32, %v5145_v40 }
 0x366   :  { %5411 = vmatmul.f32.vlgmr.msrb.gmra.mxu2 %v5357_v49  ;;  %v5242_v14 = vpop.f32.mrf.mxu3 }
 0x367   :  { %v5384_v4 = vand.u32 4294901760, %v5383_v45  ;;  %v5191_v46 = vadd.f32 %v5190_v20, %v5169_v5 }
 0x369   :  { %5385 = vmatpush.xpose.msrb.mxu1 %v5384_v4  ;;  %v5217_v48 = vadd.f32 %v5216_v27, %v5191_v46 }
 0x36b   :  { %v5243_v10 = vadd.f32 %v5242_v14, %v5217_v48 }
 0x36c   :  { %5387 = vmatmul.f32.vlgmr.msrb.gmra.mxu1 %v5356_v17  ;;  %5459 = vmatmul.f32.vlgmr.msra.gmra.mxu0 %v5356_v17  ;;  %v5266_v24 = vpop.f32.mrf.mxu0  ;;  %v5314_v25 = vpop.f32.mrf.mxu2 }
 0x36d   :  { %5479 = vmatpush.xpose.msra.mxu1 %v5354_v3  ;;  %v5267_v44 = vadd.f32 %v5266_v24, %v5243_v10 }
 0x36e   :  { %v5336_v55 = vpop.f32.mrf.mxu3 }
 0x36f   :  { %v5291_v52 = vadd.f32 %v5290_v8, %v5267_v44 }
 0x371   :  { %v5315_v23 = vadd.f32 %v5314_v25, %v5291_v52 }
 0x373   :  { %v5337_v63 = vadd.f32 %v5336_v55, %v5315_v23 }
 0x374   :  { %5481 = vmatmul.f32.vlgmr.msra.gmra.mxu1 %v5356_v17 }
 0x3e1   :  { %v5362_v9 = vpop.f32.mrf.mxu0 }
 0x3e2   :  { %v5363_v33 = vadd.f32 %v5362_v9, %v5337_v63 }
 0x3e7   :  { %v5436_v35 = vpop.f32.mrf.mxu3 }
 0x3e9   :  { %v5388_v7 = vpop.f32.mrf.mxu1  ;;  %v5412_v43 = vpop.f32.mrf.mxu2 }
 0x3ea   :  { %v5389_v41 = vadd.f32 %v5388_v7, %v5363_v33  ;;  %v5460_v47 = vpop.f32.mrf.mxu0 }
 0x3ec   :  { %v5413_v16 = vadd.f32 %v5412_v43, %v5389_v41 }
 0x3ee   :  { %v5437_v34 = vadd.f32 %v5436_v35, %v5413_v16 }
 0x3f0   :  { %v5461_v53 = vadd.f32 %v5460_v47, %v5437_v34 }
 0x3f1   :  { %v5482_v60 = vpop.f32.mrf.mxu1 }
 0x3f2   :  { %v5483_v62 = vadd.f32 %v5482_v60, %v5461_v53 }
 0x3f4   :  { %v5492_v59 = vadd.f32 %v5491_v1, %v5483_v62 }
 0x3f6   :  { %5494 = vst.msk [vmem:[%s8844_s7] sm:$0x1] %vm5493_vm2, %v5492_v59 }
 0x3f7   :  { %5499 = vsyncpa [#allocation4], 1 }
 0x3f8   :  { %5500 = vsyncpa [#allocation6], 1 }

</bundles_post_ra>
